<compile_context>
chip_gen: v5e
topology: v5e:2x2
jax: 0.10.0
libtpu: 0.0.40
codegen_flags: <defaults>
</compile_context>

<pallas_src>
import functools

import jax
import jax.numpy as jnp
from jax.experimental import pallas as pl
from jax.experimental.pallas import tpu as pltpu


# ---------------------------------------------------------------------------
# Kernels
# ---------------------------------------------------------------------------
def _counts_kernel(yp_ref, y_ref, res_ref, *, n_classes):
    """Fast path: res[b] += onehot(yp[b]) @ onehot(y[b]) on the MXU.

    yp_ref, y_ref: (TB, TL) int32;  res_ref: (TB, C, C) float32 (resident
    accumulator across the L grid axis).
    """
    @pl.when(pl.program_id(1) == 0)
    def _():
        res_ref[...] = jnp.zeros_like(res_ref)

    tb, tl = yp_ref.shape
    yp = yp_ref[...]
    y = y_ref[...]
    # One-hot encodings kept small (C*TL per row, not C^2*TL); compares stay in
    # int32 (no bf16 VPU needed on v5e), the L-reduction runs on the MXU with
    # bf16 operands and f32 accumulation (exact integer counts).
    cls_p = jax.lax.broadcasted_iota(jnp.int32, (tb, n_classes, tl), 1)
    cls_q = jax.lax.broadcasted_iota(jnp.int32, (tb, tl, n_classes), 2)
    pred_oh = (yp[:, None, :] == cls_p).astype(jnp.bfloat16)   # (TB, C, TL)
    lab_oh = (y[:, :, None] == cls_q).astype(jnp.bfloat16)     # (TB, TL, C)
    res_ref[...] += jnp.einsum(
        "bpl,blq->bpq", pred_oh, lab_oh, preferred_element_type=jnp.float32)


def _scatter_kernel(yp_ref, y_ref, x2_ref, x2_out_ref, res_ref, *, n_classes):
    """General path: scatter_(0, x, 1) into x2 and row-sum the updated buffer.

    yp_ref, y_ref: (TB, TL) int32; x2_ref/x2_out_ref: (TB, C*C, TL) f32;
    res_ref: (TB, C*C) f32 (lane-dense; resident accumulator across L tiles;
    reshaped to (B, C, C) in the wrapper).
    """
    @pl.when(pl.program_id(1) == 0)
    def _():
        res_ref[...] = jnp.zeros_like(res_ref)

    tb, cc, tl = x2_ref.shape
    x = yp_ref[...] * n_classes + y_ref[...]                    # (TB, TL)
    row_ids = jax.lax.broadcasted_iota(jnp.int32, (tb, cc, tl), 1)
    onehot = row_ids == x[:, None, :]                           # (TB, cc, TL)
    x2_new = jnp.where(onehot, jnp.float32(1.0), x2_ref[...])
    x2_out_ref[...] = x2_new
    res_ref[...] += jnp.sum(x2_new, axis=-1)


# ---------------------------------------------------------------------------
# Tiling helpers
# ---------------------------------------------------------------------------
def _pick_div_tile(total, limit, align):
    """Largest t <= limit that divides `total` and is a multiple of `align`;
    falls back to the full extent (always a legal block)."""
    if limit >= total:
        return total
    t = (min(limit, total) // align) * align
    while t >= align and total % t:
        t -= align
    return t if t >= align else total


def _pick_tiles(B, L, bytes_per_pos, vmem_budget_bytes=12 << 20):
    """Pick (TB, TL).  `bytes_per_pos` ~ pipelined VMEM bytes per (batch, pos)
    element (incl. double buffering).  Budget ~12 MiB keeps us under the v5e
    16 MiB scoped-VMEM default, the tightest across v5e/v6e/v7x."""
    tb_min = B if B < 8 else 8
    if L <= 128 or bytes_per_pos * L * tb_min <= vmem_budget_bytes:
        tl = L
    else:
        limit_l = max(128, vmem_budget_bytes // max(bytes_per_pos * tb_min, 1))
        tl = _pick_div_tile(L, limit_l, 128)
    limit_b = max(1, vmem_budget_bytes // max(bytes_per_pos * tl, 1))
    tb = _pick_div_tile(B, limit_b, 8)
    return tb, tl


# ---------------------------------------------------------------------------
# Wrappers
# ---------------------------------------------------------------------------
def confusion_matrix_counts(yp, y, n_classes, block_b=None, block_l=None):
    """res-only fast path (assumes the scatter target x2 is all zeros)."""
    B, L = yp.shape
    yp = yp.astype(jnp.int32)
    y = y.astype(jnp.int32)
    if block_b is None or block_l is None:
        # yp + y (int32, double-buffered) + two bf16 one-hot intermediates.
        bytes_per_pos = 2 * 2 * 4 + 2 * n_classes * 2
        tb, tl = _pick_tiles(B, L, bytes_per_pos)
        block_b = block_b or tb
        block_l = block_l or tl
    tb, tl = block_b, block_l
    assert B % tb == 0 and L % tl == 0
    kernel = functools.partial(_counts_kernel, n_classes=n_classes)
    res = pl.pallas_call(
        kernel,
        out_shape=jax.ShapeDtypeStruct((B, n_classes, n_classes), jnp.float32),
        grid_spec=pltpu.PrefetchScalarGridSpec(
            num_scalar_prefetch=0,
            grid=(B // tb, L // tl),
            in_specs=[
                pl.BlockSpec((tb, tl), lambda i, l: (i, l)),   # yp
                pl.BlockSpec((tb, tl), lambda i, l: (i, l)),   # y
            ],
            out_specs=pl.BlockSpec((tb, n_classes, n_classes),
                                   lambda i, l: (i, 0, 0)),
        ),
        compiler_params=pltpu.CompilerParams(
            dimension_semantics=("parallel", "arbitrary")),
    )(yp, y)
    return res


def confusion_matrix(yp, y, x2, n_classes, block_b=None, block_l=None):
    """General path matching the PyTorch forward exactly.

    yp, y: [B, L] integer arrays; x2: [B, C*C, L] float32 scatter target.
    Returns (res [B, C, C], x2_out [B, C*C, L]); x2_out reuses x2's HBM buffer
    (input_output_aliases), mirroring the in-place scatter_.
    """
    B, L = yp.shape
    cc = n_classes * n_classes
    assert x2.shape == (B, cc, L)
    yp = yp.astype(jnp.int32)
    y = y.astype(jnp.int32)
    x2 = x2.astype(jnp.float32)
    if block_b is None or block_l is None:
        # x2 in+out (f32, double-buffered) + x2_new temp + yp/y blocks.
        bytes_per_pos = 2 * 2 * cc * 4 + cc * 4 + 2 * 2 * 4
        tb, tl = _pick_tiles(B, L, bytes_per_pos)
        block_b = block_b or tb
        block_l = block_l or tl
    tb, tl = block_b, block_l
    assert B % tb == 0 and L % tl == 0
    kernel = functools.partial(_scatter_kernel, n_classes=n_classes)
    x2_out, res_flat = pl.pallas_call(
        kernel,
        out_shape=(
            jax.ShapeDtypeStruct((B, cc, L), jnp.float32),
            jax.ShapeDtypeStruct((B, cc), jnp.float32),
        ),
        grid_spec=pltpu.PrefetchScalarGridSpec(
            num_scalar_prefetch=0,
            grid=(B // tb, L // tl),
            in_specs=[
                pl.BlockSpec((tb, tl), lambda i, l: (i, l)),         # yp
                pl.BlockSpec((tb, tl), lambda i, l: (i, l)),         # y
                pl.BlockSpec((tb, cc, tl), lambda i, l: (i, 0, l)),  # x2
            ],
            out_specs=(
                pl.BlockSpec((tb, cc, tl), lambda i, l: (i, 0, l)),  # x2_out
                pl.BlockSpec((tb, cc), lambda i, l: (i, 0)),         # res
            ),
        ),
        input_output_aliases={2: 0},   # x2 -> x2_out: reuse HBM buffer
        compiler_params=pltpu.CompilerParams(
            dimension_semantics=("parallel", "arbitrary")),
    )(yp, y, x2)
    res = res_flat.reshape(B, n_classes, n_classes)
    return res, x2_out


# ---------------------------------------------------------------------------
# Pure-JAX reference
# ---------------------------------------------------------------------------
def _reference(yp, y, x2, n_classes):
    B, L = yp.shape
    cc = n_classes * n_classes
    x = yp.astype(jnp.int32) * n_classes + y.astype(jnp.int32)      # (B, L)
    onehot = x[:, None, :] == jnp.arange(cc, dtype=jnp.int32)[None, :, None]
    x2n = jnp.where(onehot, jnp.float32(1.0), x2)                   # (B, cc, L)
    res = x2n.sum(axis=2).reshape(B, n_classes, n_classes)
    return res, x2n


if __name__ == "__main__":
    B = 8
    n_classes = 4
    L = 256                      # flattened per-sample length
    cc = n_classes * n_classes

    key = jax.random.PRNGKey(0)
    k1, k2, k3 = jax.random.split(key, 3)
    yp = jax.random.randint(k1, (B, L), 0, n_classes, dtype=jnp.int32)
    y = jax.random.randint(k2, (B, L), 0, n_classes, dtype=jnp.int32)

    # --- Fast path: zero-initialized x2 (the typical usage) => res only. ---
    res_fast = jax.block_until_ready(confusion_matrix_counts(yp, y, n_classes))
    res_ref0, _ = _reference(yp, y, jnp.zeros((B, cc, L), jnp.float32),
                             n_classes)
    assert res_fast.shape == (B, n_classes, n_classes)
    assert jnp.allclose(res_fast, res_ref0), "fast-path res mismatch"
    # sanity: each per-sample confusion matrix counts exactly L positions
    assert jnp.allclose(res_fast.sum(axis=(1, 2)), jnp.full((B,), float(L)))

    # --- General path: nonzero x2 pass-through (scatter_ + row sums). ---
    x2 = (jax.random.bernoulli(k3, 0.25, (B, cc, L)) * 2.0).astype(jnp.float32)
    res_ref, x2n_ref = _reference(yp, y, x2, n_classes)
    jax.block_until_ready((res_ref, x2n_ref))     # x2 buffer is aliased below
    res_gen, x2_out = confusion_matrix(yp, y, x2, n_classes)
    jax.block_until_ready((res_gen, x2_out))
    assert res_gen.shape == (B, n_classes, n_classes)
    assert jnp.allclose(res_gen, res_ref), "general-path res mismatch"
    assert jnp.allclose(x2_out, x2n_ref), "general-path x2 mismatch"

    print("KERNEL_OK")
</pallas_src>

<mosaic_0001>
module attributes {stable_mosaic.version = 11 : i64} {
  func.func @_counts_kernel(%arg0: i32, %arg1: i32, %arg2: memref<8x256xi32, #tpu.memory_space<vmem>>, %arg3: memref<8x256xi32, #tpu.memory_space<vmem>>, %arg4: memref<8x4x4xf32, #tpu.memory_space<vmem>>) attributes {dimension_semantics = [#tpu.dimension_semantics<parallel>, #tpu.dimension_semantics<arbitrary>], iteration_bounds = array<i64: 1, 1>, scalar_prefetch = 0 : i64, scratch_operands = 0 : i64, tpu.core_type = #tpu.core_type<tc>, window_params = [{transform_indices = @transform_0, window_bounds = array<i64: 8, 256>}, {transform_indices = @transform_1, window_bounds = array<i64: 8, 256>}, {transform_indices = @transform_2, window_bounds = array<i64: 8, 4, 4>}]} {
    %c0_i32 = arith.constant 0 : i32
    %0 = arith.cmpi eq, %arg1, %c0_i32 : i32
    %1 = arith.extui %0 : i1 to i32
    %c0_i32_0 = arith.constant 0 : i32
    %2 = arith.cmpi ne, %1, %c0_i32_0 : i32
    scf.if %2 {
      %cst_10 = arith.constant 0.000000e+00 : f32
      %23 = vector.broadcast %cst_10 : f32 to vector<8x4x4xf32>
      %c0_11 = arith.constant 0 : index
      %c0_12 = arith.constant 0 : index
      %c0_13 = arith.constant 0 : index
      %24 = vector.load %arg4[%c0_11, %c0_12, %c0_13] : memref<8x4x4xf32, #tpu.memory_space<vmem>>, vector<8x4x4xf32>
      tpu.vector_store %arg4[%c0_11, %c0_12, %c0_13], %23 {strides = array<i32>} : memref<8x4x4xf32, #tpu.memory_space<vmem>>, vector<8x4x4xf32>,
    } else {
    }
    %c0 = arith.constant 0 : index
    %c0_1 = arith.constant 0 : index
    %3 = vector.load %arg2[%c0, %c0_1] : memref<8x256xi32, #tpu.memory_space<vmem>>, vector<8x256xi32>
    %c0_2 = arith.constant 0 : index
    %c0_3 = arith.constant 0 : index
    %4 = vector.load %arg3[%c0_2, %c0_3] : memref<8x256xi32, #tpu.memory_space<vmem>>, vector<8x256xi32>
    %5 = tpu.iota {dimensions = array<i32: 1>} : vector<8x4x256xi32>
    %6 = tpu.iota {dimensions = array<i32: 2>} : vector<8x256x4xi32>
    %7 = vector.shape_cast %3 : vector<8x256xi32> to vector<8x1x256xi32>
    %8 = vector.broadcast %7 : vector<8x1x256xi32> to vector<8x4x256xi32>
    %9 = arith.cmpi eq, %8, %5 : vector<8x4x256xi32>
    %10 = arith.extui %9 : vector<8x4x256xi1> to vector<8x4x256xi32>
    %11 = arith.sitofp %10 : vector<8x4x256xi32> to vector<8x4x256xf32>
    %12 = arith.truncf %11 : vector<8x4x256xf32> to vector<8x4x256xbf16>
    %13 = vector.shape_cast %4 : vector<8x256xi32> to vector<8x256x1xi32>
    %14 = vector.broadcast %13 : vector<8x256x1xi32> to vector<8x256x4xi32>
    %15 = arith.cmpi eq, %14, %6 : vector<8x256x4xi32>
    %16 = arith.extui %15 : vector<8x256x4xi1> to vector<8x256x4xi32>
    %17 = arith.sitofp %16 : vector<8x256x4xi32> to vector<8x256x4xf32>
    %18 = arith.truncf %17 : vector<8x256x4xf32> to vector<8x256x4xbf16>
    %c0_4 = arith.constant 0 : index
    %c0_5 = arith.constant 0 : index
    %c0_6 = arith.constant 0 : index
    %19 = vector.load %arg4[%c0_4, %c0_5, %c0_6] : memref<8x4x4xf32, #tpu.memory_space<vmem>>, vector<8x4x4xf32>
    "tpu.trace_start"() <{level = 10 : i32, message = "bpl,blq->bpq"}> : () -> ()
    %cst = arith.constant dense<0.000000e+00> : vector<8x4x4xf32>
    %20 = tpu.matmul %12, %18, %cst {dimension_numbers = #tpu.dot_dimension_numbers<[2], [1], [1], [2], [0, 0, 0, 1, 1, 2], [0], [0]>} : vector<8x4x256xbf16>, vector<8x256x4xbf16>, vector<8x4x4xf32> -> vector<8x4x4xf32>
    "tpu.trace_stop"() : () -> ()
    %21 = arith.addf %19, %20 : vector<8x4x4xf32>
    %c0_7 = arith.constant 0 : index
    %c0_8 = arith.constant 0 : index
    %c0_9 = arith.constant 0 : index
    %22 = vector.load %arg4[%c0_7, %c0_8, %c0_9] : memref<8x4x4xf32, #tpu.memory_space<vmem>>, vector<8x4x4xf32>
    tpu.vector_store %arg4[%c0_7, %c0_8, %c0_9], %21 {strides = array<i32>} : memref<8x4x4xf32, #tpu.memory_space<vmem>>, vector<8x4x4xf32>,
    return
  }
  func.func @transform_0(%arg0: i32, %arg1: i32) -> (i32, i32) {
    %c0_i32 = arith.constant 0 : i32
    return %arg0, %arg1 : i32, i32
  }
  func.func @transform_1(%arg0: i32, %arg1: i32) -> (i32, i32) {
    %c0_i32 = arith.constant 0 : i32
    return %arg0, %arg1 : i32, i32
  }
  func.func @transform_2(%arg0: i32, %arg1: i32) -> (i32, i32, i32) {
    %c0_i32 = arith.constant 0 : i32
    %c0_i32_0 = arith.constant 0 : i32
    %c0_i32_1 = arith.constant 0 : i32
    return %arg0, %c0_i32, %c0_i32_0 : i32, i32, i32
  }
}

</mosaic_0001>

<bundles_post_ra>
// kernel: tpu_custom_call.1
= control target key start
LH: loop header
LB: loop body
LE: loop exit
PB: predicated region body
PF: predicated region fallthrough
CT: control target
= control target key end

     0   :  { %7 = vsyncpa [#allocation3], 0  ;;  %s6077_s0 = inlined_call_operand.hbm [shape: s32[8,256], index: 0, kind: input, shape index: {}]   ;;  %s6078_s1 = inlined_call_operand.hbm [shape: s32[8,256], index: 1, kind: input, shape index: {}]   ;;  %s6079_s2 = inlined_call_operand.vmem [shape: f32[8,4,4], index: 2, kind: output, shape index: {}]  }
   0x1   :  { %s14_s11 = sshll.u32 %s6077_s0, 4  ;;  %s15_s11 = int_to_ptr.hbm [resolvable:$true] %s14_s11 }
   0x2   :  { %8 = vsyncpa [#allocation5], 0  ;;  %s4338_s12 = smov [#allocation2]   ;;  %s25_s16 = sshll.u32 %s6078_s1, 4  ;;  %s26_s16 = int_to_ptr.hbm [resolvable:$true] %s25_s16 }
   0x3   :  { %s16_s13 = sshll.u32 %s4338_s12, 4  ;;  %s4339_s17 = smov [#allocation4]   ;;  %s17_s13 = int_to_ptr.vmem [resolvable:$true] %s16_s13 }
   0x4   :  { %19 = dma.hbm_to_vmem [thread:$0]  %s15_s11, 256, %s17_s13, [#allocation3]  }
   0x5   :  { %s27_s18 = sshll.u32 %s4339_s17, 4  ;;  %s28_s18 = int_to_ptr.vmem [resolvable:$true] %s27_s18 }
   0x6   :  { %30 = dma.hbm_to_vmem [thread:$0]  %s26_s16, 256, %s28_s18, [#allocation5]  }
   0x7   :  { %4334 = dma.done.wait [#allocation3], 256  }
   0x8   :  { %4335 = vsyncadd [#allocation3], 4294967040 }
   0x9   :  { %4336 = dma.done.wait [#allocation5], 256  }
   0xa   :  { %4337 = vsyncadd [#allocation5], 4294967040  ;;  %v56_v0 = vlaneseq  ;;  %v4377_v5 = vld [vmem:[#allocation4] sm:$0xff]  ;;  %v4397_v10 = vld [vmem:[#allocation4 + $0x8] sm:$0xff]  ;;  %v6080_v49 = vmov 0.0  }
   0xb   :  { %v4380_v6 = vperm.slane %v4377_v5, 0  ;;  %v4392_v9 = vperm.slane %v4377_v5, 1  ;;  %v4400_v11 = vperm.slane %v4397_v10, 3  ;;  %v4415_v14 = vperm.slane %v4377_v5, 2 }
   0xc   :  { %v4363_v1 = vshrl.u32 %v56_v0, 7  ;;  %v4427_v17 = vperm.slane %v4397_v10, 4  ;;  %v4457_v22 = vperm.slane %v4397_v10, 2  ;;  %v4463_v23 = vperm.slane %v4377_v5, 5 }
   0xd   :  { %6102 = vst [vmem:[#allocation8_spill] sm:$0xff] %v4400_v11  ;;  %v4469_v24 = vperm.slane %v4397_v10, 0  ;;  %v4502_v30 = vperm.slane %v4377_v5, 3  ;;  %v4510_v32 = vperm.slane %v4397_v10, 5  ;;  %v4543_v44 = vperm.slane %v4377_v5, 6 }
   0xe   :  { %v4366_v2 = vadd.s32 32, %v4363_v1  ;;  %v4369_v3 = vadd.s32 16, %v4363_v1  ;;  %v4372_v4 = vadd.s32 8, %v4363_v1  ;;  %v4386_v7 = vadd.s32 40, %v4363_v1  ;;  %6103 = vst [vmem:[#allocation9_spill] sm:$0xff] %v4427_v17 }
   0xf   :  { %v4389_v8 = vadd.s32 24, %v4363_v1  ;;  %v4406_v12 = vadd.s32 56, %v4363_v1  ;;  %v4409_v13 = vadd.s32 48, %v4363_v1  ;;  %v4421_v15 = vadd.s32 80, %v4363_v1  ;;  %6105 = vst [vmem:[#allocation11_spill] sm:$0xff] %v4463_v23 }
  0x10   :  { %4073 = vset.pattern.permute.xlu2 %v4366_v2  ;;  %4071 = vset.pattern.permute.xlu1 %v4369_v3  ;;  %v4424_v16 = vadd.s32 72, %v4363_v1  ;;  %v4436_v18 = vadd.s32 96, %v4363_v1  ;;  %v4439_v19 = vadd.s32 88, %v4363_v1  ;;  %v4448_v20 = vadd.s32 120, %v4363_v1  ;;  %6112 = vst [vmem:[#allocation18_spill] sm:$0xff] %v4543_v44 }
  0x11   :  { %4070 = vset.pattern.permute.xlu0 %v4372_v4  ;;  %v4451_v21 = vadd.s32 112, %v4363_v1  ;;  %v4472_v25 = vadd.s32 104, %v4363_v1  ;;  %v4492_v27 = vadd.s32 64, %v4363_v1  ;;  %v4548_v46 = vand.u32 127, %v56_v0 }
  0x12   :  { %v4566_v59 = vperm.slane %v4397_v10, 1  ;;  %v4574_v61 = vperm.slane %v4377_v5, 4 }
  0x13   :  { %6104 = vst [vmem:[#allocation10_spill] sm:$0xff] %v4451_v21 }
  0x14   :  { %6106 = vst [vmem:[#allocation12_spill] sm:$0xff] %v4472_v25 }
  0x15   :  { %6116 = vst [vmem:[#allocation22_spill] sm:$0xff] %v4574_v61 }
  0x18   :  { %185 = vperm.xlu2 %4073, %v4380_v6   ;;  %173 = vperm.xlu1 %4071, %v4380_v6  }
  0x19   :  { %167 = vperm.xlu0 %4070, %v4380_v6  }
  0x20   :  { %4074 = vset.pattern.permute.xlu2 %v4386_v7  ;;  %4072 = vset.pattern.permute.xlu1 %v4389_v8 }
  0x21   :  { %361 = vperm.xlu0 %4070, %v4392_v9  }
  0x28   :  { %191 = vperm.xlu2 %4074, %v4380_v6   ;;  %179 = vperm.xlu1 %4072, %v4380_v6  }
  0x29   :  { %846 = vperm.xlu0 %4070, %v4400_v11  }
  0x30   :  { %4076 = vset.pattern.permute.xlu2 %v4406_v12  ;;  %4075 = vset.pattern.permute.xlu1 %v4409_v13 }
  0x31   :  { %4161 = vset.pattern.permute.xlu0 %v4366_v2 }
  0x38   :  { %203 = vperm.xlu2 %4076, %v4380_v6   ;;  %197 = vperm.xlu1 %4075, %v4380_v6  }
  0x39   :  { %573 = vperm.xlu0 %4161, %v4415_v14  }
  0x40   :  { %4078 = vset.pattern.permute.xlu2 %v4421_v15  ;;  %4077 = vset.pattern.permute.xlu1 %v4424_v16 }
  0x41   :  { %1058 = vperm.xlu0 %4161, %v4427_v17  }
  0x48   :  { %221 = vperm.xlu2 %4078, %v4380_v6   ;;  %215 = vperm.xlu1 %4077, %v4380_v6  }
  0x49   :  { %4190 = vset.pattern.permute.xlu0 %v4424_v16 }
  0x50   :  { %4080 = vset.pattern.permute.xlu2 %v4436_v18  ;;  %4079 = vset.pattern.permute.xlu1 %v4439_v19 }
  0x51   :  { %603 = vperm.xlu0 %4190, %v4415_v14  }
  0x58   :  { %233 = vperm.xlu2 %4080, %v4380_v6   ;;  %227 = vperm.xlu1 %4079, %v4380_v6  }
  0x59   :  { %1088 = vperm.xlu0 %4190, %v4427_v17  }
  0x60   :  { %4082 = vset.pattern.permute.xlu2 %v4448_v20  ;;  %4081 = vset.pattern.permute.xlu1 %v4451_v21 }
  0x61   :  { %4195 = vset.pattern.permute.xlu0 %v4389_v8 }
  0x68   :  { %251 = vperm.xlu2 %4082, %v4380_v6   ;;  %245 = vperm.xlu1 %4081, %v4380_v6  }
  0x69   :  { %664 = vperm.xlu0 %4195, %v4457_v22  }
  0x70   :  { %4084 = vset.pattern.permute.xlu2 %v4372_v4  ;;  %4083 = vset.pattern.permute.xlu1 %v4363_v1 }
  0x71   :  { %1149 = vperm.xlu0 %4195, %v4463_v23  }
  0x72   :  { %v4497_v28 = vpop.permute.xlu2 %185 }
  0x78   :  { %264 = vperm.xlu2 %4084, %v4469_v24   ;;  %258 = vperm.xlu1 %4083, %v4469_v24  }
  0x79   :  { %4204 = vset.pattern.permute.xlu0 %v4472_v25 }
  0x80   :  { %4086 = vset.pattern.permute.xlu2 %v4366_v2  ;;  %4085 = vset.pattern.permute.xlu1 %v4389_v8 }
  0x81   :  { %239 = vperm.xlu0 %4204, %v4380_v6  }
  0x82   :  { %v4507_v31 = vpop.permute.xlu2 %191 }
  0x88   :  { %282 = vperm.xlu2 %4086, %v4469_v24   ;;  %276 = vperm.xlu1 %4085, %v4469_v24  }
  0x89   :  { %724 = vperm.xlu0 %4204, %v4457_v22  }
  0x8a   :  { %v4517_v34 = vpop.permute.xlu1 %173 }
  0x8b   :  { %v4489_v26 = vpop.permute.xlu0 %167 }
  0x8c   :  { %6107 = vst [vmem:[#allocation13_spill] sm:$0xff] %v4489_v26 }
  0x90   :  { %4088 = vset.pattern.permute.xlu2 %v4409_v13  ;;  %4087 = vset.pattern.permute.xlu1 %v4386_v7 }
  0x91   :  { %1209 = vperm.xlu0 %4204, %v4463_v23  }
  0x92   :  { %v4519_v35 = vpop.permute.xlu2 %203 }
  0x93   :  { %v4499_v29 = vpop.permute.xlu0 %361 }
  0x98   :  { %294 = vperm.xlu2 %4088, %v4469_v24   ;;  %288 = vperm.xlu1 %4087, %v4469_v24  }
  0x99   :  { %4213 = vset.pattern.permute.xlu0 %v4436_v18 }
  0x9a   :  { %v4526_v37 = vpop.permute.xlu1 %179 }
  0x9b   :  { %v4512_v33 = vpop.permute.xlu0 %846 }
  0x9c   :  { %6108 = vst [vmem:[#allocation14_spill] sm:$0xff] %v4512_v33 }
  0xa0   :  { %4090 = vset.pattern.permute.xlu2 %v4424_v16  ;;  %4089 = vset.pattern.permute.xlu1 %v4492_v27 }
  0xa1   :  { %330 = vperm.xlu0 %4213, %v4469_v24  }
  0xa2   :  { %v222_v38 = vpop.permute.xlu2 %221 }
  0xa3   :  { %vm1718_vm3 = vcmp.eq.s32.totalorder %v222_v38, %v4548_v46 }
  0xa4   :  { %v3821_v63 = vsel %vm1718_vm3, 1.0, %v6080_v49 }
  0xa8   :  { %312 = vperm.xlu2 %4090, %v4469_v24   ;;  %306 = vperm.xlu1 %4089, %v4469_v24  }
  0xa9   :  { %815 = vperm.xlu0 %4213, %v4502_v30  }
  0xaa   :  { %v4533_v40 = vpop.permute.xlu1 %197 }
  0xab   :  { %v4521_v36 = vpop.permute.xlu0 %573 }
  0xac   :  { %6109 = vst [vmem:[#allocation15_spill] sm:$0xff] %v4521_v36 }
  0xb0   :  { %4092 = vset.pattern.permute.xlu2 %v4439_v19  ;;  %4091 = vset.pattern.permute.xlu1 %v4421_v15 }
  0xb1   :  { %1300 = vperm.xlu0 %4213, %v4510_v32  }
  0xb2   :  { %v234_v41 = vpop.permute.xlu2 %233 }
  0xb3   :  { %v4531_v39 = vpop.permute.xlu0 %1058  ;;  %vm1720_vm2 = vcmp.eq.s32.totalorder %v234_v41, %v4548_v46  ;;  %v4588_v41 = vperm.slane %v4397_v10, 6 }
  0xb4   :  { %6110 = vst [vmem:[#allocation16_spill] sm:$0xff] %v4531_v39  ;;  %v3823_v62 = vsel %vm1720_vm2, 1.0, %v6080_v49 }
  0xb5   :  { %6117 = vst [vmem:[#allocation23_spill] sm:$0xff] %v4588_v41 }
  0xb8   :  { %324 = vperm.xlu2 %4092, %v4469_v24   ;;  %318 = vperm.xlu1 %4091, %v4469_v24  }
  0xb9   :  { %4226 = vset.pattern.permute.xlu0 %v4409_v13 }
  0xba   :  { %v4538_v42 = vpop.permute.xlu1 %215 }
  0xc0   :  { %4094 = vset.pattern.permute.xlu2 %v4451_v21  ;;  %4093 = vset.pattern.permute.xlu1 %v4472_v25 }
  0xc1   :  { %391 = vperm.xlu0 %4226, %v4392_v9  }
  0xc2   :  { %v252_v45 = vpop.permute.xlu2 %251 }
  0xc3   :  { %v4540_v43 = vpop.permute.xlu0 %603  ;;  %vm1723_vm0 = vcmp.eq.s32.totalorder %v252_v45, %v4548_v46  ;;  %v2488_v45 = vpack.c.bf16 %v3823_v62, %v3823_v62 }
  0xc4   :  { %6111 = vst [vmem:[#allocation17_spill] sm:$0xff] %v4540_v43  ;;  %v3826_v50 = vsel %vm1723_vm0, 1.0, %v6080_v49 }
  0xc5   :  { %v2491_v51 = vpack.c.bf16 %v3826_v50, %v3826_v50 }
  0xc7   :  { %v2794_v55 = vunpack.c.l.b16 %v2491_v51 }
  0xc8   :  { %342 = vperm.xlu2 %4094, %v4469_v24   ;;  %336 = vperm.xlu1 %4093, %v4469_v24  }
  0xc9   :  { %876 = vperm.xlu0 %4226, %v4400_v11  }
  0xca   :  { %v228_v47 = vpop.permute.xlu1 %227 }
  0xcb   :  { %v4552_v48 = vpop.permute.xlu0 %1088  ;;  %vm1719_vm4 = vcmp.eq.s32.totalorder %v228_v47, %v4548_v46  ;;  %v2486_v47 = vpack.c.bf16 %v3821_v63, %v3821_v63 }
  0xcc   :  { %6113 = vst [vmem:[#allocation19_spill] sm:$0xff] %v4552_v48  ;;  %v3822_v0 = vsel %vm1719_vm4, 1.0, %v6080_v49  ;;  %v6125_v48 = vmov 0.0  }
  0xcd   :  { %v2487_v50 = vpack.c.bf16 %v3822_v0, %v3822_v0 }
  0xd0   :  { %4096 = vset.pattern.permute.xlu2 %v4363_v1  ;;  %4095 = vset.pattern.permute.xlu1 %v4448_v20 }
  0xd1   :  { %1361 = vperm.xlu0 %4226, %v4543_v44  }
  0xd2   :  { %v4602_v62 = vpop.permute.xlu2 %264 }
  0xd3   :  { %6118 = vst [vmem:[#allocation24_spill] sm:$0xff] %v4602_v62 }
  0xd8   :  { %355 = vperm.xlu2 %4096, %v4392_v9   ;;  %348 = vperm.xlu1 %4095, %v4469_v24  }
  0xd9   :  { %4235 = vset.pattern.permute.xlu0 %v4363_v1 }
  0xda   :  { %v246_v52 = vpop.permute.xlu1 %245 }
  0xdb   :  { %vm1722_vm1 = vcmp.eq.s32.totalorder %v246_v52, %v4548_v46  ;;  %v4560_v56 = vpop.permute.xlu0 %664 }
  0xdc   :  { %v3825_v53 = vsel %vm1722_vm1, 1.0, %v6080_v49  ;;  %6114 = vst [vmem:[#allocation20_spill] sm:$0xff] %v4560_v56 }
  0xdd   :  { %v2490_v54 = vpack.c.bf16 %v3825_v53, %v3825_v53  ;;  %v2791_v53 = vunpack.c.l.b16 %v2488_v45 }
  0xdf   :  { %v2793_v57 = vunpack.c.l.b16 %v2490_v54 }
  0xe0   :  { %4098 = vset.pattern.permute.xlu2 %v4389_v8  ;;  %4097 = vset.pattern.permute.xlu1 %v4369_v3 }
  0xe1   :  { %161 = vperm.xlu0 %4235, %v4380_v6   ;;  %v2818_v58 = vpack.c.b16 %v2794_v55, %v2793_v57  ;;  %v2789_v55 = vunpack.c.l.b16 %v2486_v47  ;;  %v2790_v57 = vunpack.c.l.b16 %v2487_v50 }
  0xe3   :  { %2843 = vmatpush.bf16.msra.mxu0 %v2818_v58  ;;  %v4571_v60 = vpop.permute.xlu0 %1149  ;;  %v2816_v58 = vpack.c.b16 %v2790_v57, %v2789_v55 }
  0xe4   :  { %6115 = vst [vmem:[#allocation21_spill] sm:$0xff] %v4571_v60 }
  0xe8   :  { %373 = vperm.xlu2 %4098, %v4392_v9   ;;  %367 = vperm.xlu1 %4097, %v4392_v9  }
  0xe9   :  { %452 = vperm.xlu0 %4235, %v4566_v59  }
  0xea   :  { %v4609_v0 = vpop.permute.xlu1 %258 }
  0xeb   :  { %6120 = vst [vmem:[#allocation26_spill] sm:$0xff] %v4609_v0 }
  0xf0   :  { %4100 = vset.pattern.permute.xlu2 %v4386_v7  ;;  %4099 = vset.pattern.permute.xlu1 %v4366_v2 }
  0xf1   :  { %937 = vperm.xlu0 %4235, %v4574_v61  }
  0xf3   :  { %v240_v5 = vpop.permute.xlu0 %239 }
  0xf4   :  { %vm1721_vm5 = vcmp.eq.s32.totalorder %v240_v5, %v4548_v46  ;;  %v4611_v5 = vpop.permute.xlu2 %282 }
  0xf5   :  { %v3824_v38 = vsel %vm1721_vm5, 1.0, %v6080_v49 }
  0xf6   :  { %v2489_v51 = vpack.c.bf16 %v3824_v38, %v3824_v38 }
  0xf8   :  { %v2792_v52 = vunpack.c.l.b16 %v2489_v51  ;;  %385 = vperm.xlu2 %4100, %v4392_v9   ;;  %379 = vperm.xlu1 %4099, %v4392_v9  }
  0xf9   :  { %1422 = vperm.xlu0 %4235, %v4588_v41  }
  0xfa   :  { %v2817_v54 = vpack.c.b16 %v2792_v52, %v2791_v53  ;;  %v4618_v38 = vpop.permute.xlu1 %276 }
  0xfb   :  { %v4604_v63 = vpop.permute.xlu0 %724  ;;  %6122 = vst [vmem:[#allocation28_spill] sm:$0xff] %v4618_v38 }
  0xfc   :  { %2844 = vmatpush.bf16.msra.mxu0 %v2817_v54  ;;  %6119 = vst [vmem:[#allocation25_spill] sm:$0xff] %v4604_v63  ;;  %v4620_v47 = vpop.permute.xlu2 %294 }
 0x100   :  { %2845 = vmatpush.bf16.msra.mxu0 %v2816_v58  ;;  %4102 = vset.pattern.permute.xlu2 %v4492_v27 }
 0x101   :  { %4101 = vset.pattern.permute.xlu1 %v4406_v12  ;;  %4244 = vset.pattern.permute.xlu0 %v4386_v7 }
 0x103   :  { %v4613_v45 = vpop.permute.xlu0 %1209 }
 0x104   :  { %6121 = vst [vmem:[#allocation27_spill] sm:$0xff] %v4613_v45  ;;  %v313_v52 = vpop.permute.xlu2 %312 }
 0x105   :  { %vm1733_vm12 = vcmp.eq.s32.totalorder %v313_v52, %v4548_v46 }
 0x108   :  { %403 = vperm.xlu2 %4102, %v4392_v9  }
 0x109   :  { %397 = vperm.xlu1 %4101, %v4392_v9   ;;  %482 = vperm.xlu0 %4244, %v4566_v59  }
 0x10a   :  { %v4625_v51 = vpop.permute.xlu1 %288 }
 0x110   :  { %4104 = vset.pattern.permute.xlu2 %v4421_v15 }
 0x111   :  { %4103 = vset.pattern.permute.xlu1 %v4424_v16  ;;  %967 = vperm.xlu0 %4244, %v4574_v61  }
 0x112   :  { %v325_v55 = vpop.permute.xlu2 %324 }
 0x113   :  { %v331_v50 = vpop.permute.xlu0 %330  ;;  %vm1735_vm9 = vcmp.eq.s32.totalorder %v325_v55, %v4548_v46 }
 0x114   :  { %vm1736_vm8 = vcmp.eq.s32.totalorder %v331_v50, %v4548_v46  ;;  %v3838_v50 = vsel %vm1735_vm9, 1.0, %v6125_v48 }
 0x118   :  { %415 = vperm.xlu2 %4104, %v4392_v9  }
 0x119   :  { %409 = vperm.xlu1 %4103, %v4392_v9   ;;  %1452 = vperm.xlu0 %4244, %v4588_v41  }
 0x11a   :  { %v307_v54 = vpop.permute.xlu1 %306 }
 0x11b   :  { %v4630_v53 = vpop.permute.xlu0 %815  ;;  %vm1732_vm13 = vcmp.eq.s32.totalorder %v307_v54, %v4548_v46 }
 0x11c   :  { %6123 = vst [vmem:[#allocation29_spill] sm:$0xff] %v4630_v53 }
 0x120   :  { %4106 = vset.pattern.permute.xlu2 %v4472_v25 }
 0x121   :  { %4105 = vset.pattern.permute.xlu1 %v4436_v18  ;;  %4249 = vset.pattern.permute.xlu0 %v4421_v15 }
 0x122   :  { %v343_v49 = vpop.permute.xlu2 %342 }
 0x123   :  { %v4635_v58 = vpop.permute.xlu0 %1300  ;;  %vm1738_vm6 = vcmp.eq.s32.totalorder %v343_v49, %v4548_v46  ;;  %v3839_v49 = vsel %vm1736_vm8, 1.0, %v6125_v48 }
 0x124   :  { %6124 = vst [vmem:[#allocation30_spill] sm:$0xff] %v4635_v58  ;;  %v3841_v60 = vsel %vm1738_vm6, 1.0, %v6125_v48  ;;  %v2504_v63 = vpack.c.bf16 %v3839_v49, %v3839_v49 }
 0x125   :  { %v2506_v58 = vpack.c.bf16 %v3841_v60, %v3841_v60 }
 0x126   :  { %v2807_v52 = vunpack.c.l.b16 %v2504_v63 }
 0x127   :  { %v2809_v36 = vunpack.c.l.b16 %v2506_v58  ;;  %v3835_v58 = vsel %vm1732_vm13, 1.0, %v6125_v48 }
 0x128   :  { %433 = vperm.xlu2 %4106, %v4392_v9   ;;  %v2500_v62 = vpack.c.bf16 %v3835_v58, %v3835_v58 }
 0x129   :  { %427 = vperm.xlu1 %4105, %v4392_v9   ;;  %512 = vperm.xlu0 %4249, %v4566_v59  }
 0x12a   :  { %v319_v57 = vpop.permute.xlu1 %318 }
 0x12b   :  { %vm1734_vm10 = vcmp.eq.s32.totalorder %v319_v57, %v4548_v46  ;;  %v3836_v57 = vsel %vm1733_vm12, 1.0, %v6125_v48 }
 0x12c   :  { %v3837_v43 = vsel %vm1734_vm10, 1.0, %v6125_v48  ;;  %v2501_v54 = vpack.c.bf16 %v3836_v57, %v3836_v57 }
 0x12e   :  { %v2804_v63 = vunpack.c.l.b16 %v2501_v54 }
 0x130   :  { %4108 = vset.pattern.permute.xlu2 %v4448_v20 }
 0x131   :  { %4107 = vset.pattern.permute.xlu1 %v4451_v21  ;;  %997 = vperm.xlu0 %4249, %v4574_v61  }
 0x133   :  { %v4641_v39 = vpop.permute.xlu0 %391 }
 0x138   :  { %445 = vperm.xlu2 %4108, %v4392_v9  }
 0x139   :  { %439 = vperm.xlu1 %4107, %v4392_v9   ;;  %1482 = vperm.xlu0 %4249, %v4588_v41  }
 0x13a   :  { %v337_v45 = vpop.permute.xlu1 %336 }
 0x13b   :  { %vm1737_vm7 = vcmp.eq.s32.totalorder %v337_v45, %v4548_v46  ;;  %v4654_v45 = vpop.permute.xlu0 %876 }
 0x13c   :  { %v3840_v33 = vsel %vm1737_vm7, 1.0, %v6125_v48  ;;  %6126 = vst [vmem:[#allocation31_spill] sm:$0xff] %v4654_v45  ;;  %v2502_v45 = vpack.c.bf16 %v3837_v43, %v3837_v43  ;;  %vm1746_vm7 = vcmp.eq.s32.totalorder %v4641_v39, %v4548_v46 }
 0x13d   :  { %v2505_v56 = vpack.c.bf16 %v3840_v33, %v3840_v33 }
 0x13e   :  { %v2805_v43 = vunpack.c.l.b16 %v2502_v45 }
 0x13f   :  { %v2808_v49 = vunpack.c.l.b16 %v2505_v56  ;;  %v2803_v56 = vunpack.c.l.b16 %v2500_v62  ;;  %v4684_v62 = vpop.permute.xlu2 %355 }
 0x140   :  { %4110 = vset.pattern.permute.xlu2 %v4369_v3 }
 0x141   :  { %4109 = vset.pattern.permute.xlu1 %v4372_v4  ;;  %4254 = vset.pattern.permute.xlu0 %v4448_v20  ;;  %v2825_v38 = vpack.c.b16 %v2808_v49, %v2807_v52  ;;  %v2823_v57 = vpack.c.b16 %v2804_v63, %v2803_v56 }
 0x147   :  { %v4691_v45 = vpop.permute.xlu2 %373 }
 0x148   :  { %464 = vperm.xlu2 %4110, %v4566_v59   ;;  %vm1743_vm12 = vcmp.eq.s32.totalorder %v4691_v45, %v4548_v46 }
 0x149   :  { %458 = vperm.xlu1 %4109, %v4566_v59   ;;  %542 = vperm.xlu0 %4254, %v4566_v59  }
 0x14a   :  { %v349_v53 = vpop.permute.xlu1 %348 }
 0x14b   :  { %vm1739_vm11 = vcmp.eq.s32.totalorder %v349_v53, %v4548_v46  ;;  %v2503_v53 = vpack.c.bf16 %v3838_v50, %v3838_v50  ;;  %v4669_v50 = vperm.slane %v4397_v10, 7 }
 0x14c   :  { %v3842_v55 = vsel %vm1739_vm11, 1.0, %v6125_v48 }
 0x14d   :  { %v2507_v60 = vpack.c.bf16 %v3842_v55, %v3842_v55  ;;  %v4666_v55 = vpop.permute.xlu0 %1361  ;;  %6128 = vst [vmem:[#allocation33_spill] sm:$0xff] %v4669_v50 }
 0x14e   :  { %6127 = vst [vmem:[#allocation32_spill] sm:$0xff] %v4666_v55 }
 0x14f   :  { %v2810_v0 = vunpack.c.l.b16 %v2507_v60  ;;  %v2806_v60 = vunpack.c.l.b16 %v2503_v53 }
 0x150   :  { %4112 = vset.pattern.permute.xlu2 %v4366_v2 }
 0x151   :  { %4111 = vset.pattern.permute.xlu1 %v4389_v8  ;;  %1027 = vperm.xlu0 %4254, %v4574_v61   ;;  %v2826_v33 = vpack.c.b16 %v2810_v0, %v2809_v36  ;;  %v2824_v36 = vpack.c.b16 %v2806_v60, %v2805_v43 }
 0x152   :  { %v4698_v52 = vpop.permute.xlu2 %385 }
 0x153   :  { %2856 = vmatpush.bf16.msra.mxu1 %v2826_v33  ;;  %vm1745_vm10 = vcmp.eq.s32.totalorder %v4698_v52, %v4548_v46 }
 0x154   :  { %v3848_v52 = vsel %vm1745_vm10, 1.0, %v6125_v48 }
 0x155   :  { %v4674_v0 = vpop.permute.xlu0 %161 }
 0x157   :  { %2857 = vmatpush.bf16.msra.mxu1 %v2825_v38 }
 0x158   :  { %476 = vperm.xlu2 %4112, %v4566_v59  }
 0x159   :  { %470 = vperm.xlu1 %4111, %v4566_v59   ;;  %1706 = vperm.xlu0 %4254, %v4669_v50  }
 0x15a   :  { %v4703_v33 = vpop.permute.xlu1 %367 }
 0x15b   :  { %2858 = vmatpush.bf16.msra.mxu1 %v2824_v36  ;;  %vm1742_vm13 = vcmp.eq.s32.totalorder %v4703_v33, %v4548_v46 }
 0x15c   :  { %v3845_v33 = vsel %vm1742_vm13, 1.0, %v6125_v48  ;;  %vm1715_vm13 = vcmp.eq.s32.totalorder %v4519_v35, %v4548_v46 }
 0x15d   :  { %v4679_v10 = vpop.permute.xlu0 %452 }
 0x15f   :  { %2859 = vmatpush.bf16.msra.mxu1 %v2823_v57 }
 0x160   :  { %4114 = vset.pattern.permute.xlu2 %v4406_v12 }
 0x161   :  { %4113 = vset.pattern.permute.xlu1 %v4409_v13  ;;  %4258 = vset.pattern.permute.xlu0 %v4451_v21 }
 0x162   :  { %v4707_v58 = vpop.permute.xlu2 %403 }
 0x163   :  { %vm1748_vm5 = vcmp.eq.s32.totalorder %v4707_v58, %v4548_v46 }
 0x165   :  { %v4686_v38 = vpop.permute.xlu0 %937 }
 0x166   :  { %6129 = vst [vmem:[#allocation34_spill] sm:$0xff] %v4686_v38 }
 0x168   :  { %494 = vperm.xlu2 %4114, %v4566_v59  }
 0x169   :  { %488 = vperm.xlu1 %4113, %v4566_v59   ;;  %633 = vperm.xlu0 %4258, %v4415_v14  }
 0x16a   :  { %v4712_v54 = vpop.permute.xlu1 %379 }
 0x16b   :  { %vm1744_vm11 = vcmp.eq.s32.totalorder %v4712_v54, %v4548_v46 }
 0x16d   :  { %v4696_v53 = vpop.permute.xlu0 %1422 }
 0x16e   :  { %6130 = vst [vmem:[#allocation35_spill] sm:$0xff] %v4696_v53 }
 0x170   :  { %4116 = vset.pattern.permute.xlu2 %v4424_v16 }
 0x171   :  { %4115 = vset.pattern.permute.xlu1 %v4492_v27  ;;  %1118 = vperm.xlu0 %4258, %v4427_v17  }
 0x172   :  { %v4716_v43 = vpop.permute.xlu2 %415 }
 0x173   :  { %vm1750_vm4 = vcmp.eq.s32.totalorder %v4716_v43, %v4548_v46  ;;  %v3851_v43 = vsel %vm1748_vm5, 1.0, %v6125_v48 }
 0x174   :  { %v2516_v39 = vpack.c.bf16 %v3851_v43, %v3851_v43 }
 0x178   :  { %506 = vperm.xlu2 %4116, %v4566_v59  }
 0x179   :  { %500 = vperm.xlu1 %4115, %v4566_v59   ;;  %1506 = vperm.xlu0 %4258, %v4588_v41  }
 0x17b   :  { %v4705_v49 = vpop.permute.xlu0 %482  ;;  %v4721_v36 = vpop.permute.xlu1 %397 }
 0x17c   :  { %vm1747_vm8 = vcmp.eq.s32.totalorder %v4721_v36, %v4548_v46 }
 0x180   :  { %4118 = vset.pattern.permute.xlu2 %v4436_v18 }
 0x181   :  { %4117 = vset.pattern.permute.xlu1 %v4439_v19  ;;  %4261 = vset.pattern.permute.xlu0 %v4439_v19 }
 0x183   :  { %v4714_v60 = vpop.permute.xlu0 %967 }
 0x184   :  { %6131 = vst [vmem:[#allocation36_spill] sm:$0xff] %v4714_v60 }
 0x188   :  { %524 = vperm.xlu2 %4118, %v4566_v59  }
 0x189   :  { %518 = vperm.xlu1 %4117, %v4566_v59   ;;  %421 = vperm.xlu0 %4261, %v4392_v9   ;;  %v434_v9 = vpop.permute.xlu2 %433 }
 0x18a   :  { %vm1753_vm15 = vcmp.eq.s32.totalorder %v434_v9, %v4548_v46 }
 0x18b   :  { %v4723_v56 = vpop.permute.xlu0 %1452  ;;  %v4728_v63 = vpop.permute.xlu1 %409  ;;  %v3856_v41 = vsel %vm1753_vm15, 1.0, %v6125_v48 }
 0x18c   :  { %6132 = vst [vmem:[#allocation37_spill] sm:$0xff] %v4723_v56  ;;  %vm1749_vm6 = vcmp.eq.s32.totalorder %v4728_v63, %v4548_v46 }
 0x190   :  { %4120 = vset.pattern.permute.xlu2 %v4451_v21 }
 0x191   :  { %4119 = vset.pattern.permute.xlu1 %v4472_v25  ;;  %906 = vperm.xlu0 %4261, %v4400_v11  }
 0x192   :  { %v446_v57 = vpop.permute.xlu2 %445 }
 0x193   :  { %vm1755_vm14 = vcmp.eq.s32.totalorder %v446_v57, %v4548_v46  ;;  %v2521_v57 = vpack.c.bf16 %v3856_v41, %v3856_v41 }
 0x194   :  { %v3858_v56 = vsel %vm1755_vm14, 1.0, %v6125_v48  ;;  %vm1741_vm14 = vcmp.eq.s32.totalorder %v4499_v29, %v4548_v46 }
 0x195   :  { %v2921_v26 = vunpack.c.l.b16 %v2521_v57 }
 0x198   :  { %536 = vperm.xlu2 %4120, %v4566_v59  }
 0x199   :  { %530 = vperm.xlu1 %4119, %v4566_v59   ;;  %1391 = vperm.xlu0 %4261, %v4543_v44   ;;  %v2523_v59 = vpack.c.bf16 %v3858_v56, %v3858_v56 }
 0x19b   :  { %v4733_v53 = vpop.permute.xlu0 %512  ;;  %v428_v55 = vpop.permute.xlu1 %427  ;;  %v2923_v61 = vunpack.c.l.b16 %v2523_v59 }
 0x19c   :  { %vm1752_vm0 = vcmp.eq.s32.totalorder %v428_v55, %v4548_v46 }
 0x19d   :  { %v3855_v44 = vsel %vm1752_vm0, 1.0, %v6125_v48  ;;  %vm1740_vm0 = vcmp.eq.s32.totalorder %v4684_v62, %v4548_v46  ;;  %v3844_v62 = vsel %vm1741_vm14, 1.0, %v6125_v48 }
 0x19e   :  { %v2520_v55 = vpack.c.bf16 %v3855_v44, %v3855_v44 }
 0x1a0   :  { %4122 = vset.pattern.permute.xlu2 %v4372_v4  ;;  %v2920_v21 = vunpack.c.l.b16 %v2520_v55 }
 0x1a1   :  { %4121 = vset.pattern.permute.xlu1 %v4363_v1  ;;  %1682 = vperm.xlu0 %4261, %v4669_v50  }
 0x1a3   :  { %v4744_v60 = vpop.permute.xlu0 %997 }
 0x1a4   :  { %6133 = vst [vmem:[#allocation38_spill] sm:$0xff] %v4744_v60 }
 0x1a8   :  { %555 = vperm.xlu2 %4122, %v4415_v14  }
 0x1a9   :  { %549 = vperm.xlu1 %4121, %v4415_v14   ;;  %4265 = vset.pattern.permute.xlu0 %v4492_v27 }
 0x1ab   :  { %v440_v38 = vpop.permute.xlu1 %439  ;;  %v4751_v60 = vpop.permute.xlu0 %1482 }
 0x1ac   :  { %vm1754_vm1 = vcmp.eq.s32.totalorder %v440_v38, %v4548_v46  ;;  %6134 = vst [vmem:[#allocation39_spill] sm:$0xff] %v4751_v60  ;;  %v2946_v38 = vpack.c.b16 %v2921_v26, %v2920_v21 }
 0x1ad   :  { %v3857_v9 = vsel %vm1754_vm1, 1.0, %v6125_v48  ;;  %vm1766_vm1 = vcmp.eq.s32.totalorder %v4733_v53, %v4548_v46 }
 0x1ae   :  { %v2522_v17 = vpack.c.bf16 %v3857_v9, %v3857_v9  ;;  %v3869_v53 = vsel %vm1766_vm1, 1.0, %v6125_v48  ;;  %vm1712_vm1 = vcmp.eq.s32.totalorder %v4497_v28, %v4548_v46 }
 0x1b0   :  { %4124 = vset.pattern.permute.xlu2 %v4389_v8  ;;  %v2922_v11 = vunpack.c.l.b16 %v2522_v17 }
 0x1b1   :  { %4123 = vset.pattern.permute.xlu1 %v4369_v3  ;;  %209 = vperm.xlu0 %4265, %v4380_v6   ;;  %v4759_v6 = vpop.permute.xlu2 %464 }
 0x1b2   :  { %v2947_v56 = vpack.c.b16 %v2923_v61, %v2922_v11  ;;  %vm1758_vm10 = vcmp.eq.s32.totalorder %v4759_v6, %v4548_v46 }
 0x1b3   :  { %v3861_v6 = vsel %vm1758_vm10, 1.0, %v6125_v48  ;;  %vm1708_vm10 = vcmp.eq.s32.totalorder %v4674_v0, %v4548_v46 }
 0x1b4   :  { %2972 = vmatpush.bf16.msra.mxu2 %v2947_v56 }
 0x1b8   :  { %2973 = vmatpush.bf16.msra.mxu2 %v2946_v38  ;;  %567 = vperm.xlu2 %4124, %v4415_v14  }
 0x1b9   :  { %561 = vperm.xlu1 %4123, %v4415_v14   ;;  %694 = vperm.xlu0 %4265, %v4457_v22   ;;  %v4766_v17 = vpop.permute.xlu2 %476 }
 0x1bb   :  { %v543_v44 = vpop.permute.xlu0 %542  ;;  %v4785_v59 = vpop.permute.xlu1 %458 }
 0x1bc   :  { %vm1771_vm2 = vcmp.eq.s32.totalorder %v543_v44, %v4548_v46  ;;  %vm1757_vm14 = vcmp.eq.s32.totalorder %v4785_v59, %v4548_v46 }
 0x1bd   :  { %v3874_v56 = vsel %vm1771_vm2, 1.0, %v6125_v48 }
 0x1be   :  { %v2539_v38 = vpack.c.bf16 %v3874_v56, %v3874_v56  ;;  %v3853_v56 = vsel %vm1750_vm4, 1.0, %v6125_v48 }
 0x1bf   :  { %v2518_v63 = vpack.c.bf16 %v3853_v56, %v3853_v56 }
 0x1c0   :  { %4126 = vset.pattern.permute.xlu2 %v4409_v13  ;;  %v2939_v44 = vunpack.c.l.b16 %v2539_v38  ;;  %v3849_v38 = vsel %vm1746_vm7, 1.0, %v6125_v48 }
 0x1c1   :  { %4125 = vset.pattern.permute.xlu1 %v4386_v7  ;;  %1179 = vperm.xlu0 %4265, %v4463_v23   ;;  %v2918_v36 = vunpack.c.l.b16 %v2518_v63  ;;  %v2514_v56 = vpack.c.bf16 %v3849_v38, %v3849_v38 }
 0x1c2   :  { %v4774_v26 = vpop.permute.xlu2 %494 }
 0x1c3   :  { %v4764_v11 = vpop.permute.xlu0 %1027 }
 0x1c4   :  { %6135 = vst [vmem:[#allocation40_spill] sm:$0xff] %v4764_v11 }
 0x1c8   :  { %585 = vperm.xlu2 %4126, %v4415_v14  }
 0x1c9   :  { %579 = vperm.xlu1 %4125, %v4415_v14   ;;  %1664 = vperm.xlu0 %4265, %v4669_v50  }
 0x1cb   :  { %v4771_v21 = vpop.permute.xlu0 %1706  ;;  %v4794_v55 = vpop.permute.xlu1 %470 }
 0x1cc   :  { %6136 = vst [vmem:[#allocation41_spill] sm:$0xff] %v4771_v21 }
 0x1d0   :  { %4128 = vset.pattern.permute.xlu2 %v4492_v27 }
 0x1d1   :  { %4127 = vset.pattern.permute.xlu1 %v4406_v12  ;;  %4270 = vset.pattern.permute.xlu0 %v4406_v12 }
 0x1d2   :  { %v4781_v41 = vpop.permute.xlu2 %506 }
 0x1d8   :  { %597 = vperm.xlu2 %4128, %v4415_v14  }
 0x1d9   :  { %591 = vperm.xlu1 %4127, %v4415_v14   ;;  %300 = vperm.xlu0 %4270, %v4469_v24  }
 0x1db   :  { %v4778_v61 = vpop.permute.xlu0 %633 }
 0x1e0   :  { %4130 = vset.pattern.permute.xlu2 %v4439_v19 }
 0x1e1   :  { %4129 = vset.pattern.permute.xlu1 %v4421_v15  ;;  %785 = vperm.xlu0 %4270, %v4502_v30  }
 0x1e2   :  { %v4790_v57 = vpop.permute.xlu2 %524 }
 0x1e3   :  { %v4787_v9 = vpop.permute.xlu0 %1118  ;;  %vm1768_vm15 = vcmp.eq.s32.totalorder %v4790_v57, %v4548_v46 }
 0x1e4   :  { %6137 = vst [vmem:[#allocation42_spill] sm:$0xff] %v4787_v9  ;;  %v4803_v9 = vpop.permute.xlu1 %488  ;;  %v3871_v57 = vsel %vm1768_vm15, 1.0, %v6125_v48  ;;  %vm1714_vm15 = vcmp.eq.s32.totalorder %v4533_v40, %v4548_v46  ;;  %v3818_v40 = vsel %vm1715_vm13, 1.0, %v6125_v48 }
 0x1e5   :  { %vm1762_vm7 = vcmp.eq.s32.totalorder %v4803_v9, %v4548_v46 }
 0x1e8   :  { %615 = vperm.xlu2 %4130, %v4415_v14  }
 0x1e9   :  { %609 = vperm.xlu1 %4129, %v4415_v14   ;;  %1270 = vperm.xlu0 %4270, %v4510_v32  }
 0x1eb   :  { %v4801_v60 = vpop.permute.xlu0 %1506 }
 0x1ec   :  { %6138 = vst [vmem:[#allocation43_spill] sm:$0xff] %v4801_v60  ;;  %v4821_v58 = vpop.permute.xlu1 %500 }
 0x1ed   :  { %vm1764_vm4 = vcmp.eq.s32.totalorder %v4821_v58, %v4548_v46 }
 0x1f0   :  { %4132 = vset.pattern.permute.xlu2 %v4472_v25 }
 0x1f1   :  { %4131 = vset.pattern.permute.xlu1 %v4436_v18  ;;  %1658 = vperm.xlu0 %4270, %v4669_v50  }
 0x1f2   :  { %v537_v21 = vpop.permute.xlu2 %536 }
 0x1f3   :  { %vm1770_vm3 = vcmp.eq.s32.totalorder %v537_v21, %v4548_v46 }
 0x1f4   :  { %v3873_v23 = vsel %vm1770_vm3, 1.0, %v6125_v48  ;;  %vm1765_vm3 = vcmp.eq.s32.totalorder %v4781_v41, %v4548_v46 }
 0x1f5   :  { %v2538_v11 = vpack.c.bf16 %v3873_v23, %v3873_v23  ;;  %v3868_v41 = vsel %vm1765_vm3, 1.0, %v6125_v48 }
 0x1f7   :  { %v2938_v25 = vunpack.c.l.b16 %v2538_v11  ;;  %v3852_v11 = vsel %vm1749_vm6, 1.0, %v6125_v48  ;;  %vm1763_vm6 = vcmp.eq.s32.totalorder %v4774_v26, %v4548_v46 }
 0x1f8   :  { %627 = vperm.xlu2 %4132, %v4415_v14  }
 0x1f9   :  { %621 = vperm.xlu1 %4131, %v4415_v14   ;;  %4274 = vset.pattern.permute.xlu0 %v4369_v3  ;;  %v2955_v23 = vpack.c.b16 %v2939_v44, %v2938_v25  ;;  %v2517_v44 = vpack.c.bf16 %v3852_v11, %v3852_v11  ;;  %v2916_v11 = vunpack.c.l.b16 %v2516_v39  ;;  %v2914_v39 = vunpack.c.l.b16 %v2514_v56 }
 0x1fb   :  { %v422_v21 = vpop.permute.xlu0 %421  ;;  %2985 = vmatpush.bf16.msra.mxu3 %v2955_v23  ;;  %v3850_v23 = vsel %vm1747_vm8, 1.0, %v6125_v48  ;;  %vm1761_vm8 = vcmp.eq.s32.totalorder %v4705_v49, %v4548_v46 }
 0x1fc   :  { %vm1751_vm9 = vcmp.eq.s32.totalorder %v422_v21, %v4548_v46  ;;  %v3847_v21 = vsel %vm1744_vm11, 1.0, %v6125_v48  ;;  %v2515_v54 = vpack.c.bf16 %v3850_v23, %v3850_v23  ;;  %v3843_v23 = vsel %vm1740_vm0, 1.0, %v6125_v48 }
 0x1fd   :  { %v3854_v25 = vsel %vm1751_vm9, 1.0, %v6125_v48  ;;  %v2512_v63 = vpack.c.bf16 %v3847_v21, %v3847_v21  ;;  %v2536_v21 = vpack.c.bf16 %v3871_v57, %v3871_v57  ;;  %v3867_v57 = vsel %vm1764_vm4, 1.0, %v6125_v48 }
 0x1fe   :  { %v2519_v60 = vpack.c.bf16 %v3854_v25, %v3854_v25  ;;  %v2917_v25 = vunpack.c.l.b16 %v2517_v44  ;;  %v2915_v44 = vunpack.c.l.b16 %v2515_v54  ;;  %vm1760_vm9 = vcmp.eq.s32.totalorder %v4766_v17, %v4548_v46 }
 0x1ff   :  { %v2912_v56 = vunpack.c.l.b16 %v2512_v63  ;;  %v3864_v49 = vsel %vm1761_vm8, 1.0, %v6125_v48  ;;  %vm1759_vm11 = vcmp.eq.s32.totalorder %v4794_v55, %v4548_v46  ;;  %vm1717_vm0 = vcmp.eq.s32.totalorder %v4538_v42, %v4548_v46 }
 0x200   :  { %v2919_v50 = vunpack.c.l.b16 %v2519_v60  ;;  %4134 = vset.pattern.permute.xlu2 %v4363_v1  ;;  %v519_v60 = vpop.permute.xlu1 %518  ;;  %v2944_v29 = vpack.c.b16 %v2917_v25, %v2916_v11  ;;  %v2943_v54 = vpack.c.b16 %v2915_v44, %v2914_v39  ;;  %v2508_v11 = vpack.c.bf16 %v3843_v23, %v3843_v23 }
 0x201   :  { %4133 = vset.pattern.permute.xlu1 %v4448_v20  ;;  %270 = vperm.xlu0 %4274, %v4469_v24   ;;  %v3846_v24 = vsel %vm1743_vm12, 1.0, %v6125_v48  ;;  %vm1767_vm2 = vcmp.eq.s32.totalorder %v519_v60, %v4548_v46  ;;  %v2534_v60 = vpack.c.bf16 %v3869_v53, %v3869_v53  ;;  %v2936_v44 = vunpack.c.l.b16 %v2536_v21 }
 0x202   :  { %v2945_v43 = vpack.c.b16 %v2919_v50, %v2918_v36  ;;  %v2513_v50 = vpack.c.bf16 %v3848_v52, %v3848_v52  ;;  %v2511_v45 = vpack.c.bf16 %v3846_v24, %v3846_v24  ;;  %v2510_v36 = vpack.c.bf16 %v3845_v33, %v3845_v33 }
 0x203   :  { %v4852_v38 = vpop.permute.xlu0 %906  ;;  %v3870_v25 = vsel %vm1767_vm2, 1.0, %v6125_v48  ;;  %v2908_v23 = vunpack.c.l.b16 %v2508_v11  ;;  %v2934_v26 = vunpack.c.l.b16 %v2534_v60  ;;  %v2532_v53 = vpack.c.bf16 %v3867_v57, %v3867_v57 }
 0x204   :  { %2974 = vmatpush.bf16.msra.mxu2 %v2945_v43  ;;  %v2913_v52 = vunpack.c.l.b16 %v2513_v50  ;;  %v2509_v43 = vpack.c.bf16 %v3844_v62, %v3844_v62  ;;  %v2910_v33 = vunpack.c.l.b16 %v2510_v36  ;;  %v2535_v39 = vpack.c.bf16 %v3870_v25, %v3870_v25 }
 0x205   :  { %v3866_v36 = vsel %vm1763_vm6, 1.0, %v6125_v48  ;;  %v2932_v60 = vunpack.c.l.b16 %v2532_v53  ;;  %vm1756_vm12 = vcmp.eq.s32.totalorder %v4679_v10, %v4548_v46  ;;  %v2529_v17 = vpack.c.bf16 %v3864_v49, %v3864_v49 }
 0x206   :  { %v2942_v63 = vpack.c.b16 %v2913_v52, %v2912_v56  ;;  %v2533_v52 = vpack.c.bf16 %v3868_v41, %v3868_v41  ;;  %v2531_v11 = vpack.c.bf16 %v3866_v36, %v3866_v36  ;;  %v3862_v55 = vsel %vm1759_vm11, 1.0, %v6125_v48 }
 0x207   :  { %v3859_v41 = vsel %vm1756_vm12, 1.0, %v6125_v48  ;;  %v2929_v57 = vunpack.c.l.b16 %v2529_v17  ;;  %vm1713_vm2 = vcmp.eq.s32.totalorder %v4507_v31, %v4548_v46  ;;  %v3817_v42 = vsel %vm1714_vm15, 1.0, %v6125_v48 }
 0x208   :  { %2975 = vmatpush.bf16.msra.mxu2 %v2944_v29  ;;  %646 = vperm.xlu2 %4134, %v4457_v22   ;;  %v3820_v10 = vsel %vm1717_vm0, 1.0, %v6125_v48  ;;  %v2524_v59 = vpack.c.bf16 %v3859_v41, %v3859_v41  ;;  %v2483_v49 = vpack.c.bf16 %v3818_v40, %v3818_v40  ;;  %vm1711_vm4 = vcmp.eq.s32.totalorder %v4526_v37, %v4548_v46 }
 0x209   :  { %639 = vperm.xlu1 %4133, %v4415_v14   ;;  %755 = vperm.xlu0 %4274, %v4502_v30   ;;  %v2911_v14 = vunpack.c.l.b16 %v2511_v45  ;;  %v2909_v45 = vunpack.c.l.b16 %v2509_v43  ;;  %v3865_v43 = vsel %vm1762_vm7, 1.0, %v6125_v48  ;;  %vm1730_vm6 = vcmp.eq.s32.totalorder %v4620_v47, %v4548_v46 }
 0x20a   :  { %vm1728_vm7 = vcmp.eq.s32.totalorder %v4611_v5, %v4548_v46  ;;  %vm1729_vm8 = vcmp.eq.s32.totalorder %v4625_v51, %v4548_v46  ;;  %vm1786_vm15 = vcmp.eq.s32.totalorder %v4778_v61, %v4548_v46 }
 0x20b   :  { %v531_v24 = vpop.permute.xlu1 %530  ;;  %v4876_v58 = vpop.permute.xlu0 %1391  ;;  %v2941_v56 = vpack.c.b16 %v2911_v14, %v2910_v33  ;;  %v2940_v25 = vpack.c.b16 %v2909_v45, %v2908_v23  ;;  %v2527_v23 = vpack.c.bf16 %v3862_v55, %v3862_v55  ;;  %v3814_v55 = vsel %vm1711_vm4, 1.0, %v6125_v48 }
 0x20c   :  { %vm1769_vm5 = vcmp.eq.s32.totalorder %v531_v24, %v4548_v46  ;;  %2976 = vmatpush.bf16.msra.mxu2 %v2943_v54  ;;  %v2935_v54 = vunpack.c.l.b16 %v2535_v39  ;;  %v2530_v24 = vpack.c.bf16 %v3865_v43, %v3865_v43  ;;  %v3816_v43 = vsel %vm1713_vm2, 1.0, %v6125_v48 }
 0x20d   :  { %v3872_v50 = vsel %vm1769_vm5, 1.0, %v6125_v48  ;;  %v2927_v53 = vunpack.c.l.b16 %v2527_v23  ;;  %vm1710_vm5 = vcmp.eq.s32.totalorder %v4517_v34, %v4548_v46  ;;  %v2481_v31 = vpack.c.bf16 %v3816_v43, %v3816_v43 }
 0x20e   :  { %v2537_v29 = vpack.c.bf16 %v3872_v50, %v3872_v50  ;;  %v2953_v14 = vpack.c.b16 %v2935_v54, %v2934_v26  ;;  %v2933_v50 = vunpack.c.l.b16 %v2533_v52  ;;  %v3860_v26 = vsel %vm1757_vm14, 1.0, %v6125_v48 }
 0x20f   :  { %v2525_v36 = vpack.c.bf16 %v3860_v26, %v3860_v26  ;;  %v2485_v54 = vpack.c.bf16 %v3820_v10, %v3820_v10  ;;  %v3813_v37 = vsel %vm1710_vm5, 1.0, %v6125_v48  ;;  %v2784_v23 = vunpack.c.l.b16 %v2481_v31 }
 0x210   :  { %2977 = vmatpush.bf16.msra.mxu2 %v2942_v63  ;;  %4136 = vset.pattern.permute.xlu2 %v4369_v3  ;;  %v2937_v62 = vunpack.c.l.b16 %v2537_v29  ;;  %v3863_v63 = vsel %vm1760_vm9, 1.0, %v6125_v48  ;;  %v2952_v39 = vpack.c.b16 %v2933_v50, %v2932_v60  ;;  %v2930_v29 = vunpack.c.l.b16 %v2530_v24 }
 0x211   :  { %4135 = vset.pattern.permute.xlu1 %v4372_v4  ;;  %1240 = vperm.xlu0 %4274, %v4510_v32   ;;  %v2528_v33 = vpack.c.bf16 %v3863_v63, %v3863_v63  ;;  %v2924_v24 = vunpack.c.l.b16 %v2524_v59  ;;  %v2925_v50 = vunpack.c.l.b16 %v2525_v36  ;;  %v2788_v17 = vunpack.c.l.b16 %v2485_v54 }
 0x212   :  { %v2954_v21 = vpack.c.b16 %v2937_v62, %v2936_v44  ;;  %v2931_v44 = vunpack.c.l.b16 %v2531_v11  ;;  %v2526_v62 = vpack.c.bf16 %v3861_v6, %v3861_v6  ;;  %v2482_v11 = vpack.c.bf16 %v3817_v42, %v3817_v42 }
 0x213   :  { %v4902_v9 = vpop.permute.xlu0 %1682  ;;  %v2928_v35 = vunpack.c.l.b16 %v2528_v33  ;;  %v2786_v6 = vunpack.c.l.b16 %v2483_v49  ;;  %v3833_v36 = vsel %vm1730_vm6, 1.0, %v6125_v48 }
 0x214   :  { %2978 = vmatpush.bf16.msra.mxu2 %v2941_v56  ;;  %2986 = vmatpush.bf16.msra.mxu3 %v2954_v21  ;;  %v2951_v45 = vpack.c.b16 %v2931_v44, %v2930_v29  ;;  %v2926_v52 = vunpack.c.l.b16 %v2526_v62  ;;  %v3815_v21 = vsel %vm1712_vm1, 1.0, %v6125_v48  ;;  %v2948_v29 = vpack.c.b16 %v2925_v50, %v2924_v24 }
 0x215   :  { %v2950_v56 = vpack.c.b16 %v2929_v57, %v2928_v35  ;;  %v2480_v33 = vpack.c.bf16 %v3815_v21, %v3815_v21  ;;  %v2785_v44 = vunpack.c.l.b16 %v2482_v11  ;;  %v2479_v57 = vpack.c.bf16 %v3814_v55, %v3814_v55 }
 0x216   :  { %v2949_v60 = vpack.c.b16 %v2927_v53, %v2926_v52  ;;  %v3831_v52 = vsel %vm1728_vm7, 1.0, %v6125_v48  ;;  %v3832_v53 = vsel %vm1729_vm8, 1.0, %v6125_v48  ;;  %v2498_v21 = vpack.c.bf16 %v3833_v36, %v3833_v36  ;;  %v6142_v36 = vld [vmem:[#allocation24_spill] sm:$0xff] }
 0x217   :  { %v2814_v34 = vpack.c.b16 %v2786_v6, %v2785_v44  ;;  %v2783_v62 = vunpack.c.l.b16 %v2480_v33  ;;  %v2782_v26 = vunpack.c.l.b16 %v2479_v57  ;;  %v2496_v51 = vpack.c.bf16 %v3831_v52, %v3831_v52  ;;  %v6143_v52 = vld [vmem:[#allocation26_spill] sm:$0xff] }
 0x218   :  { %2979 = vmatpush.bf16.msra.mxu2 %v2940_v25  ;;  %2987 = vmatpush.bf16.msra.mxu3 %v2953_v14  ;;  %v2497_v54 = vpack.c.bf16 %v3832_v53, %v3832_v53  ;;  %v2801_v11 = vunpack.c.l.b16 %v2498_v21  ;;  %v3811_v33 = vsel %vm1708_vm10, 1.0, %v6125_v48  ;;  %vm1725_vm13 = vcmp.eq.s32.totalorder %v6142_v36, %v4548_v46 }
 0x219   :  { %658 = vperm.xlu2 %4136, %v4457_v22   ;;  %652 = vperm.xlu1 %4135, %v4457_v22   ;;  %v2813_v35 = vpack.c.b16 %v2784_v23, %v2783_v62  ;;  %vm1724_vm14 = vcmp.eq.s32.totalorder %v6143_v52, %v4548_v46 }
 0x21c   :  { %2988 = vmatpush.bf16.msra.mxu3 %v2952_v39 }
 0x220   :  { %2989 = vmatpush.bf16.msra.mxu3 %v2951_v45  ;;  %v2478_v45 = vpack.c.bf16 %v3813_v37, %v3813_v37 }
 0x221   :  { %4138 = vset.pattern.permute.xlu2 %v4386_v7  ;;  %4137 = vset.pattern.permute.xlu1 %v4366_v2 }
 0x222   :  { %v2781_v40 = vunpack.c.l.b16 %v2478_v45 }
 0x223   :  { %v210_v28 = vpop.permute.xlu0 %209 }
 0x224   :  { %vm1716_vm3 = vcmp.eq.s32.totalorder %v210_v28, %v4548_v46  ;;  %2990 = vmatpush.bf16.msra.mxu3 %v2950_v56  ;;  %v2812_v42 = vpack.c.b16 %v2782_v26, %v2781_v40  ;;  %v4962_v56 = vpop.permute.xlu2 %555  ;;  %v4968_v28 = vpop.permute.xlu1 %549 }
 0x225   :  { %v3819_v25 = vsel %vm1716_vm3, 1.0, %v6125_v48 }
 0x226   :  { %v2484_v14 = vpack.c.bf16 %v3819_v25, %v3819_v25 }
 0x228   :  { %v2787_v63 = vunpack.c.l.b16 %v2484_v14  ;;  %2991 = vmatpush.bf16.msra.mxu3 %v2949_v60  ;;  %v2799_v14 = vunpack.c.l.b16 %v2496_v51  ;;  %v2800_v60 = vunpack.c.l.b16 %v2497_v54 }
 0x229   :  { %676 = vperm.xlu2 %4138, %v4457_v22   ;;  %670 = vperm.xlu1 %4137, %v4457_v22  }
 0x22a   :  { %v2815_v39 = vpack.c.b16 %v2788_v17, %v2787_v63  ;;  %v6139_v63 = vld [vmem:[#allocation13_spill] sm:$0xff]  ;;  %v2821_v31 = vpack.c.b16 %v2800_v60, %v2799_v14 }
 0x22b   :  { %v4943_v41 = vpop.permute.xlu0 %694  ;;  %vm1709_vm11 = vcmp.eq.s32.totalorder %v6139_v63, %v4548_v46 }
 0x22c   :  { %2846 = vmatpush.bf16.msra.mxu0 %v2815_v39  ;;  %2992 = vmatpush.bf16.msra.mxu3 %v2948_v29  ;;  %v4972_v25 = vpop.permute.xlu2 %567  ;;  %v4978_v50 = vpop.permute.xlu1 %561  ;;  %v3812_v39 = vsel %vm1709_vm11, 1.0, %v6125_v48  ;;  %v2476_v29 = vpack.c.bf16 %v3811_v33, %v3811_v33 }
 0x22d   :  { %v2477_v0 = vpack.c.bf16 %v3812_v39, %v3812_v39 }
 0x22e   :  { %v2779_v55 = vunpack.c.l.b16 %v2476_v29 }
 0x22f   :  { %v2780_v57 = vunpack.c.l.b16 %v2477_v0 }
 0x230   :  { %2847 = vmatpush.bf16.msra.mxu0 %v2814_v34  ;;  %v6140_v34 = vld [vmem:[#allocation10_spill] sm:$0xff] }
 0x231   :  { %4140 = vset.pattern.permute.xlu2 %v4406_v12  ;;  %4139 = vset.pattern.permute.xlu1 %v4409_v13  ;;  %v2811_v62 = vpack.c.b16 %v2780_v57, %v2779_v55  ;;  %v6144_v57 = vld [vmem:[#allocation17_spill] sm:$0xff] }
 0x232   :  { %vm1781_vm6 = vcmp.eq.s32.totalorder %v6144_v57, %v4548_v46 }
 0x233   :  { %v4947_v10 = vpop.permute.xlu0 %1179 }
 0x234   :  { %2848 = vmatpush.bf16.msra.mxu0 %v2813_v35  ;;  %v4986_v44 = vpop.permute.xlu2 %585 }
 0x235   :  { %vm1778_vm8 = vcmp.eq.s32.totalorder %v4986_v44, %v4548_v46 }
 0x238   :  { %2849 = vmatpush.bf16.msra.mxu0 %v2812_v42  ;;  %v6141_v42 = vld [vmem:[#allocation28_spill] sm:$0xff] }
 0x239   :  { %688 = vperm.xlu2 %4140, %v4457_v22   ;;  %682 = vperm.xlu1 %4139, %v4457_v22   ;;  %vm1727_vm12 = vcmp.eq.s32.totalorder %v6141_v42, %v4548_v46 }
 0x23a   :  { %v3830_v53 = vsel %vm1727_vm12, 1.0, %v6125_v48  ;;  %vm1775_vm12 = vcmp.eq.s32.totalorder %v4972_v25, %v4548_v46 }
 0x23b   :  { %v4953_v59 = vpop.permute.xlu0 %1664  ;;  %v4990_v6 = vpop.permute.xlu1 %579  ;;  %v2495_v51 = vpack.c.bf16 %v3830_v53, %v3830_v53 }
 0x23c   :  { %v4998_v45 = vpop.permute.xlu2 %597  ;;  %2850 = vmatpush.bf16.msra.mxu0 %v2811_v62  ;;  %vm1777_vm11 = vcmp.eq.s32.totalorder %v4990_v6, %v4548_v46 }
 0x23d   :  { %v2798_v63 = vunpack.c.l.b16 %v2495_v51  ;;  %vm1780_vm7 = vcmp.eq.s32.totalorder %v4998_v45, %v4548_v46  ;;  %v6145_v45 = vld [vmem:[#allocation15_spill] sm:$0xff]  ;;  %v3880_v57 = vsel %vm1777_vm11, 1.0, %v6125_v48 }
 0x23e   :  { %vm1776_vm10 = vcmp.eq.s32.totalorder %v6145_v45, %v4548_v46 }
 0x23f   :  { %v3879_v44 = vsel %vm1776_vm10, 1.0, %v6125_v48 }
 0x240   :  { %v2544_v6 = vpack.c.bf16 %v3879_v44, %v3879_v44 }
 0x241   :  { %4142 = vset.pattern.permute.xlu2 %v4421_v15  ;;  %4141 = vset.pattern.permute.xlu1 %v4424_v16 }
 0x242   :  { %v3041_v25 = vunpack.c.l.b16 %v2544_v6  ;;  %v6147_v6 = vld [vmem:[#allocation25_spill] sm:$0xff] }
 0x244   :  { %v616_v40 = vpop.permute.xlu2 %615 }
 0x245   :  { %vm1783_vm3 = vcmp.eq.s32.totalorder %v616_v40, %v4548_v46 }
 0x246   :  { %v3886_v52 = vsel %vm1783_vm3, 1.0, %v6125_v48 }
 0x249   :  { %706 = vperm.xlu2 %4142, %v4457_v22   ;;  %700 = vperm.xlu1 %4141, %v4457_v22  }
 0x24b   :  { %v301_v47 = vpop.permute.xlu0 %300  ;;  %v4996_v23 = vpop.permute.xlu1 %591 }
 0x24c   :  { %vm1731_vm9 = vcmp.eq.s32.totalorder %v301_v47, %v4548_v46  ;;  %v3827_v47 = vsel %vm1724_vm14, 1.0, %v6125_v48  ;;  %vm1773_vm14 = vcmp.eq.s32.totalorder %v4962_v56, %v4548_v46 }
 0x24d   :  { %v3834_v5 = vsel %vm1731_vm9, 1.0, %v6125_v48  ;;  %vm1779_vm9 = vcmp.eq.s32.totalorder %v4996_v23, %v4548_v46 }
 0x24e   :  { %v2499_v43 = vpack.c.bf16 %v3834_v5, %v3834_v5 }
 0x250   :  { %v2802_v49 = vunpack.c.l.b16 %v2499_v43  ;;  %v2492_v43 = vpack.c.bf16 %v3827_v47, %v3827_v47 }
 0x251   :  { %4144 = vset.pattern.permute.xlu2 %v4436_v18  ;;  %4143 = vset.pattern.permute.xlu1 %v4439_v19 }
 0x252   :  { %v2822_v24 = vpack.c.b16 %v2802_v49, %v2801_v11  ;;  %v628_v49 = vpop.permute.xlu2 %627  ;;  %v2795_v33 = vunpack.c.l.b16 %v2492_v43 }
 0x253   :  { %v4982_v17 = vpop.permute.xlu0 %785  ;;  %vm1785_vm1 = vcmp.eq.s32.totalorder %v628_v49, %v4548_v46 }
 0x254   :  { %2860 = vmatpush.bf16.msra.mxu1 %v2822_v24  ;;  %v3889_v24 = vsel %vm1786_vm15, 1.0, %v6125_v48  ;;  %v3888_v29 = vsel %vm1785_vm1, 1.0, %v6125_v48  ;;  %vm1772_vm15 = vcmp.eq.s32.totalorder %v4968_v28, %v4548_v46  ;;  %vm1801_vm1 = vcmp.eq.s32.totalorder %v6147_v6, %v4548_v46 }
 0x255   :  { %v2554_v61 = vpack.c.bf16 %v3889_v24, %v3889_v24  ;;  %v2553_v40 = vpack.c.bf16 %v3888_v29, %v3888_v29 }
 0x257   :  { %v3051_v62 = vunpack.c.l.b16 %v2554_v61  ;;  %v3050_v49 = vunpack.c.l.b16 %v2553_v40  ;;  %v3878_v40 = vsel %vm1775_vm12, 1.0, %v6125_v48 }
 0x258   :  { %2861 = vmatpush.bf16.msra.mxu1 %v2821_v31  ;;  %v2543_v56 = vpack.c.bf16 %v3878_v40, %v3878_v40 }
 0x259   :  { %718 = vperm.xlu2 %4144, %v4457_v22   ;;  %712 = vperm.xlu1 %4143, %v4457_v22  }
 0x25a   :  { %v3040_v28 = vunpack.c.l.b16 %v2543_v56 }
 0x25b   :  { %v4992_v37 = vpop.permute.xlu0 %1270  ;;  %v610_v26 = vpop.permute.xlu1 %609 }
 0x25c   :  { %vm1782_vm4 = vcmp.eq.s32.totalorder %v610_v26, %v4548_v46 }
 0x25d   :  { %v3885_v47 = vsel %vm1782_vm4, 1.0, %v6125_v48 }
 0x25e   :  { %v2550_v51 = vpack.c.bf16 %v3885_v47, %v3885_v47 }
 0x261   :  { %4146 = vset.pattern.permute.xlu2 %v4448_v20  ;;  %4145 = vset.pattern.permute.xlu1 %v6140_v34 }
 0x263   :  { %v5002_v35 = vpop.permute.xlu0 %1658 }
 0x269   :  { %736 = vperm.xlu2 %4146, %v4457_v22   ;;  %730 = vperm.xlu1 %4145, %v4457_v22   ;;  %v3828_v22 = vsel %vm1725_vm13, 1.0, %v6125_v48  ;;  %vm1774_vm13 = vcmp.eq.s32.totalorder %v4978_v50, %v4548_v46  ;;  %v3876_v50 = vsel %vm1773_vm14, 1.0, %v6125_v48 }
 0x26a   :  { %v2493_v54 = vpack.c.bf16 %v3828_v22, %v3828_v22 }
 0x26b   :  { %v622_v21 = vpop.permute.xlu1 %621 }
 0x26c   :  { %vm1784_vm2 = vcmp.eq.s32.totalorder %v622_v21, %v4548_v46  ;;  %v2796_v31 = vunpack.c.l.b16 %v2493_v54  ;;  %v3884_v21 = vsel %vm1781_vm6, 1.0, %v6125_v48  ;;  %vm1796_vm6 = vcmp.eq.s32.totalorder %v4943_v41, %v4548_v46 }
 0x26d   :  { %v3887_v0 = vsel %vm1784_vm2, 1.0, %v6125_v48  ;;  %v2549_v24 = vpack.c.bf16 %v3884_v21, %v3884_v21  ;;  %v3875_v21 = vsel %vm1772_vm15, 1.0, %v6125_v48 }
 0x26e   :  { %v2819_v36 = vpack.c.b16 %v2796_v31, %v2795_v33  ;;  %v2552_v53 = vpack.c.bf16 %v3887_v0, %v3887_v0  ;;  %v3881_v33 = vsel %vm1778_vm8, 1.0, %v6125_v48  ;;  %v3882_v31 = vsel %vm1779_vm9, 1.0, %v6125_v48 }
 0x26f   :  { %v3046_v23 = vunpack.c.l.b16 %v2549_v24  ;;  %v2547_v29 = vpack.c.bf16 %v3882_v31, %v3882_v31 }
 0x270   :  { %v3049_v43 = vunpack.c.l.b16 %v2552_v53  ;;  %v3877_v53 = vsel %vm1774_vm13, 1.0, %v6125_v48 }
 0x271   :  { %4148 = vset.pattern.permute.xlu2 %v4372_v4  ;;  %4147 = vset.pattern.permute.xlu1 %v4363_v1 }
 0x273   :  { %v271_v5 = vpop.permute.xlu0 %270 }
 0x274   :  { %vm1726_vm0 = vcmp.eq.s32.totalorder %v271_v5, %v4548_v46  ;;  %v2551_v5 = vpack.c.bf16 %v3886_v52, %v3886_v52  ;;  %v3044_v52 = vunpack.c.l.b16 %v2547_v29 }
 0x275   :  { %v3829_v11 = vsel %vm1726_vm0, 1.0, %v6125_v48 }
 0x276   :  { %v2494_v14 = vpack.c.bf16 %v3829_v11, %v3829_v11  ;;  %v3883_v11 = vsel %vm1780_vm7, 1.0, %v6125_v48  ;;  %v3048_v61 = vunpack.c.l.b16 %v2551_v5  ;;  %v2541_v5 = vpack.c.bf16 %v3876_v50, %v3876_v50 }
 0x278   :  { %v2797_v60 = vunpack.c.l.b16 %v2494_v14  ;;  %v2548_v14 = vpack.c.bf16 %v3883_v11, %v3883_v11  ;;  %v3038_v24 = vunpack.c.l.b16 %v2541_v5 }
 0x279   :  { %749 = vperm.xlu2 %4148, %v4502_v30   ;;  %743 = vperm.xlu1 %4147, %v4502_v30  }
 0x27a   :  { %v2820_v39 = vpack.c.b16 %v2798_v63, %v2797_v60  ;;  %v3075_v60 = vpack.c.b16 %v3050_v49, %v3049_v43  ;;  %v3047_v63 = vunpack.c.l.b16 %v2550_v51  ;;  %v2540_v51 = vpack.c.bf16 %v3875_v21, %v3875_v21  ;;  %v5068_v49 = vpop.permute.xlu2 %646 }
 0x27b   :  { %v640_v55 = vpop.permute.xlu1 %639  ;;  %vm1788_vm14 = vcmp.eq.s32.totalorder %v5068_v49, %v4548_v46 }
 0x27c   :  { %vm1787_vm5 = vcmp.eq.s32.totalorder %v640_v55, %v4548_v46  ;;  %2862 = vmatpush.bf16.msra.mxu1 %v2820_v39  ;;  %v2546_v39 = vpack.c.bf16 %v3881_v33, %v3881_v33  ;;  %v3074_v0 = vpack.c.b16 %v3048_v61, %v3047_v63  ;;  %v3045_v55 = vunpack.c.l.b16 %v2548_v14 }
 0x27d   :  { %v3890_v42 = vsel %vm1787_vm5, 1.0, %v6125_v48  ;;  %v3037_v45 = vunpack.c.l.b16 %v2540_v51  ;;  %v3899_v51 = vsel %vm1796_vm6, 1.0, %v6125_v48 }
 0x27e   :  { %v2555_v22 = vpack.c.bf16 %v3890_v42, %v3890_v42  ;;  %v3073_v42 = vpack.c.b16 %v3046_v23, %v3045_v55  ;;  %v6146_v23 = vld [vmem:[#allocation12_spill] sm:$0xff] }
 0x27f   :  { %v3069_v14 = vpack.c.b16 %v3038_v24, %v3037_v45  ;;  %v2564_v45 = vpack.c.bf16 %v3899_v51, %v3899_v51 }
 0x280   :  { %2863 = vmatpush.bf16.msra.mxu1 %v2819_v36  ;;  %v3052_v26 = vunpack.c.l.b16 %v2555_v22  ;;  %v3043_v36 = vunpack.c.l.b16 %v2546_v39  ;;  %v2542_v22 = vpack.c.bf16 %v3877_v53, %v3877_v53 }
 0x281   :  { %4150 = vset.pattern.permute.xlu2 %v4366_v2  ;;  %4149 = vset.pattern.permute.xlu1 %v4389_v8 }
 0x282   :  { %v3076_v54 = vpack.c.b16 %v3052_v26, %v3051_v62  ;;  %v2545_v62 = vpack.c.bf16 %v3880_v57, %v3880_v57  ;;  %v3072_v47 = vpack.c.b16 %v3044_v52, %v3043_v36  ;;  %v3039_v43 = vunpack.c.l.b16 %v2542_v22 }
 0x283   :  { %v3904_v36 = vsel %vm1801_vm1, 1.0, %v6125_v48 }
 0x284   :  { %3101 = vmatpush.bf16.msrb.mxu0 %v3076_v54  ;;  %v3042_v26 = vunpack.c.l.b16 %v2545_v62  ;;  %v3070_v11 = vpack.c.b16 %v3040_v28, %v3039_v43 }
 0x286   :  { %v3071_v54 = vpack.c.b16 %v3042_v26, %v3041_v25  ;;  %v2569_v25 = vpack.c.bf16 %v3904_v36, %v3904_v36 }
 0x288   :  { %3102 = vmatpush.bf16.msrb.mxu0 %v3075_v60  ;;  %v5074_v60 = vpop.permute.xlu2 %658  ;;  %v3066_v5 = vunpack.c.l.b16 %v2569_v25 }
 0x289   :  { %767 = vperm.xlu2 %4150, %v4502_v30   ;;  %761 = vperm.xlu1 %4149, %v4502_v30   ;;  %vm1790_vm13 = vcmp.eq.s32.totalorder %v5074_v60, %v4548_v46 }
 0x28b   :  { %v5082_v61 = vpop.permute.xlu1 %652 }
 0x28c   :  { %3103 = vmatpush.bf16.msrb.mxu0 %v3074_v0  ;;  %vm1789_vm15 = vcmp.eq.s32.totalorder %v5082_v61, %v4548_v46 }
 0x28d   :  { %v3892_v51 = vsel %vm1789_vm15, 1.0, %v6125_v48 }
 0x290   :  { %3104 = vmatpush.bf16.msrb.mxu0 %v3073_v42  ;;  %v5078_v63 = vpop.permute.xlu2 %676  ;;  %v6148_v42 = vld [vmem:[#allocation8_spill] sm:$0xff] }
 0x291   :  { %4152 = vset.pattern.permute.xlu2 %v4409_v13  ;;  %4151 = vset.pattern.permute.xlu1 %v4386_v7  ;;  %vm1793_vm10 = vcmp.eq.s32.totalorder %v5078_v63, %v4548_v46 }
 0x294   :  { %3105 = vmatpush.bf16.msrb.mxu0 %v3072_v47 }
 0x298   :  { %3106 = vmatpush.bf16.msrb.mxu0 %v3071_v54  ;;  %v689_v33 = vpop.permute.xlu2 %688 }
 0x299   :  { %779 = vperm.xlu2 %4152, %v4502_v30   ;;  %773 = vperm.xlu1 %4151, %v4502_v30   ;;  %vm1795_vm8 = vcmp.eq.s32.totalorder %v689_v33, %v4548_v46  ;;  %v6149_v33 = vld [vmem:[#allocation20_spill] sm:$0xff] }
 0x29a   :  { %vm1791_vm12 = vcmp.eq.s32.totalorder %v6149_v33, %v4548_v46 }
 0x29b   :  { %v5086_v31 = vpop.permute.xlu1 %670 }
 0x29c   :  { %3107 = vmatpush.bf16.msrb.mxu0 %v3070_v11  ;;  %vm1792_vm11 = vcmp.eq.s32.totalorder %v5086_v31, %v4548_v46  ;;  %v3894_v31 = vsel %vm1791_vm12, 1.0, %v6125_v48 }
 0x2a0   :  { %3108 = vmatpush.bf16.msrb.mxu0 %v3069_v14 }
 0x2a1   :  { %4154 = vset.pattern.permute.xlu2 %v4424_v16  ;;  %4153 = vset.pattern.permute.xlu1 %v4492_v27 }
 0x2a3   :  { %v707_v44 = vpop.permute.xlu2 %706 }
 0x2a4   :  { %vm1798_vm3 = vcmp.eq.s32.totalorder %v707_v44, %v4548_v46 }
 0x2a5   :  { %v3901_v47 = vsel %vm1798_vm3, 1.0, %v6125_v48 }
 0x2a6   :  { %v2566_v54 = vpack.c.bf16 %v3901_v47, %v3901_v47 }
 0x2a8   :  { %v3063_v44 = vunpack.c.l.b16 %v2566_v54 }
 0x2a9   :  { %797 = vperm.xlu2 %4154, %v4502_v30   ;;  %791 = vperm.xlu1 %4153, %v4502_v30  }
 0x2ab   :  { %v683_v39 = vpop.permute.xlu1 %682 }
 0x2ac   :  { %vm1794_vm9 = vcmp.eq.s32.totalorder %v683_v39, %v4548_v46  ;;  %v3061_v39 = vunpack.c.l.b16 %v2564_v45 }
 0x2b1   :  { %4156 = vset.pattern.permute.xlu2 %v4439_v19  ;;  %4155 = vset.pattern.permute.xlu1 %v4421_v15 }
 0x2b3   :  { %v719_v29 = vpop.permute.xlu2 %718 }
 0x2b4   :  { %vm1800_vm2 = vcmp.eq.s32.totalorder %v719_v29, %v4548_v46 }
 0x2b5   :  { %v3903_v40 = vsel %vm1800_vm2, 1.0, %v6125_v48 }
 0x2b6   :  { %v2568_v56 = vpack.c.bf16 %v3903_v40, %v3903_v40 }
 0x2b8   :  { %v3065_v28 = vunpack.c.l.b16 %v2568_v56 }
 0x2b9   :  { %809 = vperm.xlu2 %4156, %v4502_v30   ;;  %803 = vperm.xlu1 %4155, %v4502_v30  }
 0x2ba   :  { %v3083_v14 = vpack.c.b16 %v3066_v5, %v3065_v28  ;;  %v3891_v5 = vsel %vm1788_vm14, 1.0, %v6125_v48 }
 0x2bb   :  { %v701_v0 = vpop.permute.xlu1 %700  ;;  %v2556_v49 = vpack.c.bf16 %v3891_v5, %v3891_v5 }
 0x2bc   :  { %vm1797_vm7 = vcmp.eq.s32.totalorder %v701_v0, %v4548_v46  ;;  %v3898_v0 = vsel %vm1795_vm8, 1.0, %v6125_v48  ;;  %vm1811_vm8 = vcmp.eq.s32.totalorder %v4982_v17, %v4548_v46 }
 0x2bd   :  { %v3900_v11 = vsel %vm1797_vm7, 1.0, %v6125_v48  ;;  %v2563_v63 = vpack.c.bf16 %v3898_v0, %v3898_v0 }
 0x2be   :  { %v2565_v24 = vpack.c.bf16 %v3900_v11, %v3900_v11  ;;  %v3053_v11 = vunpack.c.l.b16 %v2556_v49 }
 0x2bf   :  { %v3060_v56 = vunpack.c.l.b16 %v2563_v63 }
 0x2c0   :  { %v3062_v36 = vunpack.c.l.b16 %v2565_v24 }
 0x2c1   :  { %4158 = vset.pattern.permute.xlu2 %v6140_v34  ;;  %4157 = vset.pattern.permute.xlu1 %v6146_v23 }
 0x2c2   :  { %v3081_v25 = vpack.c.b16 %v3062_v36, %v3061_v39 }
 0x2c3   :  { %v737_v55 = vpop.permute.xlu2 %736 }
 0x2c4   :  { %vm1803_vm0 = vcmp.eq.s32.totalorder %v737_v55, %v4548_v46  ;;  %v3897_v55 = vsel %vm1794_vm9, 1.0, %v6125_v48 }
 0x2c5   :  { %v3906_v62 = vsel %vm1803_vm0, 1.0, %v6125_v48  ;;  %v2562_v6 = vpack.c.bf16 %v3897_v55, %v3897_v55 }
 0x2c6   :  { %v2571_v52 = vpack.c.bf16 %v3906_v62, %v3906_v62 }
 0x2c8   :  { %v3068_v22 = vunpack.c.l.b16 %v2571_v52  ;;  %v3895_v52 = vsel %vm1792_vm11, 1.0, %v6125_v48 }
 0x2c9   :  { %827 = vperm.xlu2 %4158, %v4502_v30   ;;  %821 = vperm.xlu1 %4157, %v4502_v30  }
 0x2cb   :  { %v713_v57 = vpop.permute.xlu1 %712 }
 0x2cc   :  { %vm1799_vm4 = vcmp.eq.s32.totalorder %v713_v57, %v4548_v46  ;;  %v3896_v57 = vsel %vm1793_vm10, 1.0, %v6125_v48 }
 0x2cd   :  { %v3902_v26 = vsel %vm1799_vm4, 1.0, %v6125_v48  ;;  %v2561_v40 = vpack.c.bf16 %v3896_v57, %v3896_v57 }
 0x2ce   :  { %v2567_v43 = vpack.c.bf16 %v3902_v26, %v3902_v26 }
 0x2d0   :  { %v3064_v29 = vunpack.c.l.b16 %v2567_v43  ;;  %v2557_v43 = vpack.c.bf16 %v3892_v51, %v3892_v51 }
 0x2d1   :  { %4160 = vset.pattern.permute.xlu2 %v4363_v1  ;;  %4159 = vset.pattern.permute.xlu1 %v4448_v20 }
 0x2d2   :  { %v3082_v62 = vpack.c.b16 %v3064_v29, %v3063_v44  ;;  %v3054_v45 = vunpack.c.l.b16 %v2557_v43 }
 0x2d4   :  { %v3077_v24 = vpack.c.b16 %v3054_v45, %v3053_v11  ;;  %v3914_v11 = vsel %vm1811_vm8, 1.0, %v6125_v48 }
 0x2d9   :  { %840 = vperm.xlu2 %4160, %v6148_v42   ;;  %833 = vperm.xlu1 %4159, %v4502_v30  }
 0x2db   :  { %v731_v53 = vpop.permute.xlu1 %730 }
 0x2dc   :  { %vm1802_vm5 = vcmp.eq.s32.totalorder %v731_v53, %v4548_v46  ;;  %v2560_v53 = vpack.c.bf16 %v3895_v52, %v3895_v52  ;;  %v6150_v52 = vld [vmem:[#allocation29_spill] sm:$0xff] }
 0x2dd   :  { %v3905_v50 = vsel %vm1802_vm5, 1.0, %v6125_v48  ;;  %vm1816_vm1 = vcmp.eq.s32.totalorder %v6150_v52, %v4548_v46 }
 0x2de   :  { %v2570_v30 = vpack.c.bf16 %v3905_v50, %v3905_v50  ;;  %v3059_v50 = vunpack.c.l.b16 %v2562_v6  ;;  %v3057_v26 = vunpack.c.l.b16 %v2560_v53 }
 0x2e0   :  { %v3067_v21 = vunpack.c.l.b16 %v2570_v30  ;;  %v3893_v30 = vsel %vm1790_vm13, 1.0, %v6125_v48  ;;  %v3080_v47 = vpack.c.b16 %v3060_v56, %v3059_v50 }
 0x2e1   :  { %4163 = vset.pattern.permute.xlu2 %v4389_v8  ;;  %4162 = vset.pattern.permute.xlu1 %v4369_v3  ;;  %v2558_v60 = vpack.c.bf16 %v3893_v30, %v3893_v30 }
 0x2e2   :  { %v3084_v41 = vpack.c.b16 %v3068_v22, %v3067_v21  ;;  %v2559_v22 = vpack.c.bf16 %v3894_v31, %v3894_v31  ;;  %v3058_v21 = vunpack.c.l.b16 %v2561_v40  ;;  %v6151_v40 = vld [vmem:[#allocation22_spill] sm:$0xff] }
 0x2e3   :  { %v3055_v61 = vunpack.c.l.b16 %v2558_v60 }
 0x2e4   :  { %3114 = vmatpush.bf16.msrb.mxu1 %v3084_v41  ;;  %v3056_v54 = vunpack.c.l.b16 %v2559_v22  ;;  %v3079_v41 = vpack.c.b16 %v3058_v21, %v3057_v26 }
 0x2e6   :  { %v3078_v28 = vpack.c.b16 %v3056_v54, %v3055_v61 }
 0x2e8   :  { %3115 = vmatpush.bf16.msrb.mxu1 %v3083_v14  ;;  %v5150_v14 = vpop.permute.xlu2 %749 }
 0x2e9   :  { %858 = vperm.xlu2 %4163, %v6148_v42   ;;  %852 = vperm.xlu1 %4162, %v6148_v42   ;;  %vm1805_vm14 = vcmp.eq.s32.totalorder %v5150_v14, %v4548_v46 }
 0x2eb   :  { %v5154_v44 = vpop.permute.xlu1 %743 }
 0x2ec   :  { %3116 = vmatpush.bf16.msrb.mxu1 %v3082_v62  ;;  %vm1804_vm15 = vcmp.eq.s32.totalorder %v5154_v44, %v4548_v46 }
 0x2f0   :  { %3117 = vmatpush.bf16.msrb.mxu1 %v3081_v25  ;;  %v5156_v29 = vpop.permute.xlu2 %767 }
 0x2f1   :  { %4165 = vset.pattern.permute.xlu2 %v4386_v7  ;;  %4164 = vset.pattern.permute.xlu1 %v4366_v2  ;;  %vm1808_vm10 = vcmp.eq.s32.totalorder %v5156_v29, %v4548_v46 }
 0x2f4   :  { %3118 = vmatpush.bf16.msrb.mxu1 %v3080_v47 }
 0x2f8   :  { %3119 = vmatpush.bf16.msrb.mxu1 %v3079_v41  ;;  %v780_v55 = vpop.permute.xlu2 %779 }
 0x2f9   :  { %870 = vperm.xlu2 %4165, %v6148_v42   ;;  %864 = vperm.xlu1 %4164, %v6148_v42   ;;  %vm1810_vm9 = vcmp.eq.s32.totalorder %v780_v55, %v4548_v46 }
 0x2fb   :  { %v5160_v0 = vpop.permute.xlu1 %761 }
 0x2fc   :  { %3120 = vmatpush.bf16.msrb.mxu1 %v3078_v28  ;;  %vm1807_vm13 = vcmp.eq.s32.totalorder %v5160_v0, %v4548_v46 }
 0x300   :  { %3121 = vmatpush.bf16.msrb.mxu1 %v3077_v24  ;;  %v756_v24 = vpop.permute.xlu0 %755 }
 0x301   :  { %4167 = vset.pattern.permute.xlu2 %v4492_v27  ;;  %4166 = vset.pattern.permute.xlu1 %v4406_v12  ;;  %vm1806_vm12 = vcmp.eq.s32.totalorder %v756_v24, %v4548_v46 }
 0x303   :  { %v798_v39 = vpop.permute.xlu2 %797 }
 0x304   :  { %vm1813_vm6 = vcmp.eq.s32.totalorder %v798_v39, %v4548_v46 }
 0x305   :  { %v3916_v54 = vsel %vm1813_vm6, 1.0, %v6125_v48 }
 0x306   :  { %v2581_v45 = vpack.c.bf16 %v3916_v54, %v3916_v54 }
 0x309   :  { %888 = vperm.xlu2 %4167, %v6148_v42   ;;  %882 = vperm.xlu1 %4166, %v6148_v42  }
 0x30b   :  { %v5164_v33 = vpop.permute.xlu1 %773 }
 0x30c   :  { %vm1809_vm11 = vcmp.eq.s32.totalorder %v5164_v33, %v4548_v46  ;;  %v3909_v33 = vsel %vm1806_vm12, 1.0, %v6125_v48 }
 0x30d   :  { %v2574_v0 = vpack.c.bf16 %v3909_v33, %v3909_v33 }
 0x311   :  { %4169 = vset.pattern.permute.xlu2 %v4421_v15  ;;  %4168 = vset.pattern.permute.xlu1 %v4424_v16 }
 0x313   :  { %v810_v63 = vpop.permute.xlu2 %809 }
 0x314   :  { %vm1815_vm3 = vcmp.eq.s32.totalorder %v810_v63, %v4548_v46 }
 0x315   :  { %v3918_v26 = vsel %vm1815_vm3, 1.0, %v6125_v48  ;;  %vm1831_vm3 = vcmp.eq.s32.totalorder %v4852_v38, %v4548_v46 }
 0x316   :  { %v2583_v49 = vpack.c.bf16 %v3918_v26, %v3918_v26 }
 0x318   :  { %v3177_v63 = vunpack.c.l.b16 %v2583_v49  ;;  %v3168_v49 = vunpack.c.l.b16 %v2574_v0 }
 0x319   :  { %900 = vperm.xlu2 %4169, %v6148_v42   ;;  %894 = vperm.xlu1 %4168, %v6148_v42  }
 0x31b   :  { %v792_v57 = vpop.permute.xlu1 %791 }
 0x31c   :  { %vm1812_vm7 = vcmp.eq.s32.totalorder %v792_v57, %v4548_v46 }
 0x31d   :  { %v3915_v28 = vsel %vm1812_vm7, 1.0, %v6125_v48 }
 0x31e   :  { %v2580_v17 = vpack.c.bf16 %v3915_v28, %v3915_v28 }
 0x320   :  { %v3174_v52 = vunpack.c.l.b16 %v2580_v17 }
 0x321   :  { %4171 = vset.pattern.permute.xlu2 %v6146_v23  ;;  %4170 = vset.pattern.permute.xlu1 %v4436_v18 }
 0x323   :  { %v828_v62 = vpop.permute.xlu2 %827 }
 0x324   :  { %vm1818_vm0 = vcmp.eq.s32.totalorder %v828_v62, %v4548_v46  ;;  %v2579_v62 = vpack.c.bf16 %v3914_v11, %v3914_v11 }
 0x325   :  { %v3921_v31 = vsel %vm1818_vm0, 1.0, %v6125_v48 }
 0x326   :  { %v2586_v53 = vpack.c.bf16 %v3921_v31, %v3921_v31  ;;  %v3175_v31 = vunpack.c.l.b16 %v2581_v45  ;;  %v3173_v29 = vunpack.c.l.b16 %v2579_v62 }
 0x328   :  { %v3180_v47 = vunpack.c.l.b16 %v2586_v53  ;;  %v3912_v53 = vsel %vm1809_vm11, 1.0, %v6125_v48 }
 0x329   :  { %918 = vperm.xlu2 %4171, %v6148_v42   ;;  %912 = vperm.xlu1 %4170, %v6148_v42  }
 0x32b   :  { %v804_v6 = vpop.permute.xlu1 %803 }
 0x32c   :  { %vm1814_vm4 = vcmp.eq.s32.totalorder %v804_v6, %v4548_v46  ;;  %v3913_v6 = vsel %vm1810_vm9, 1.0, %v6125_v48 }
 0x32d   :  { %v3917_v21 = vsel %vm1814_vm4, 1.0, %v6125_v48  ;;  %v2578_v55 = vpack.c.bf16 %v3913_v6, %v3913_v6 }
 0x32e   :  { %v2582_v43 = vpack.c.bf16 %v3917_v21, %v3917_v21 }
 0x330   :  { %v3176_v57 = vunpack.c.l.b16 %v2582_v43 }
 0x331   :  { %4173 = vset.pattern.permute.xlu2 %v4448_v20  ;;  %4172 = vset.pattern.permute.xlu1 %v6140_v34 }
 0x333   :  { %v5221_v11 = vpop.permute.xlu2 %840 }
 0x339   :  { %930 = vperm.xlu2 %4173, %v6148_v42   ;;  %924 = vperm.xlu1 %4172, %v6148_v42   ;;  %v3919_v42 = vsel %vm1816_vm1, 1.0, %v6125_v48 }
 0x33a   :  { %v2584_v56 = vpack.c.bf16 %v3919_v42, %v3919_v42  ;;  %v3911_v42 = vsel %vm1808_vm10, 1.0, %v6125_v48 }
 0x33b   :  { %v822_v36 = vpop.permute.xlu1 %821 }
 0x33c   :  { %vm1817_vm2 = vcmp.eq.s32.totalorder %v822_v36, %v4548_v46  ;;  %v3178_v51 = vunpack.c.l.b16 %v2584_v56  ;;  %v3203_v36 = vpack.c.b16 %v3177_v63, %v3176_v57  ;;  %v3202_v56 = vpack.c.b16 %v3175_v31, %v3174_v52 }
 0x33d   :  { %v3920_v25 = vsel %vm1817_vm2, 1.0, %v6125_v48 }
 0x33e   :  { %v2585_v22 = vpack.c.bf16 %v3920_v25, %v3920_v25  ;;  %v2576_v25 = vpack.c.bf16 %v3911_v42, %v3911_v42 }
 0x340   :  { %v3179_v61 = vunpack.c.l.b16 %v2585_v22  ;;  %v3910_v22 = vsel %vm1807_vm13, 1.0, %v6125_v48  ;;  %v3170_v26 = vunpack.c.l.b16 %v2576_v25 }
 0x341   :  { %4175 = vset.pattern.permute.xlu2 %v4369_v3  ;;  %4174 = vset.pattern.permute.xlu1 %v4372_v4  ;;  %v2575_v14 = vpack.c.bf16 %v3910_v22, %v3910_v22 }
 0x342   :  { %v3204_v39 = vpack.c.b16 %v3179_v61, %v3178_v51 }
 0x343   :  { %v3169_v44 = vunpack.c.l.b16 %v2575_v14  ;;  %v5225_v24 = vpop.permute.xlu2 %858 }
 0x344   :  { %vm1823_vm12 = vcmp.eq.s32.totalorder %v5225_v24, %v4548_v46 }
 0x349   :  { %949 = vperm.xlu2 %4175, %v6151_v40   ;;  %943 = vperm.xlu1 %4174, %v6151_v40  }
 0x34b   :  { %v834_v50 = vpop.permute.xlu1 %833 }
 0x34c   :  { %vm1819_vm5 = vcmp.eq.s32.totalorder %v834_v50, %v4548_v46  ;;  %v2577_v50 = vpack.c.bf16 %v3912_v53, %v3912_v53  ;;  %v6152_v53 = vld [vmem:[#allocation9_spill] sm:$0xff] }
 0x34d   :  { %v3922_v30 = vsel %vm1819_vm5, 1.0, %v6125_v48 }
 0x34e   :  { %v2587_v60 = vpack.c.bf16 %v3922_v30, %v3922_v30  ;;  %v3172_v30 = vunpack.c.l.b16 %v2578_v55  ;;  %v3171_v21 = vunpack.c.l.b16 %v2577_v50  ;;  %v3934_v50 = vsel %vm1831_vm3, 1.0, %v6125_v48 }
 0x350   :  { %v3181_v5 = vunpack.c.l.b16 %v2587_v60  ;;  %v3908_v60 = vsel %vm1805_vm14, 1.0, %v6125_v48  ;;  %v3200_v43 = vpack.c.b16 %v3171_v21, %v3170_v26  ;;  %v2599_v26 = vpack.c.bf16 %v3934_v50, %v3934_v50 }
 0x351   :  { %4177 = vset.pattern.permute.xlu2 %v4366_v2  ;;  %4176 = vset.pattern.permute.xlu1 %v4389_v8  ;;  %v2573_v51 = vpack.c.bf16 %v3908_v60, %v3908_v60 }
 0x352   :  { %v3205_v41 = vpack.c.b16 %v3181_v5, %v3180_v47  ;;  %v3201_v47 = vpack.c.b16 %v3173_v29, %v3172_v30  ;;  %v3907_v5 = vsel %vm1804_vm15, 1.0, %v6125_v48  ;;  %vm1820_vm15 = vcmp.eq.s32.totalorder %v5221_v11, %v4548_v46 }
 0x353   :  { %v2572_v54 = vpack.c.bf16 %v3907_v5, %v3907_v5  ;;  %v3167_v28 = vunpack.c.l.b16 %v2573_v51  ;;  %v5229_v17 = vpop.permute.xlu2 %870 }
 0x354   :  { %3230 = vmatpush.bf16.msrb.mxu2 %v3205_v41  ;;  %v3199_v41 = vpack.c.b16 %v3169_v44, %v3168_v49  ;;  %vm1825_vm10 = vcmp.eq.s32.totalorder %v5229_v17, %v4548_v46 }
 0x355   :  { %v3166_v61 = vunpack.c.l.b16 %v2572_v54 }
 0x357   :  { %v3198_v45 = vpack.c.b16 %v3167_v28, %v3166_v61 }
 0x358   :  { %3231 = vmatpush.bf16.msrb.mxu2 %v3204_v39 }
 0x359   :  { %961 = vperm.xlu2 %4177, %v6151_v40   ;;  %955 = vperm.xlu1 %4176, %v6151_v40  }
 0x35b   :  { %v5233_v39 = vpop.permute.xlu1 %852 }
 0x35c   :  { %3232 = vmatpush.bf16.msrb.mxu2 %v3203_v36  ;;  %vm1822_vm13 = vcmp.eq.s32.totalorder %v5233_v39, %v4548_v46 }
 0x360   :  { %3233 = vmatpush.bf16.msrb.mxu2 %v3202_v56 }
 0x361   :  { %4179 = vset.pattern.permute.xlu2 %v4406_v12  ;;  %4178 = vset.pattern.permute.xlu1 %v4409_v13 }
 0x363   :  { %v889_v57 = vpop.permute.xlu2 %888 }
 0x364   :  { %3234 = vmatpush.bf16.msrb.mxu2 %v3201_v47  ;;  %vm1828_vm6 = vcmp.eq.s32.totalorder %v889_v57, %v4548_v46  ;;  %v6153_v47 = vld [vmem:[#allocation31_spill] sm:$0xff] }
 0x365   :  { %vm1826_vm8 = vcmp.eq.s32.totalorder %v6153_v47, %v4548_v46  ;;  %v3931_v49 = vsel %vm1828_vm6, 1.0, %v6125_v48 }
 0x366   :  { %v3929_v44 = vsel %vm1826_vm8, 1.0, %v6125_v48  ;;  %v2596_v61 = vpack.c.bf16 %v3931_v49, %v3931_v49 }
 0x368   :  { %3235 = vmatpush.bf16.msrb.mxu2 %v3200_v43 }
 0x369   :  { %979 = vperm.xlu2 %4179, %v6151_v40   ;;  %973 = vperm.xlu1 %4178, %v6151_v40  }
 0x36b   :  { %v5237_v63 = vpop.permute.xlu1 %864 }
 0x36c   :  { %3236 = vmatpush.bf16.msrb.mxu2 %v3199_v41  ;;  %v3193_v41 = vunpack.c.l.b16 %v2599_v26  ;;  %vm1824_vm11 = vcmp.eq.s32.totalorder %v5237_v63, %v4548_v46  ;;  %v6154_v63 = vld [vmem:[#allocation14_spill] sm:$0xff] }
 0x36d   :  { %v3927_v17 = vsel %vm1824_vm11, 1.0, %v6125_v48  ;;  %vm1821_vm14 = vcmp.eq.s32.totalorder %v6154_v63, %v4548_v46 }
 0x370   :  { %3237 = vmatpush.bf16.msrb.mxu2 %v3198_v45 }
 0x371   :  { %4181 = vset.pattern.permute.xlu2 %v4424_v16  ;;  %4180 = vset.pattern.permute.xlu1 %v4492_v27 }
 0x373   :  { %v901_v6 = vpop.permute.xlu2 %900 }
 0x374   :  { %vm1830_vm4 = vcmp.eq.s32.totalorder %v901_v6, %v4548_v46 }
 0x375   :  { %v3933_v38 = vsel %vm1830_vm4, 1.0, %v6125_v48 }
 0x376   :  { %v2598_v21 = vpack.c.bf16 %v3933_v38, %v3933_v38 }
 0x378   :  { %v3192_v57 = vunpack.c.l.b16 %v2598_v21 }
 0x379   :  { %991 = vperm.xlu2 %4181, %v6151_v40   ;;  %985 = vperm.xlu1 %4180, %v6151_v40  }
 0x37b   :  { %v883_v62 = vpop.permute.xlu1 %882 }
 0x37c   :  { %vm1827_vm9 = vcmp.eq.s32.totalorder %v883_v62, %v4548_v46 }
 0x37d   :  { %v3930_v6 = vsel %vm1827_vm9, 1.0, %v6125_v48 }
 0x37e   :  { %v2595_v62 = vpack.c.bf16 %v3930_v6, %v3930_v6 }
 0x380   :  { %v3189_v50 = vunpack.c.l.b16 %v2595_v62 }
 0x381   :  { %4183 = vset.pattern.permute.xlu2 %v4436_v18  ;;  %4182 = vset.pattern.permute.xlu1 %v4439_v19 }
 0x383   :  { %v919_v55 = vpop.permute.xlu2 %918 }
 0x384   :  { %vm1833_vm1 = vcmp.eq.s32.totalorder %v919_v55, %v4548_v46  ;;  %v2594_v55 = vpack.c.bf16 %v3929_v44, %v3929_v44 }
 0x385   :  { %v3936_v29 = vsel %vm1833_vm1, 1.0, %v6125_v48 }
 0x386   :  { %v2601_v30 = vpack.c.bf16 %v3936_v29, %v3936_v29  ;;  %v3188_v24 = vunpack.c.l.b16 %v2594_v55  ;;  %v5311_v55 = vld [vmem:[#allocation2] sm:$0xff] }
 0x388   :  { %v3195_v54 = vunpack.c.l.b16 %v2601_v30  ;;  %v3924_v30 = vsel %vm1821_vm14, 1.0, %v6125_v48 }
 0x389   :  { %1009 = vperm.xlu2 %4183, %v6151_v40   ;;  %1003 = vperm.xlu1 %4182, %v6151_v40   ;;  %v2589_v47 = vpack.c.bf16 %v3924_v30, %v3924_v30 }
 0x38b   :  { %v895_v36 = vpop.permute.xlu1 %894 }
 0x38c   :  { %vm1829_vm7 = vcmp.eq.s32.totalorder %v895_v36, %v4548_v46  ;;  %v3211_v36 = vpack.c.b16 %v3193_v41, %v3192_v57 }
 0x38d   :  { %v3932_v43 = vsel %vm1829_vm7, 1.0, %v6125_v48 }
 0x38e   :  { %v2597_v28 = vpack.c.bf16 %v3932_v43, %v3932_v43  ;;  %v3183_v43 = vunpack.c.l.b16 %v2589_v47 }
 0x391   :  { %4185 = vset.pattern.permute.xlu2 %v6140_v34  ;;  %4184 = vset.pattern.permute.xlu1 %v6146_v23 }
 0x393   :  { %v931_v52 = vpop.permute.xlu2 %930 }
 0x394   :  { %vm1835_vm0 = vcmp.eq.s32.totalorder %v931_v52, %v4548_v46  ;;  %v3190_v52 = vunpack.c.l.b16 %v2596_v61 }
 0x395   :  { %v3938_v42 = vsel %vm1835_vm0, 1.0, %v6125_v48  ;;  %vm61_vm0 = vcmask 1040384  }
 0x399   :  { %1021 = vperm.xlu2 %4185, %v6151_v40   ;;  %1015 = vperm.xlu1 %4184, %v6151_v40   ;;  %v2603_v40 = vpack.c.bf16 %v3938_v42, %v3938_v42  ;;  %v3928_v42 = vsel %vm1825_vm10, 1.0, %v6125_v48 }
 0x39a   :  { %v2593_v29 = vpack.c.bf16 %v3928_v42, %v3928_v42 }
 0x39b   :  { %v913_v31 = vpop.permute.xlu1 %912  ;;  %v3197_v0 = vunpack.c.l.b16 %v2603_v40  ;;  %v3926_v40 = vsel %vm1823_vm12, 1.0, %v6125_v48 }
 0x39c   :  { %vm1832_vm2 = vcmp.eq.s32.totalorder %v913_v31, %v4548_v46  ;;  %v3191_v31 = vunpack.c.l.b16 %v2597_v28  ;;  %v2591_v39 = vpack.c.bf16 %v3926_v40, %v3926_v40  ;;  %v3187_v38 = vunpack.c.l.b16 %v2593_v29  ;;  %v6155_v40 = vld [vmem:[#allocation40_spill] sm:$0xff] }
 0x39d   :  { %v3935_v33 = vsel %vm1832_vm2, 1.0, %v6125_v48  ;;  %vm1851_vm3 = vcmp.eq.s32.totalorder %v6155_v40, %v4548_v46 }
 0x39e   :  { %v2600_v22 = vpack.c.bf16 %v3935_v33, %v3935_v33  ;;  %v2592_v33 = vpack.c.bf16 %v3927_v17, %v3927_v17 }
 0x3a0   :  { %v3194_v51 = vunpack.c.l.b16 %v2600_v22 }
 0x3a1   :  { %4187 = vset.pattern.permute.xlu2 %v4372_v4  ;;  %4186 = vset.pattern.permute.xlu1 %v4363_v1 }
 0x3a2   :  { %v3212_v45 = vpack.c.b16 %v3195_v54, %v3194_v51  ;;  %v3185_v51 = vunpack.c.l.b16 %v2591_v39 }
 0x3a3   :  { %v5293_v26 = vpop.permute.xlu2 %949 }
 0x3a9   :  { %1040 = vperm.xlu2 %4187, %v6152_v53   ;;  %1034 = vperm.xlu1 %4186, %v6152_v53  }
 0x3ab   :  { %v925_v25 = vpop.permute.xlu1 %924 }
 0x3ac   :  { %vm1834_vm5 = vcmp.eq.s32.totalorder %v925_v25, %v4548_v46  ;;  %v3210_v25 = vpack.c.b16 %v3191_v31, %v3190_v52 }
 0x3ad   :  { %v3937_v56 = vsel %vm1834_vm5, 1.0, %v6125_v48 }
 0x3ae   :  { %v2602_v60 = vpack.c.bf16 %v3937_v56, %v3937_v56  ;;  %v3925_v56 = vsel %vm1822_vm13, 1.0, %v6125_v48 }
 0x3af   :  { %v2590_v22 = vpack.c.bf16 %v3925_v56, %v3925_v56 }
 0x3b0   :  { %v3196_v14 = vunpack.c.l.b16 %v2602_v60  ;;  %v3209_v60 = vpack.c.b16 %v3189_v50, %v3188_v24 }
 0x3b1   :  { %4189 = vset.pattern.permute.xlu2 %v4389_v8  ;;  %4188 = vset.pattern.permute.xlu1 %v4369_v3 }
 0x3b2   :  { %v3213_v5 = vpack.c.b16 %v3197_v0, %v3196_v14  ;;  %v3186_v0 = vunpack.c.l.b16 %v2592_v33  ;;  %v3923_v14 = vsel %vm1820_vm15, 1.0, %v6125_v48 }
 0x3b3   :  { %v2588_v21 = vpack.c.bf16 %v3923_v14, %v3923_v14  ;;  %v5297_v41 = vpop.permute.xlu2 %961 }
 0x3b4   :  { %3243 = vmatpush.bf16.msrb.mxu3 %v3213_v5  ;;  %v3208_v11 = vpack.c.b16 %v3187_v38, %v3186_v0  ;;  %v3184_v5 = vunpack.c.l.b16 %v2590_v22  ;;  %vm1840_vm14 = vcmp.eq.s32.totalorder %v5297_v41, %v4548_v46 }
 0x3b5   :  { %v3182_v49 = vunpack.c.l.b16 %v2588_v21  ;;  %v6156_v21 = vld [vmem:[#allocation38_spill] sm:$0xff]  ;;  %v3943_v41 = vsel %vm1840_vm14, 1.0, %v6125_v48 }
 0x3b6   :  { %v3207_v54 = vpack.c.b16 %v3185_v51, %v3184_v5  ;;  %vm1846_vm6 = vcmp.eq.s32.totalorder %v6156_v21, %v4548_v46  ;;  %v6157_v5 = vld [vmem:[#allocation11_spill] sm:$0xff] }
 0x3b7   :  { %v3206_v44 = vpack.c.b16 %v3183_v43, %v3182_v49  ;;  %v3949_v51 = vsel %vm1846_vm6, 1.0, %v6125_v48 }
 0x3b8   :  { %3244 = vmatpush.bf16.msrb.mxu3 %v3212_v45  ;;  %v53_v45 = vld [vmem:[#allocation2 + $0x8] sm:$0xff] }
 0x3b9   :  { %1052 = vperm.xlu2 %4189, %v6152_v53   ;;  %1046 = vperm.xlu1 %4188, %v6152_v53   ;;  %v5309_v6 = vrot.slane %v53_v45, 7 }
 0x3bb   :  { %v5307_v57 = vpop.permute.xlu1 %943  ;;  %v62_v62 = vsel %vm61_vm0, %v5311_v55, %v5309_v6  ;;  %vm1838_vm0 = vcmp.eq.s32.totalorder %v5293_v26, %v4548_v46  ;;  %v2608_v26 = vpack.c.bf16 %v3943_v41, %v3943_v41 }
 0x3bc   :  { %3245 = vmatpush.bf16.msrb.mxu3 %v3211_v36  ;;  %v84_v36 = vperm.slane %v62_v62, 0  ;;  %v85_v52 = vperm.slane %v62_v62, 1 }
 0x3be   :  { %vm100_vm1 = vcmp.eq.s32.totalorder %v84_v36, %v4363_v1  ;;  %vm101_vm2 = vcmp.eq.s32.totalorder %v85_v52, %v4363_v1 }
 0x3bf   :  { %v3795_v42 = vsel %vm100_vm1, 1.0, %v6125_v48  ;;  %v3796_v17 = vsel %vm101_vm2, 1.0, %v6125_v48 }
 0x3c0   :  { %3246 = vmatpush.bf16.msrb.mxu3 %v3210_v25  ;;  %v5321_v63 = vpack.c.bf16 %v3796_v17, %v3795_v42  ;;  %v3954_v25 = vsel %vm1851_vm3, 1.0, %v6125_v48  ;;  %v6158_v42 = vld [vmem:[#allocation36_spill] sm:$0xff]  ;;  %vm1837_vm3 = vcmp.eq.s32.totalorder %v5307_v57, %v4548_v46 }
 0x3c1   :  { %4192 = vset.pattern.permute.xlu2 %v4409_v13  ;;  %4191 = vset.pattern.permute.xlu1 %v4386_v7  ;;  %v2619_v50 = vpack.c.bf16 %v3954_v25, %v3954_v25  ;;  %vm1841_vm13 = vcmp.eq.s32.totalorder %v6158_v42, %v4548_v46 }
 0x3c2   :  { %v2741_v29 = vunpack.c.l.b16 %v5321_v63 }
 0x3c3   :  { %v5303_v61 = vpop.permute.xlu2 %979  ;;  %v3310_v22 = vunpack.c.l.b16 %v2619_v50 }
 0x3c4   :  { %3247 = vmatpush.bf16.msrb.mxu3 %v3209_v60  ;;  %v2743_v33 = vpack.c.b16 %v2741_v29, %v2741_v29  ;;  %vm1843_vm11 = vcmp.eq.s32.totalorder %v5303_v61, %v4548_v46 }
 0x3c5   :  { %v3946_v40 = vsel %vm1843_vm11, 1.0, %v6125_v48 }
 0x3c6   :  { %2851 = vmatmul.bf16.vlgmr.msra.gmra.mxu0 %v2743_v33 }
 0x3c8   :  { %3248 = vmatpush.bf16.msrb.mxu3 %v3208_v11 }
 0x3c9   :  { %1070 = vperm.xlu2 %4192, %v6152_v53   ;;  %1064 = vperm.xlu1 %4191, %v6152_v53  }
 0x3cb   :  { %v5323_v24 = vpop.permute.xlu1 %955 }
 0x3cc   :  { %3249 = vmatpush.bf16.msrb.mxu3 %v3207_v54  ;;  %vm1839_vm1 = vcmp.eq.s32.totalorder %v5323_v24, %v4548_v46 }
 0x3d0   :  { %3250 = vmatpush.bf16.msrb.mxu3 %v3206_v44  ;;  %v2614_v44 = vpack.c.bf16 %v3949_v51, %v3949_v51 }
 0x3d1   :  { %4194 = vset.pattern.permute.xlu2 %v4492_v27  ;;  %4193 = vset.pattern.permute.xlu1 %v4406_v12 }
 0x3d2   :  { %v3305_v17 = vunpack.c.l.b16 %v2614_v44  ;;  %v3942_v44 = vsel %vm1839_vm1, 1.0, %v6125_v48 }
 0x3d3   :  { %v992_v28 = vpop.permute.xlu2 %991 }
 0x3d4   :  { %vm1845_vm8 = vcmp.eq.s32.totalorder %v992_v28, %v4548_v46 }
 0x3d5   :  { %v3948_v52 = vsel %vm1845_vm8, 1.0, %v6125_v48 }
 0x3d6   :  { %v2613_v29 = vpack.c.bf16 %v3948_v52, %v3948_v52 }
 0x3d9   :  { %1082 = vperm.xlu2 %4194, %v6152_v53   ;;  %1076 = vperm.xlu1 %4193, %v6152_v53  }
 0x3db   :  { %v974_v56 = vpop.permute.xlu1 %973 }
 0x3dc   :  { %vm1842_vm12 = vcmp.eq.s32.totalorder %v974_v56, %v4548_v46 }
 0x3dd   :  { %v3945_v56 = vsel %vm1842_vm12, 1.0, %v6125_v48 }
 0x3e1   :  { %4197 = vset.pattern.permute.xlu2 %v4439_v19  ;;  %4196 = vset.pattern.permute.xlu1 %v4421_v15 }
 0x3e3   :  { %v1010_v31 = vpop.permute.xlu2 %1009 }
 0x3e4   :  { %vm1848_vm5 = vcmp.eq.s32.totalorder %v1010_v31, %v4548_v46 }
 0x3e5   :  { %v3951_v11 = vsel %vm1848_vm5, 1.0, %v6125_v48 }
 0x3e6   :  { %v2616_v54 = vpack.c.bf16 %v3951_v11, %v3951_v11  ;;  %v3941_v11 = vsel %vm1838_vm0, 1.0, %v6125_v48 }
 0x3e9   :  { %1100 = vperm.xlu2 %4197, %v6152_v53   ;;  %1094 = vperm.xlu1 %4196, %v6152_v53  }
 0x3eb   :  { %v986_v14 = vpop.permute.xlu1 %985 }
 0x3ec   :  { %vm1844_vm9 = vcmp.eq.s32.totalorder %v986_v14, %v4548_v46 }
 0x3ed   :  { %v3947_v31 = vsel %vm1844_vm9, 1.0, %v6125_v48 }
 0x3ee   :  { %v2612_v33 = vpack.c.bf16 %v3947_v31, %v3947_v31  ;;  %v2607_v31 = vpack.c.bf16 %v3942_v44, %v3942_v44  ;;  %v6161_v44 = vld [vmem:[#allocation42_spill] sm:$0xff] }
 0x3ef   :  { %vm1866_vm6 = vcmp.eq.s32.totalorder %v6161_v44, %v4548_v46 }
 0x3f1   :  { %4199 = vset.pattern.permute.xlu2 %v6146_v23  ;;  %4198 = vset.pattern.permute.xlu1 %v4436_v18 }
 0x3f3   :  { %v1022_v30 = vpop.permute.xlu2 %1021 }
 0x3f4   :  { %vm1850_vm4 = vcmp.eq.s32.totalorder %v1022_v30, %v4548_v46  ;;  %v3944_v30 = vsel %vm1841_vm13, 1.0, %v6125_v48 }
 0x3f5   :  { %v3953_v39 = vsel %vm1850_vm4, 1.0, %v6125_v48  ;;  %v2609_v21 = vpack.c.bf16 %v3944_v30, %v3944_v30 }
 0x3f6   :  { %v2618_v60 = vpack.c.bf16 %v3953_v39, %v3953_v39  ;;  %v2611_v39 = vpack.c.bf16 %v3946_v40, %v3946_v40  ;;  %v3940_v40 = vsel %vm1837_vm3, 1.0, %v6125_v48 }
 0x3f8   :  { %v3309_v0 = vunpack.c.l.b16 %v2618_v60  ;;  %v3304_v60 = vunpack.c.l.b16 %v2613_v29  ;;  %v3302_v51 = vunpack.c.l.b16 %v2611_v39 }
 0x3f9   :  { %1112 = vperm.xlu2 %4199, %v6152_v53   ;;  %1106 = vperm.xlu1 %4198, %v6152_v53  }
 0x3fa   :  { %v3334_v38 = vpack.c.b16 %v3310_v22, %v3309_v0  ;;  %v2610_v22 = vpack.c.bf16 %v3945_v56, %v3945_v56  ;;  %v3303_v0 = vunpack.c.l.b16 %v2612_v33  ;;  %v2605_v33 = vpack.c.bf16 %v3940_v40, %v3940_v40 }
 0x3fb   :  { %v1004_v47 = vpop.permute.xlu1 %1003 }
 0x3fc   :  { %3359 = vmatpush.bf16.msra.mxu0 %v3334_v38  ;;  %vm1847_vm7 = vcmp.eq.s32.totalorder %v1004_v47, %v4548_v46  ;;  %v6159_v47 = vld [vmem:[#allocation34_spill] sm:$0xff]  ;;  %v3296_v41 = vunpack.c.l.b16 %v2605_v33 }
 0x3fd   :  { %v3950_v49 = vsel %vm1847_vm7, 1.0, %v6125_v48  ;;  %vm1836_vm2 = vcmp.eq.s32.totalorder %v6159_v47, %v4548_v46 }
 0x3fe   :  { %v2615_v62 = vpack.c.bf16 %v3950_v49, %v3950_v49  ;;  %v3939_v24 = vsel %vm1836_vm2, 1.0, %v6125_v48 }
 0x3ff   :  { %v2604_v29 = vpack.c.bf16 %v3939_v24, %v3939_v24 }
 0x400   :  { %v3306_v25 = vunpack.c.l.b16 %v2615_v62  ;;  %v3300_v62 = vunpack.c.l.b16 %v2609_v21 }
 0x401   :  { %4201 = vset.pattern.permute.xlu2 %v4363_v1  ;;  %4200 = vset.pattern.permute.xlu1 %v4448_v20  ;;  %v3295_v30 = vunpack.c.l.b16 %v2604_v29  ;;  %v6162_v29 = vld [vmem:[#allocation19_spill] sm:$0xff] }
 0x402   :  { %v3332_v38 = vpack.c.b16 %v3306_v25, %v3305_v17  ;;  %v3298_v25 = vunpack.c.l.b16 %v2607_v31  ;;  %vm1861_vm11 = vcmp.eq.s32.totalorder %v6162_v29, %v4548_v46 }
 0x403   :  { %v1041_v61 = vpop.permute.xlu2 %1040 }
 0x404   :  { %vm1853_vm15 = vcmp.eq.s32.totalorder %v1041_v61, %v4548_v46 }
 0x405   :  { %v3956_v14 = vsel %vm1853_vm15, 1.0, %v6125_v48 }
 0x406   :  { %v2621_v49 = vpack.c.bf16 %v3956_v14, %v3956_v14 }
 0x409   :  { %1131 = vperm.xlu2 %4201, %v6157_v5   ;;  %1124 = vperm.xlu1 %4200, %v6152_v53   ;;  %v3307_v53 = vunpack.c.l.b16 %v2616_v54  ;;  %v3301_v54 = vunpack.c.l.b16 %v2610_v22  ;;  %v3327_v22 = vpack.c.b16 %v3296_v41, %v3295_v30 }
 0x40b   :  { %v1016_v43 = vpop.permute.xlu1 %1015  ;;  %v3330_v17 = vpack.c.b16 %v3302_v51, %v3301_v54 }
 0x40c   :  { %vm1849_vm10 = vcmp.eq.s32.totalorder %v1016_v43, %v4548_v46  ;;  %v3331_v43 = vpack.c.b16 %v3304_v60, %v3303_v0 }
 0x40d   :  { %v3952_v45 = vsel %vm1849_vm10, 1.0, %v6125_v48 }
 0x40e   :  { %v2617_v36 = vpack.c.bf16 %v3952_v45, %v3952_v45 }
 0x410   :  { %v3308_v28 = vunpack.c.l.b16 %v2617_v36  ;;  %v3299_v36 = vunpack.c.l.b16 %v2608_v26 }
 0x411   :  { %4203 = vset.pattern.permute.xlu2 %v4369_v3  ;;  %4202 = vset.pattern.permute.xlu1 %v4372_v4 }
 0x412   :  { %v3333_v50 = vpack.c.b16 %v3308_v28, %v3307_v53  ;;  %v2606_v53 = vpack.c.bf16 %v3941_v11, %v3941_v11  ;;  %v5382_v28 = vunpack.c.l.b16 %v2621_v49  ;;  %v2742_v11 = vunpack.c.h.b16 %v5321_v63  ;;  %v6160_v63 = vld [vmem:[#allocation21_spill] sm:$0xff] }
 0x413   :  { %v5397_v60 = vpop.permute.xlu2 %1052  ;;  %vm1871_vm5 = vcmp.eq.s32.totalorder %v6160_v63, %v4548_v46 }
 0x414   :  { %3360 = vmatpush.bf16.msra.mxu0 %v3333_v50  ;;  %v3297_v57 = vunpack.c.l.b16 %v2606_v53  ;;  %v3329_v50 = vpack.c.b16 %v3300_v62, %v3299_v36  ;;  %v2744_v51 = vpack.c.b16 %v2742_v11, %v2742_v11  ;;  %v3974_v62 = vsel %vm1871_vm5, 1.0, %v6125_v48 }
 0x415   :  { %v2639_v36 = vpack.c.bf16 %v3974_v62, %v3974_v62  ;;  %v6163_v62 = vld [vmem:[#allocation16_spill] sm:$0xff] }
 0x416   :  { %v3328_v39 = vpack.c.b16 %v3298_v25, %v3297_v57  ;;  %2864 = vmatmul.bf16.vlgmr.msra.gmra.mxu1 %v2744_v51  ;;  %vm1856_vm2 = vcmp.eq.s32.totalorder %v6163_v62, %v4548_v46 }
 0x417   :  { %v5439_v57 = vunpack.c.l.b16 %v2639_v36 }
 0x418   :  { %3361 = vmatpush.bf16.msra.mxu0 %v3332_v38 }
 0x419   :  { %1143 = vperm.xlu2 %4203, %v6157_v5   ;;  %1137 = vperm.xlu1 %4202, %v6157_v5  }
 0x41b   :  { %v1035_v45 = vpop.permute.xlu1 %1034 }
 0x41c   :  { %vm1852_vm4 = vcmp.eq.s32.totalorder %v1035_v45, %v4548_v46  ;;  %3362 = vmatpush.bf16.msra.mxu0 %v3331_v43 }
 0x41d   :  { %v3955_v52 = vsel %vm1852_vm4, 1.0, %v6125_v48  ;;  %vm1855_vm4 = vcmp.eq.s32.totalorder %v5397_v60, %v4548_v46 }
 0x41e   :  { %v2620_v42 = vpack.c.bf16 %v3955_v52, %v3955_v52  ;;  %v3958_v60 = vsel %vm1855_vm4, 1.0, %v6125_v48 }
 0x420   :  { %v5385_v61 = vunpack.c.l.b16 %v2620_v42  ;;  %3363 = vmatpush.bf16.msra.mxu0 %v3330_v17 }
 0x421   :  { %4206 = vset.pattern.permute.xlu2 %v4386_v7  ;;  %4205 = vset.pattern.permute.xlu1 %v4366_v2 }
 0x422   :  { %v3335_v56 = vpack.c.b16 %v5382_v28, %v5385_v61 }
 0x423   :  { %v5401_v0 = vpop.permute.xlu2 %1070 }
 0x424   :  { %3364 = vmatpush.bf16.msra.mxu0 %v3329_v50  ;;  %vm1858_vm15 = vcmp.eq.s32.totalorder %v5401_v0, %v4548_v46 }
 0x425   :  { %v3961_v36 = vsel %vm1858_vm15, 1.0, %v6125_v48 }
 0x428   :  { %3365 = vmatpush.bf16.msra.mxu0 %v3328_v39 }
 0x429   :  { %1161 = vperm.xlu2 %4206, %v6157_v5   ;;  %1155 = vperm.xlu1 %4205, %v6157_v5  }
 0x42b   :  { %v5407_v14 = vpop.permute.xlu1 %1046 }
 0x42c   :  { %3366 = vmatpush.bf16.msra.mxu0 %v3327_v22  ;;  %vm1854_vm5 = vcmp.eq.s32.totalorder %v5407_v14, %v4548_v46 }
 0x431   :  { %4208 = vset.pattern.permute.xlu2 %v4406_v12  ;;  %4207 = vset.pattern.permute.xlu1 %v4409_v13 }
 0x433   :  { %v1083_v38 = vpop.permute.xlu2 %1082 }
 0x434   :  { %vm1860_vm14 = vcmp.eq.s32.totalorder %v1083_v38, %v4548_v46 }
 0x435   :  { %v3963_v51 = vsel %vm1860_vm14, 1.0, %v6125_v48 }
 0x439   :  { %1173 = vperm.xlu2 %4208, %v6157_v5   ;;  %1167 = vperm.xlu1 %4207, %v6157_v5  }
 0x43b   :  { %v5411_v21 = vpop.permute.xlu1 %1064 }
 0x43c   :  { %vm1857_vm3 = vcmp.eq.s32.totalorder %v5411_v21, %v4548_v46 }
 0x441   :  { %4210 = vset.pattern.permute.xlu2 %v4421_v15  ;;  %4209 = vset.pattern.permute.xlu1 %v4424_v16 }
 0x443   :  { %v1101_v47 = vpop.permute.xlu2 %1100 }
 0x444   :  { %vm1863_vm10 = vcmp.eq.s32.totalorder %v1101_v47, %v4548_v46 }
 0x445   :  { %v3966_v30 = vsel %vm1863_vm10, 1.0, %v6125_v48 }
 0x449   :  { %1191 = vperm.xlu2 %4210, %v6157_v5   ;;  %1185 = vperm.xlu1 %4209, %v6157_v5  }
 0x44b   :  { %v5416_v54 = vpop.permute.xlu1 %1076 }
 0x44c   :  { %vm1859_vm0 = vcmp.eq.s32.totalorder %v5416_v54, %v4548_v46 }
 0x44d   :  { %v3962_v0 = vsel %vm1859_vm0, 1.0, %v6125_v48  ;;  %vm1876_vm0 = vcmp.eq.s32.totalorder %v4947_v10, %v4548_v46 }
 0x44e   :  { %v2627_v21 = vpack.c.bf16 %v3962_v0, %v3962_v0 }
 0x451   :  { %4212 = vset.pattern.permute.xlu2 %v4436_v18  ;;  %4211 = vset.pattern.permute.xlu1 %v4439_v19 }
 0x453   :  { %v1113_v26 = vpop.permute.xlu2 %1112 }
 0x454   :  { %vm1865_vm8 = vcmp.eq.s32.totalorder %v1113_v26, %v4548_v46  ;;  %v3964_v26 = vsel %vm1861_vm11, 1.0, %v6125_v48 }
 0x455   :  { %v3968_v31 = vsel %vm1865_vm8, 1.0, %v6125_v48 }
 0x456   :  { %v2633_v25 = vpack.c.bf16 %v3968_v31, %v3968_v31 }
 0x458   :  { %v3324_v63 = vunpack.c.l.b16 %v2633_v25 }
 0x459   :  { %1203 = vperm.xlu2 %4212, %v6157_v5   ;;  %1197 = vperm.xlu1 %4211, %v6157_v5  }
 0x45b   :  { %v1095_v43 = vpop.permute.xlu1 %1094 }
 0x45c   :  { %vm1862_vm12 = vcmp.eq.s32.totalorder %v1095_v43, %v4548_v46  ;;  %v2631_v43 = vpack.c.bf16 %v3966_v30, %v3966_v30 }
 0x45d   :  { %v3965_v47 = vsel %vm1862_vm12, 1.0, %v6125_v48 }
 0x45e   :  { %v2630_v38 = vpack.c.bf16 %v3965_v47, %v3965_v47 }
 0x460   :  { %v3321_v31 = vunpack.c.l.b16 %v2630_v38  ;;  %v3957_v38 = vsel %vm1854_vm5, 1.0, %v6125_v48 }
 0x461   :  { %4215 = vset.pattern.permute.xlu2 %v4448_v20  ;;  %4214 = vset.pattern.permute.xlu1 %v6140_v34  ;;  %v2622_v62 = vpack.c.bf16 %v3957_v38, %v3957_v38 }
 0x463   :  { %v1132_v49 = vpop.permute.xlu2 %1131 }
 0x464   :  { %vm1868_vm1 = vcmp.eq.s32.totalorder %v1132_v49, %v4548_v46 }
 0x465   :  { %v3971_v54 = vsel %vm1868_vm1, 1.0, %v6125_v48 }
 0x466   :  { %v2636_v25 = vpack.c.bf16 %v3971_v54, %v3971_v54 }
 0x469   :  { %1221 = vperm.xlu2 %4215, %v6157_v5   ;;  %1215 = vperm.xlu1 %4214, %v6157_v5   ;;  %v3969_v5 = vsel %vm1866_vm6, 1.0, %v6125_v48 }
 0x46a   :  { %v2634_v52 = vpack.c.bf16 %v3969_v5, %v3969_v5  ;;  %v2629_v5 = vpack.c.bf16 %v3964_v26, %v3964_v26  ;;  %v3318_v26 = vunpack.c.l.b16 %v2627_v21 }
 0x46b   :  { %v1107_v45 = vpop.permute.xlu1 %1106 }
 0x46c   :  { %vm1864_vm9 = vcmp.eq.s32.totalorder %v1107_v45, %v4548_v46  ;;  %v3325_v33 = vunpack.c.l.b16 %v2634_v52  ;;  %v3322_v52 = vunpack.c.l.b16 %v2631_v43  ;;  %v3320_v49 = vunpack.c.l.b16 %v2629_v5 }
 0x46d   :  { %v3967_v17 = vsel %vm1864_vm9, 1.0, %v6125_v48 }
 0x46e   :  { %v2632_v41 = vpack.c.bf16 %v3967_v17, %v3967_v17  ;;  %v3959_v17 = vsel %vm1856_vm2, 1.0, %v6125_v48 }
 0x470   :  { %v3323_v44 = vunpack.c.l.b16 %v2632_v41  ;;  %v2624_v41 = vpack.c.bf16 %v3959_v17, %v3959_v17 }
 0x471   :  { %4217 = vset.pattern.permute.xlu2 %v4372_v4  ;;  %4216 = vset.pattern.permute.xlu1 %v4363_v1 }
 0x472   :  { %v3315_v14 = vunpack.c.l.b16 %v2624_v41 }
 0x473   :  { %v1144_v24 = vpop.permute.xlu2 %1143 }
 0x474   :  { %vm1870_vm7 = vcmp.eq.s32.totalorder %v1144_v24, %v4548_v46 }
 0x475   :  { %v3973_v53 = vsel %vm1870_vm7, 1.0, %v6125_v48  ;;  %vm63_vm7 = vcmask 1041409  }
 0x476   :  { %v2638_v42 = vpack.c.bf16 %v3973_v53, %v3973_v53  ;;  %v2628_v53 = vpack.c.bf16 %v3963_v51, %v3963_v51  ;;  %v5478_v51 = vunpack.c.l.b16 %v2636_v25  ;;  %v64_v61 = vsel %vm63_vm7, %v5311_v55, %v5309_v6 }
 0x478   :  { %v5446_v22 = vunpack.c.l.b16 %v2638_v42  ;;  %v3341_v42 = vpack.c.b16 %v3324_v63, %v3323_v44  ;;  %v3319_v29 = vunpack.c.l.b16 %v2628_v53 }
 0x479   :  { %1234 = vperm.xlu2 %4217, %v4510_v32   ;;  %1228 = vperm.xlu1 %4216, %v4510_v32  }
 0x47a   :  { %v3457_v24 = vpack.c.b16 %v5439_v57, %v5446_v22  ;;  %v3339_v63 = vpack.c.b16 %v3320_v49, %v3319_v29  ;;  %v4284_v49 = vld [vmem:[#allocation4] sm:$0xff] }
 0x47b   :  { %v1125_v40 = vpop.permute.xlu1 %1124  ;;  %v5502_v28 = vperm.slane %v4284_v49, 7 }
 0x47c   :  { %vm1867_vm13 = vcmp.eq.s32.totalorder %v1125_v40, %v4548_v46  ;;  %v2626_v40 = vpack.c.bf16 %v3961_v36, %v3961_v36 }
 0x47d   :  { %v3970_v50 = vsel %vm1867_vm13, 1.0, %v6125_v48  ;;  %1531 = vperm.xlu0 %4274, %v5502_v28  }
 0x47e   :  { %v2635_v39 = vpack.c.bf16 %v3970_v50, %v3970_v50  ;;  %v3340_v50 = vpack.c.b16 %v3322_v52, %v3321_v31  ;;  %v3317_v47 = vunpack.c.l.b16 %v2626_v40  ;;  %v3313_v31 = vunpack.c.l.b16 %v2622_v62 }
 0x480   :  { %v3326_v11 = vunpack.c.l.b16 %v2635_v39  ;;  %v3338_v53 = vpack.c.b16 %v3318_v26, %v3317_v47  ;;  %v6164_v47 = vld [vmem:[#allocation18_spill] sm:$0xff] }
 0x481   :  { %4219 = vset.pattern.permute.xlu2 %v4366_v2  ;;  %4218 = vset.pattern.permute.xlu1 %v4389_v8 }
 0x482   :  { %v3342_v45 = vpack.c.b16 %v3326_v11, %v3325_v33  ;;  %v3960_v33 = vsel %vm1857_vm3, 1.0, %v6125_v48 }
 0x483   :  { %v2625_v39 = vpack.c.bf16 %v3960_v33, %v3960_v33  ;;  %v5496_v54 = vpop.permute.xlu2 %1161 }
 0x484   :  { %3372 = vmatpush.bf16.msra.mxu1 %v3342_v45  ;;  %v2623_v45 = vpack.c.bf16 %v3958_v60, %v3958_v60  ;;  %vm1873_vm5 = vcmp.eq.s32.totalorder %v5496_v54, %v4548_v46 }
 0x485   :  { %v3316_v5 = vunpack.c.l.b16 %v2625_v39  ;;  %4277 = vset.pattern.permute.xlu0 %v4372_v4 }
 0x486   :  { %v3314_v52 = vunpack.c.l.b16 %v2623_v45 }
 0x488   :  { %3373 = vmatpush.bf16.msra.mxu1 %v3341_v42  ;;  %v3337_v42 = vpack.c.b16 %v3316_v5, %v3315_v14  ;;  %v3336_v0 = vpack.c.b16 %v3314_v52, %v3313_v31 }
 0x489   :  { %1252 = vperm.xlu2 %4219, %v4510_v32   ;;  %1246 = vperm.xlu1 %4218, %v4510_v32  }
 0x48b   :  { %v1138_v30 = vpop.permute.xlu1 %1137 }
 0x48c   :  { %vm1869_vm6 = vcmp.eq.s32.totalorder %v1138_v30, %v4548_v46  ;;  %3374 = vmatpush.bf16.msra.mxu1 %v3340_v50 }
 0x48d   :  { %v3972_v11 = vsel %vm1869_vm6, 1.0, %v6125_v48  ;;  %1331 = vperm.xlu0 %4277, %v6164_v47  }
 0x48e   :  { %v2637_v43 = vpack.c.bf16 %v3972_v11, %v3972_v11 }
 0x490   :  { %v5481_v44 = vunpack.c.l.b16 %v2637_v43  ;;  %3375 = vmatpush.bf16.msra.mxu1 %v3339_v63  ;;  %v6165_v63 = vld [vmem:[#allocation27_spill] sm:$0xff] }
 0x491   :  { %4221 = vset.pattern.permute.xlu2 %v4409_v13  ;;  %4220 = vset.pattern.permute.xlu1 %v4386_v7  ;;  %vm1881_vm11 = vcmp.eq.s32.totalorder %v6165_v63, %v4548_v46 }
 0x492   :  { %v3456_v36 = vpack.c.b16 %v5481_v44, %v5478_v51  ;;  %v3984_v14 = vsel %vm1881_vm11, 1.0, %v6125_v48 }
 0x493   :  { %v5500_v17 = vpop.permute.xlu2 %1173 }
 0x494   :  { %3376 = vmatpush.bf16.msra.mxu1 %v3338_v53  ;;  %v2649_v53 = vpack.c.bf16 %v3984_v14, %v3984_v14  ;;  %vm1875_vm2 = vcmp.eq.s32.totalorder %v5500_v17, %v4548_v46  ;;  %v3976_v14 = vsel %vm1873_vm5, 1.0, %v6125_v48 }
 0x495   :  { %1525 = vperm.xlu0 %4277, %v5502_v28   ;;  %v3978_v17 = vsel %vm1875_vm2, 1.0, %v6125_v48 }
 0x496   :  { %v2643_v54 = vpack.c.bf16 %v3978_v17, %v3978_v17 }
 0x498   :  { %3377 = vmatpush.bf16.msra.mxu1 %v3337_v42 }
 0x499   :  { %1264 = vperm.xlu2 %4221, %v4510_v32   ;;  %1258 = vperm.xlu1 %4220, %v4510_v32  }
 0x49b   :  { %v5509_v33 = vpop.permute.xlu1 %1155 }
 0x49c   :  { %3378 = vmatpush.bf16.msra.mxu1 %v3336_v0  ;;  %vm1872_vm6 = vcmp.eq.s32.totalorder %v5509_v33, %v4548_v46 }
 0x49d   :  { %4283 = vset.pattern.permute.xlu0 %v4448_v20 }
 0x4a0   :  { %3379 = vmatpush.bf16.msra.mxu1 %v3335_v56  ;;  %v65_v56 = vrot.slane %v64_v61, 1 }
 0x4a1   :  { %4223 = vset.pattern.permute.xlu2 %v4424_v16  ;;  %4222 = vset.pattern.permute.xlu1 %v4492_v27 }
 0x4a2   :  { %v86_v40 = vperm.slane %v65_v56, 0  ;;  %v87_v29 = vperm.slane %v65_v56, 1  ;;  %v3437_v56 = vunpack.c.l.b16 %v2649_v53 }
 0x4a3   :  { %v1192_v21 = vpop.permute.xlu2 %1191 }
 0x4a4   :  { %vm102_vm8 = vcmp.eq.s32.totalorder %v86_v40, %v4363_v1  ;;  %vm103_vm9 = vcmp.eq.s32.totalorder %v87_v29, %v4363_v1  ;;  %vm1878_vm13 = vcmp.eq.s32.totalorder %v1192_v21, %v4548_v46  ;;  %v3979_v40 = vsel %vm1876_vm0, 1.0, %v6125_v48 }
 0x4a5   :  { %v3797_v25 = vsel %vm102_vm8, 1.0, %v6125_v48  ;;  %v3798_v55 = vsel %vm103_vm9, 1.0, %v6125_v48  ;;  %v3981_v0 = vsel %vm1878_vm13, 1.0, %v6125_v48  ;;  %vm1891_vm0 = vcmp.eq.s32.totalorder %v4992_v37, %v4548_v46 }
 0x4a6   :  { %v5515_v50 = vpack.c.bf16 %v3798_v55, %v3797_v25  ;;  %v2646_v29 = vpack.c.bf16 %v3981_v0, %v3981_v0  ;;  %v3994_v37 = vsel %vm1891_vm0, 1.0, %v6125_v48 }
 0x4a8   :  { %v2870_v30 = vunpack.c.l.b16 %v5515_v50  ;;  %v2871_v44 = vunpack.c.h.b16 %v5515_v50 }
 0x4a9   :  { %1282 = vperm.xlu2 %4223, %v4510_v32   ;;  %1276 = vperm.xlu1 %4222, %v4510_v32  }
 0x4aa   :  { %v2872_v41 = vpack.c.b16 %v2870_v30, %v2870_v30 }
 0x4ab   :  { %v1168_v60 = vpop.permute.xlu1 %1167 }
 0x4ac   :  { %2980 = vmatmul.bf16.vlgmr.msra.gmra.mxu2 %v2872_v41  ;;  %vm1874_vm3 = vcmp.eq.s32.totalorder %v1168_v60, %v4548_v46  ;;  %v2644_v41 = vpack.c.bf16 %v3979_v40, %v3979_v40 }
 0x4ad   :  { %v3977_v63 = vsel %vm1874_vm3, 1.0, %v6125_v48 }
 0x4ae   :  { %v2642_v33 = vpack.c.bf16 %v3977_v63, %v3977_v63 }
 0x4b1   :  { %4225 = vset.pattern.permute.xlu2 %v4439_v19  ;;  %4224 = vset.pattern.permute.xlu1 %v4421_v15 }
 0x4b3   :  { %v1204_v39 = vpop.permute.xlu2 %1203 }
 0x4b4   :  { %vm1880_vm12 = vcmp.eq.s32.totalorder %v1204_v39, %v4548_v46 }
 0x4b5   :  { %v3983_v62 = vsel %vm1880_vm12, 1.0, %v6125_v48 }
 0x4b9   :  { %1294 = vperm.xlu2 %4225, %v4510_v32   ;;  %1288 = vperm.xlu1 %4224, %v4510_v32  }
 0x4bb   :  { %v1186_v11 = vpop.permute.xlu1 %1185 }
 0x4bc   :  { %vm1877_vm1 = vcmp.eq.s32.totalorder %v1186_v11, %v4548_v46  ;;  %v3434_v11 = vunpack.c.l.b16 %v2646_v29 }
 0x4bd   :  { %v3980_v30 = vsel %vm1877_vm1, 1.0, %v6125_v48 }
 0x4be   :  { %v2645_v39 = vpack.c.bf16 %v3980_v30, %v3980_v30 }
 0x4c1   :  { %4228 = vset.pattern.permute.xlu2 %v6140_v34  ;;  %4227 = vset.pattern.permute.xlu1 %v6146_v23 }
 0x4c3   :  { %v1222_v26 = vpop.permute.xlu2 %1221 }
 0x4c4   :  { %vm1883_vm10 = vcmp.eq.s32.totalorder %v1222_v26, %v4548_v46 }
 0x4c5   :  { %v3986_v38 = vsel %vm1883_vm10, 1.0, %v6125_v48 }
 0x4c6   :  { %v2651_v45 = vpack.c.bf16 %v3986_v38, %v3986_v38  ;;  %v3432_v38 = vunpack.c.l.b16 %v2644_v41 }
 0x4c8   :  { %v3439_v31 = vunpack.c.l.b16 %v2651_v45  ;;  %v3975_v45 = vsel %vm1872_vm6, 1.0, %v6125_v48 }
 0x4c9   :  { %1312 = vperm.xlu2 %4228, %v4510_v32   ;;  %1306 = vperm.xlu1 %4227, %v4510_v32  }
 0x4cb   :  { %v1198_v43 = vpop.permute.xlu1 %1197 }
 0x4cc   :  { %vm1879_vm14 = vcmp.eq.s32.totalorder %v1198_v43, %v4548_v46 }
 0x4cd   :  { %v3982_v49 = vsel %vm1879_vm14, 1.0, %v6125_v48 }
 0x4ce   :  { %v2647_v21 = vpack.c.bf16 %v3982_v49, %v3982_v49  ;;  %v3430_v49 = vunpack.c.l.b16 %v2642_v33 }
 0x4d0   :  { %v3435_v26 = vunpack.c.l.b16 %v2647_v21 }
 0x4d1   :  { %4230 = vset.pattern.permute.xlu2 %v4363_v1  ;;  %4229 = vset.pattern.permute.xlu1 %v4448_v20 }
 0x4d2   :  { %v3461_v53 = vpack.c.b16 %v3435_v26, %v3434_v11 }
 0x4d3   :  { %v1235_v10 = vpop.permute.xlu2 %1234 }
 0x4d4   :  { %vm1885_vm4 = vcmp.eq.s32.totalorder %v1235_v10, %v4548_v46 }
 0x4d5   :  { %v3988_v60 = vsel %vm1885_vm4, 1.0, %v6125_v48 }
 0x4d9   :  { %1325 = vperm.xlu2 %4230, %v6164_v47   ;;  %1318 = vperm.xlu1 %4229, %v4510_v32   ;;  %v2648_v32 = vpack.c.bf16 %v3983_v62, %v3983_v62  ;;  %v3433_v62 = vunpack.c.l.b16 %v2645_v39 }
 0x4db   :  { %v1216_v5 = vpop.permute.xlu1 %1215  ;;  %v3436_v25 = vunpack.c.l.b16 %v2648_v32  ;;  %v2641_v32 = vpack.c.bf16 %v3976_v14, %v3976_v14  ;;  %v3460_v40 = vpack.c.b16 %v3433_v62, %v3432_v38 }
 0x4dc   :  { %vm1882_vm15 = vcmp.eq.s32.totalorder %v1216_v5, %v4548_v46  ;;  %v2653_v5 = vpack.c.bf16 %v3988_v60, %v3988_v60  ;;  %v6166_v60 = vld [vmem:[#allocation23_spill] sm:$0xff] }
 0x4dd   :  { %v3985_v52 = vsel %vm1882_vm15, 1.0, %v6125_v48  ;;  %v3462_v43 = vpack.c.b16 %v3437_v56, %v3436_v25  ;;  %v3429_v29 = vunpack.c.l.b16 %v2641_v32 }
 0x4de   :  { %v2650_v42 = vpack.c.bf16 %v3985_v52, %v3985_v52 }
 0x4e0   :  { %v3438_v61 = vunpack.c.l.b16 %v2650_v42  ;;  %v3431_v42 = vunpack.c.l.b16 %v2643_v54 }
 0x4e1   :  { %4232 = vset.pattern.permute.xlu2 %v4389_v8  ;;  %4231 = vset.pattern.permute.xlu1 %v4369_v3 }
 0x4e2   :  { %v3463_v55 = vpack.c.b16 %v3439_v31, %v3438_v61  ;;  %v2640_v31 = vpack.c.bf16 %v3975_v45, %v3975_v45  ;;  %v5567_v61 = vunpack.c.l.b16 %v2653_v5  ;;  %v3459_v25 = vpack.c.b16 %v3431_v42, %v3430_v49 }
 0x4e3   :  { %v5589_v41 = vpop.permute.xlu2 %1252 }
 0x4e4   :  { %3488 = vmatpush.bf16.msra.mxu2 %v3463_v55  ;;  %v3428_v21 = vunpack.c.l.b16 %v2640_v31  ;;  %vm1888_vm3 = vcmp.eq.s32.totalorder %v5589_v41, %v4548_v46 }
 0x4e6   :  { %v3458_v30 = vpack.c.b16 %v3429_v29, %v3428_v21 }
 0x4e8   :  { %3489 = vmatpush.bf16.msra.mxu2 %v3462_v43 }
 0x4e9   :  { %1343 = vperm.xlu2 %4232, %v6164_v47   ;;  %1337 = vperm.xlu1 %4231, %v6164_v47  }
 0x4eb   :  { %v1229_v52 = vpop.permute.xlu1 %1228 }
 0x4ec   :  { %vm1884_vm7 = vcmp.eq.s32.totalorder %v1229_v52, %v4548_v46  ;;  %3490 = vmatpush.bf16.msra.mxu2 %v3461_v53 }
 0x4ed   :  { %v3987_v0 = vsel %vm1884_vm7, 1.0, %v6125_v48 }
 0x4ee   :  { %v2652_v56 = vpack.c.bf16 %v3987_v0, %v3987_v0 }
 0x4f0   :  { %v5569_v10 = vunpack.c.l.b16 %v2652_v56  ;;  %3491 = vmatpush.bf16.msra.mxu2 %v3460_v40 }
 0x4f1   :  { %4234 = vset.pattern.permute.xlu2 %v4386_v7  ;;  %4233 = vset.pattern.permute.xlu1 %v4366_v2 }
 0x4f2   :  { %v3464_v55 = vpack.c.b16 %v5567_v61, %v5569_v10 }
 0x4f3   :  { %v1265_v22 = vpop.permute.xlu2 %1264 }
 0x4f4   :  { %3492 = vmatpush.bf16.msra.mxu2 %v3459_v25  ;;  %vm1890_vm1 = vcmp.eq.s32.totalorder %v1265_v22, %v4548_v46 }
 0x4f5   :  { %v3993_v22 = vsel %vm1890_vm1, 1.0, %v6125_v48 }
 0x4f6   :  { %v2658_v41 = vpack.c.bf16 %v3993_v22, %v3993_v22 }
 0x4f8   :  { %3493 = vmatpush.bf16.msra.mxu2 %v3458_v30 }
 0x4f9   :  { %1355 = vperm.xlu2 %4234, %v6164_v47   ;;  %1349 = vperm.xlu1 %4233, %v6164_v47  }
 0x4fb   :  { %v5595_v57 = vpop.permute.xlu1 %1246 }
 0x4fc   :  { %3494 = vmatpush.bf16.msra.mxu2 %v3457_v24  ;;  %vm1887_vm6 = vcmp.eq.s32.totalorder %v5595_v57, %v4548_v46 }
 0x500   :  { %3495 = vmatpush.bf16.msra.mxu2 %v3456_v36  ;;  %v2873_v36 = vpack.c.b16 %v2871_v44, %v2871_v44  ;;  %v1241_v44 = vpop.permute.xlu0 %1240 }
 0x501   :  { %4237 = vset.pattern.permute.xlu2 %v4492_v27  ;;  %4236 = vset.pattern.permute.xlu1 %v4406_v12  ;;  %vm1886_vm5 = vcmp.eq.s32.totalorder %v1241_v44, %v4548_v46 }
 0x502   :  { %2993 = vmatmul.bf16.vlgmr.msra.gmra.mxu3 %v2873_v36 }
 0x503   :  { %v1283_v51 = vpop.permute.xlu2 %1282 }
 0x504   :  { %vm1893_vm14 = vcmp.eq.s32.totalorder %v1283_v51, %v4548_v46 }
 0x505   :  { %v3996_v0 = vsel %vm1893_vm14, 1.0, %v6125_v48  ;;  %vm1911_vm14 = vcmp.eq.s32.totalorder %v4876_v58, %v4548_v46 }
 0x506   :  { %v2661_v51 = vpack.c.bf16 %v3996_v0, %v3996_v0 }
 0x509   :  { %1373 = vperm.xlu2 %4237, %v6164_v47   ;;  %1367 = vperm.xlu1 %4236, %v6164_v47  }
 0x50b   :  { %v5599_v24 = vpop.permute.xlu1 %1258 }
 0x50c   :  { %vm1889_vm4 = vcmp.eq.s32.totalorder %v5599_v24, %v4548_v46  ;;  %v3989_v24 = vsel %vm1886_vm5, 1.0, %v6125_v48 }
 0x50d   :  { %v2654_v57 = vpack.c.bf16 %v3989_v24, %v3989_v24 }
 0x50f   :  { %v3442_v22 = vunpack.c.l.b16 %v2654_v57  ;;  %v4014_v57 = vsel %vm1911_vm14, 1.0, %v6125_v48  ;;  %vm69_vm14 = vcmask 1043459  }
 0x511   :  { %4239 = vset.pattern.permute.xlu2 %v4421_v15  ;;  %4238 = vset.pattern.permute.xlu1 %v4424_v16 }
 0x513   :  { %v1295_v39 = vpop.permute.xlu2 %1294 }
 0x514   :  { %vm1895_vm11 = vcmp.eq.s32.totalorder %v1295_v39, %v4548_v46 }
 0x515   :  { %v3998_v52 = vsel %vm1895_vm11, 1.0, %v6125_v48 }
 0x516   :  { %v2663_v56 = vpack.c.bf16 %v3998_v52, %v3998_v52 }
 0x519   :  { %1385 = vperm.xlu2 %4239, %v6164_v47   ;;  %1379 = vperm.xlu1 %4238, %v6164_v47  }
 0x51b   :  { %v1277_v17 = vpop.permute.xlu1 %1276 }
 0x51c   :  { %vm1892_vm15 = vcmp.eq.s32.totalorder %v1277_v17, %v4548_v46  ;;  %v3451_v17 = vunpack.c.l.b16 %v2663_v56 }
 0x51d   :  { %v3995_v25 = vsel %vm1892_vm15, 1.0, %v6125_v48 }
 0x51e   :  { %v2660_v36 = vpack.c.bf16 %v3995_v25, %v3995_v25 }
 0x521   :  { %4241 = vset.pattern.permute.xlu2 %v6146_v23  ;;  %4240 = vset.pattern.permute.xlu1 %v4436_v18 }
 0x523   :  { %v1313_v26 = vpop.permute.xlu2 %1312 }
 0x524   :  { %vm1898_vm8 = vcmp.eq.s32.totalorder %v1313_v26, %v4548_v46 }
 0x525   :  { %v4001_v50 = vsel %vm1898_vm8, 1.0, %v6125_v48  ;;  %vm66_vm8 = vcmask 1042434  }
 0x526   :  { %v2666_v38 = vpack.c.bf16 %v4001_v50, %v4001_v50  ;;  %v3991_v50 = vsel %vm1888_vm3, 1.0, %v6125_v48 }
 0x528   :  { %v3454_v5 = vunpack.c.l.b16 %v2666_v38  ;;  %v3448_v38 = vunpack.c.l.b16 %v2660_v36 }
 0x529   :  { %1403 = vperm.xlu2 %4241, %v6164_v47   ;;  %1397 = vperm.xlu1 %4240, %v6164_v47  }
 0x52b   :  { %v1289_v11 = vpop.permute.xlu1 %1288 }
 0x52c   :  { %vm1894_vm12 = vcmp.eq.s32.totalorder %v1289_v11, %v4548_v46 }
 0x52d   :  { %v3997_v32 = vsel %vm1894_vm12, 1.0, %v6125_v48 }
 0x52e   :  { %v2662_v40 = vpack.c.bf16 %v3997_v32, %v3997_v32 }
 0x530   :  { %v3450_v39 = vunpack.c.l.b16 %v2662_v40 }
 0x531   :  { %4243 = vset.pattern.permute.xlu2 %v4448_v20  ;;  %4242 = vset.pattern.permute.xlu1 %v6140_v34 }
 0x533   :  { %v5610_v63 = vpop.permute.xlu2 %1325 }
 0x539   :  { %1415 = vperm.xlu2 %4243, %v6164_v47   ;;  %1409 = vperm.xlu1 %4242, %v6164_v47   ;;  %v6167_v47 = vld [vmem:[#allocation30_spill] sm:$0xff] }
 0x53a   :  { %vm1896_vm10 = vcmp.eq.s32.totalorder %v6167_v47, %v4548_v46  ;;  %v3449_v47 = vunpack.c.l.b16 %v2661_v51 }
 0x53b   :  { %v1307_v43 = vpop.permute.xlu1 %1306  ;;  %v3999_v54 = vsel %vm1896_vm10, 1.0, %v6125_v48 }
 0x53c   :  { %vm1897_vm9 = vcmp.eq.s32.totalorder %v1307_v43, %v4548_v46  ;;  %v2664_v31 = vpack.c.bf16 %v3999_v54, %v3999_v54  ;;  %v2659_v43 = vpack.c.bf16 %v3994_v37, %v3994_v37  ;;  %v3992_v54 = vsel %vm1889_vm4, 1.0, %v6125_v48 }
 0x53d   :  { %v4000_v14 = vsel %vm1897_vm9, 1.0, %v6125_v48  ;;  %v2657_v32 = vpack.c.bf16 %v3992_v54, %v3992_v54  ;;  %v3468_v0 = vpack.c.b16 %v3449_v47, %v3448_v38  ;;  %v6168_v38 = vld [vmem:[#allocation33_spill] sm:$0xff] }
 0x53e   :  { %v2665_v62 = vpack.c.bf16 %v4000_v14, %v4000_v14  ;;  %v3452_v30 = vunpack.c.l.b16 %v2664_v31 }
 0x540   :  { %v3453_v29 = vunpack.c.l.b16 %v2665_v62  ;;  %v3447_v62 = vunpack.c.l.b16 %v2659_v43 }
 0x541   :  { %4246 = vset.pattern.permute.xlu2 %v4369_v3  ;;  %4245 = vset.pattern.permute.xlu1 %v4372_v4 }
 0x542   :  { %v3470_v11 = vpack.c.b16 %v3453_v29, %v3452_v30 }
 0x543   :  { %v1344_v49 = vpop.permute.xlu2 %1343 }
 0x544   :  { %vm1903_vm2 = vcmp.eq.s32.totalorder %v1344_v49, %v4548_v46  ;;  %v3990_v49 = vsel %vm1887_vm6, 1.0, %v6125_v48 }
 0x545   :  { %v4006_v26 = vsel %vm1903_vm2, 1.0, %v6125_v48  ;;  %v2655_v29 = vpack.c.bf16 %v3990_v49, %v3990_v49  ;;  %v6169_v49 = vld [vmem:[#allocation37_spill] sm:$0xff] }
 0x546   :  { %v2671_v14 = vpack.c.bf16 %v4006_v26, %v4006_v26  ;;  %vm1921_vm1 = vcmp.eq.s32.totalorder %v6169_v49, %v4548_v46 }
 0x547   :  { %v3443_v37 = vunpack.c.l.b16 %v2655_v29 }
 0x548   :  { %v5652_v31 = vunpack.c.l.b16 %v2671_v14 }
 0x549   :  { %1434 = vperm.xlu2 %4246, %v6166_v60   ;;  %1428 = vperm.xlu1 %4245, %v6166_v60   ;;  %v3465_v44 = vpack.c.b16 %v3443_v37, %v3442_v22 }
 0x54b   :  { %v1319_v45 = vpop.permute.xlu1 %1318 }
 0x54c   :  { %vm1899_vm13 = vcmp.eq.s32.totalorder %v1319_v45, %v4548_v46  ;;  %v3469_v45 = vpack.c.b16 %v3451_v17, %v3450_v39  ;;  %v5674_v39 = vld [vmem:[#allocation2] sm:$0xff] }
 0x54d   :  { %v4002_v33 = vsel %vm1899_vm13, 1.0, %v6125_v48  ;;  %v67_v61 = vsel %vm66_vm8, %v5674_v39, %v5309_v6 }
 0x54e   :  { %v2667_v53 = vpack.c.bf16 %v4002_v33, %v4002_v33  ;;  %v68_v10 = vrot.slane %v67_v61, 2 }
 0x550   :  { %v3455_v42 = vunpack.c.l.b16 %v2667_v53  ;;  %v3446_v53 = vunpack.c.l.b16 %v2658_v41 }
 0x551   :  { %4248 = vset.pattern.permute.xlu2 %v4366_v2  ;;  %4247 = vset.pattern.permute.xlu1 %v4389_v8 }
 0x552   :  { %v3471_v21 = vpack.c.b16 %v3455_v42, %v3454_v5  ;;  %v2656_v5 = vpack.c.bf16 %v3991_v50, %v3991_v50  ;;  %v3467_v25 = vpack.c.b16 %v3447_v62, %v3446_v53 }
 0x553   :  { %v5668_v36 = vpop.permute.xlu2 %1355 }
 0x554   :  { %3501 = vmatpush.bf16.msra.mxu3 %v3471_v21  ;;  %v3444_v40 = vunpack.c.l.b16 %v2656_v5  ;;  %v3445_v21 = vunpack.c.l.b16 %v2657_v32  ;;  %vm1905_vm8 = vcmp.eq.s32.totalorder %v5668_v36, %v4548_v46 }
 0x556   :  { %v3466_v51 = vpack.c.b16 %v3445_v21, %v3444_v40 }
 0x558   :  { %3502 = vmatpush.bf16.msra.mxu3 %v3470_v11  ;;  %v89_v11 = vperm.slane %v68_v10, 1 }
 0x559   :  { %1446 = vperm.xlu2 %4248, %v6166_v60   ;;  %1440 = vperm.xlu1 %4247, %v6166_v60  }
 0x55a   :  { %vm105_vm10 = vcmp.eq.s32.totalorder %v89_v11, %v4363_v1 }
 0x55b   :  { %v1338_v33 = vpop.permute.xlu1 %1337  ;;  %v3800_v50 = vsel %vm105_vm10, 1.0, %v6125_v48 }
 0x55c   :  { %vm1902_vm7 = vcmp.eq.s32.totalorder %v1338_v33, %v4548_v46  ;;  %3503 = vmatpush.bf16.msra.mxu3 %v3469_v45 }
 0x55d   :  { %v4005_v52 = vsel %vm1902_vm7, 1.0, %v6125_v48 }
 0x55e   :  { %v2670_v42 = vpack.c.bf16 %v4005_v52, %v4005_v52 }
 0x560   :  { %v5655_v56 = vunpack.c.l.b16 %v2670_v42  ;;  %3504 = vmatpush.bf16.msra.mxu3 %v3468_v0 }
 0x561   :  { %4251 = vset.pattern.permute.xlu2 %v4406_v12  ;;  %4250 = vset.pattern.permute.xlu1 %v4409_v13 }
 0x562   :  { %v3586_v30 = vpack.c.b16 %v5652_v31, %v5655_v56 }
 0x563   :  { %v1374_v17 = vpop.permute.xlu2 %1373 }
 0x564   :  { %3505 = vmatpush.bf16.msra.mxu3 %v3467_v25  ;;  %vm1908_vm2 = vcmp.eq.s32.totalorder %v1374_v17, %v4548_v46 }
 0x565   :  { %v4011_v61 = vsel %vm1908_vm2, 1.0, %v6125_v48 }
 0x568   :  { %3506 = vmatpush.bf16.msra.mxu3 %v3466_v51  ;;  %v4024_v51 = vsel %vm1921_vm1, 1.0, %v6125_v48 }
 0x569   :  { %1464 = vperm.xlu2 %4251, %v6166_v60   ;;  %1458 = vperm.xlu1 %4250, %v6166_v60  }
 0x56b   :  { %v5680_v26 = vpop.permute.xlu1 %1349 }
 0x56c   :  { %3507 = vmatpush.bf16.msra.mxu3 %v3465_v44  ;;  %v2679_v44 = vpack.c.bf16 %v4014_v57, %v4014_v57  ;;  %v4008_v57 = vsel %vm1905_vm8, 1.0, %v6125_v48 }
 0x570   :  { %3508 = vmatpush.bf16.msra.mxu3 %v3464_v55  ;;  %v88_v55 = vperm.slane %v68_v10, 0 }
 0x571   :  { %4253 = vset.pattern.permute.xlu2 %v4424_v16  ;;  %4252 = vset.pattern.permute.xlu1 %v4492_v27 }
 0x572   :  { %vm104_vm9 = vcmp.eq.s32.totalorder %v88_v55, %v4363_v1 }
 0x573   :  { %v1386_v43 = vpop.permute.xlu2 %1385 }
 0x574   :  { %vm1910_vm15 = vcmp.eq.s32.totalorder %v1386_v43, %v4548_v46  ;;  %v6170_v43 = vld [vmem:[#allocation32_spill] sm:$0xff] }
 0x575   :  { %v4013_v37 = vsel %vm1910_vm15, 1.0, %v6125_v48  ;;  %vm1906_vm4 = vcmp.eq.s32.totalorder %v6170_v43, %v4548_v46 }
 0x576   :  { %v2678_v17 = vpack.c.bf16 %v4013_v37, %v4013_v37  ;;  %v4009_v36 = vsel %vm1906_vm4, 1.0, %v6125_v48 }
 0x579   :  { %1476 = vperm.xlu2 %4253, %v6166_v60   ;;  %1470 = vperm.xlu1 %4252, %v6166_v60  }
 0x57b   :  { %v1368_v45 = vpop.permute.xlu1 %1367 }
 0x57c   :  { %vm1907_vm6 = vcmp.eq.s32.totalorder %v1368_v45, %v4548_v46 }
 0x581   :  { %4256 = vset.pattern.permute.xlu2 %v6140_v34  ;;  %4255 = vset.pattern.permute.xlu1 %v4439_v19  ;;  %v3799_v34 = vsel %vm104_vm9, 1.0, %v6125_v48  ;;  %vm1904_vm9 = vcmp.eq.s32.totalorder %v5680_v26, %v4548_v46 }
 0x582   :  { %v5686_v41 = vpack.c.bf16 %v3800_v50, %v3799_v34  ;;  %v5722_v34 = vpop.permute.xlu0 %1531 }
 0x583   :  { %v1404_v54 = vpop.permute.xlu2 %1403 }
 0x584   :  { %v2999_v47 = vunpack.c.l.b16 %v5686_v41  ;;  %vm1913_vm12 = vcmp.eq.s32.totalorder %v1404_v54, %v4548_v46  ;;  %v2689_v54 = vpack.c.bf16 %v4024_v51, %v4024_v51 }
 0x585   :  { %v4016_v32 = vsel %vm1913_vm12, 1.0, %v6125_v48 }
 0x586   :  { %v3001_v14 = vpack.c.b16 %v2999_v47, %v2999_v47  ;;  %v2681_v58 = vpack.c.bf16 %v4016_v32, %v4016_v32 }
 0x588   :  { %3109 = vmatmul.bf16.vlgmr.msrb.gmra.mxu0 %v3001_v14  ;;  %v3566_v10 = vunpack.c.l.b16 %v2681_v58  ;;  %v6171_v14 = vld [vmem:[#allocation35_spill] sm:$0xff] }
 0x589   :  { %1603 = vperm.xlu2 %4256, %v5502_v28   ;;  %1488 = vperm.xlu1 %4255, %v6166_v60   ;;  %vm1916_vm5 = vcmp.eq.s32.totalorder %v6171_v14, %v4548_v46 }
 0x58a   :  { %v4019_v49 = vsel %vm1916_vm5, 1.0, %v6125_v48 }
 0x58b   :  { %v1380_v33 = vpop.permute.xlu1 %1379  ;;  %v2684_v51 = vpack.c.bf16 %v4019_v49, %v4019_v49 }
 0x58c   :  { %vm1909_vm3 = vcmp.eq.s32.totalorder %v1380_v33, %v4548_v46  ;;  %v2676_v33 = vpack.c.bf16 %v4011_v61, %v4011_v61  ;;  %v2673_v61 = vpack.c.bf16 %v4008_v57, %v4008_v57 }
 0x58d   :  { %v4012_v50 = vsel %vm1909_vm3, 1.0, %v6125_v48 }
 0x591   :  { %1700 = vperm.xlu2 %4256, %v6168_v38   ;;  %4257 = vset.pattern.permute.xlu1 %v4448_v20 }
 0x593   :  { %v1416_v62 = vpop.permute.xlu2 %1415 }
 0x594   :  { %vm1915_vm11 = vcmp.eq.s32.totalorder %v1416_v62, %v4548_v46 }
 0x595   :  { %v4018_v5 = vsel %vm1915_vm11, 1.0, %v6125_v48  ;;  %vm1900_vm11 = vcmp.eq.s32.totalorder %v5610_v63, %v4548_v46  ;;  %v3558_v63 = vunpack.c.l.b16 %v2673_v61 }
 0x596   :  { %v2683_v52 = vpack.c.bf16 %v4018_v5, %v4018_v5  ;;  %v3563_v5 = vunpack.c.l.b16 %v2678_v17  ;;  %v4003_v14 = vsel %vm1900_vm11, 1.0, %v6125_v48 }
 0x598   :  { %v3568_v21 = vunpack.c.l.b16 %v2683_v52 }
 0x599   :  { %4260 = vset.pattern.permute.xlu2 %v6146_v23  ;;  %1609 = vperm.xlu1 %4257, %v5502_v28  }
 0x59b   :  { %v1398_v24 = vpop.permute.xlu1 %1397 }
 0x59c   :  { %vm1912_vm13 = vcmp.eq.s32.totalorder %v1398_v24, %v4548_v46  ;;  %v2677_v24 = vpack.c.bf16 %v4012_v50, %v4012_v50  ;;  %v5757_v50 = vunpack.c.l.b16 %v2684_v51 }
 0x59d   :  { %v4015_v42 = vsel %vm1912_vm13, 1.0, %v6125_v48 }
 0x59e   :  { %v2680_v29 = vpack.c.bf16 %v4015_v42, %v4015_v42  ;;  %v4010_v42 = vsel %vm1907_vm6, 1.0, %v6125_v48  ;;  %v3562_v58 = vunpack.c.l.b16 %v2677_v24  ;;  %v2668_v24 = vpack.c.bf16 %v4003_v14, %v4003_v14 }
 0x59f   :  { %v2675_v26 = vpack.c.bf16 %v4010_v42, %v4010_v42  ;;  %v70_v42 = vsel %vm69_vm14, %v5674_v39, %v5309_v6 }
 0x5a0   :  { %v3565_v55 = vunpack.c.l.b16 %v2680_v29  ;;  %v3553_v49 = vunpack.c.l.b16 %v2668_v24 }
 0x5a1   :  { %1597 = vperm.xlu2 %4260, %v5502_v28   ;;  %4259 = vset.pattern.permute.xlu1 %v4436_v18 }
 0x5a2   :  { %v3591_v32 = vpack.c.b16 %v3566_v10, %v3565_v55  ;;  %v3560_v10 = vunpack.c.l.b16 %v2675_v26 }
 0x5a3   :  { %v5701_v53 = vpop.permute.xlu2 %1434 }
 0x5a4   :  { %vm1918_vm13 = vcmp.eq.s32.totalorder %v5701_v53, %v4548_v46 }
 0x5a9   :  { %1694 = vperm.xlu2 %4260, %v6168_v38   ;;  %1591 = vperm.xlu1 %4259, %v5502_v28  }
 0x5ab   :  { %v1410_v0 = vpop.permute.xlu1 %1409 }
 0x5ac   :  { %vm1914_vm0 = vcmp.eq.s32.totalorder %v1410_v0, %v4548_v46  ;;  %v5733_v0 = vunpack.c.l.b16 %v2689_v54 }
 0x5ad   :  { %v4017_v40 = vsel %vm1914_vm0, 1.0, %v6125_v48 }
 0x5ae   :  { %v2682_v25 = vpack.c.bf16 %v4017_v40, %v4017_v40  ;;  %v3561_v40 = vunpack.c.l.b16 %v2676_v33 }
 0x5b0   :  { %v3567_v22 = vunpack.c.l.b16 %v2682_v25  ;;  %v4007_v25 = vsel %vm1904_vm9, 1.0, %v6125_v48 }
 0x5b1   :  { %4263 = vset.pattern.permute.xlu2 %v4421_v15  ;;  %1688 = vperm.xlu1 %4259, %v6168_v38   ;;  %v3564_v15 = vunpack.c.l.b16 %v2679_v44  ;;  %v1332_v44 = vpop.permute.xlu0 %1331  ;;  %v2672_v17 = vpack.c.bf16 %v4007_v25, %v4007_v25 }
 0x5b2   :  { %v3592_v11 = vpack.c.b16 %v3568_v21, %v3567_v22  ;;  %v2674_v22 = vpack.c.bf16 %v4009_v36, %v4009_v36  ;;  %vm1901_vm12 = vcmp.eq.s32.totalorder %v1332_v44, %v4548_v46  ;;  %v71_v36 = vrot.slane %v70_v42, 3 }
 0x5b3   :  { %v1447_v47 = vpop.permute.xlu2 %1446  ;;  %v3590_v29 = vpack.c.b16 %v3564_v15, %v3563_v5  ;;  %v3557_v54 = vunpack.c.l.b16 %v2672_v17 }
 0x5b4   :  { %vm1920_vm7 = vcmp.eq.s32.totalorder %v1447_v47, %v4548_v46  ;;  %3617 = vmatpush.bf16.msrb.mxu0 %v3592_v11  ;;  %v3589_v11 = vpack.c.b16 %v3562_v58, %v3561_v40  ;;  %v3559_v43 = vunpack.c.l.b16 %v2674_v22  ;;  %v90_v53 = vperm.slane %v71_v36, 0 }
 0x5b5   :  { %v4023_v62 = vsel %vm1920_vm7, 1.0, %v6125_v48  ;;  %v91_v26 = vperm.slane %v71_v36, 1 }
 0x5b6   :  { %v2688_v52 = vpack.c.bf16 %v4023_v62, %v4023_v62  ;;  %v3588_v15 = vpack.c.b16 %v3560_v10, %v3559_v43  ;;  %v4004_v62 = vsel %vm1901_vm12, 1.0, %v6125_v48  ;;  %vm106_vm0 = vcmp.eq.s32.totalorder %v90_v53, %v4363_v1 }
 0x5b7   :  { %v2669_v5 = vpack.c.bf16 %v4004_v62, %v4004_v62  ;;  %vm107_vm1 = vcmp.eq.s32.totalorder %v91_v26, %v4363_v1 }
 0x5b8   :  { %v5737_v45 = vunpack.c.l.b16 %v2688_v52  ;;  %3618 = vmatpush.bf16.msrb.mxu0 %v3591_v32  ;;  %v3587_v52 = vpack.c.b16 %v3558_v63, %v3557_v54  ;;  %v4021_v32 = vsel %vm1918_vm13, 1.0, %v6125_v48 }
 0x5b9   :  { %1579 = vperm.xlu2 %4263, %v5502_v28   ;;  %4262 = vset.pattern.permute.xlu1 %v4448_v20  ;;  %v3554_v57 = vunpack.c.l.b16 %v2669_v5  ;;  %v2686_v40 = vpack.c.bf16 %v4021_v32, %v4021_v32 }
 0x5ba   :  { %v3595_v21 = vpack.c.b16 %v5733_v0, %v5737_v45 }
 0x5bb   :  { %v1429_v37 = vpop.permute.xlu1 %1428  ;;  %v5784_v25 = vunpack.c.l.b16 %v2686_v40  ;;  %v3585_v22 = vpack.c.b16 %v3554_v57, %v3553_v49 }
 0x5bc   :  { %vm1917_vm10 = vcmp.eq.s32.totalorder %v1429_v37, %v4548_v46  ;;  %3619 = vmatpush.bf16.msrb.mxu0 %v3590_v29 }
 0x5bd   :  { %v4020_v20 = vsel %vm1917_vm10, 1.0, %v6125_v48 }
 0x5be   :  { %v2685_v55 = vpack.c.bf16 %v4020_v20, %v4020_v20 }
 0x5c0   :  { %v5760_v47 = vunpack.c.l.b16 %v2685_v55  ;;  %3620 = vmatpush.bf16.msrb.mxu0 %v3589_v11 }
 0x5c1   :  { %1676 = vperm.xlu2 %4263, %v6168_v38   ;;  %1512 = vperm.xlu1 %4262, %v6166_v60  }
 0x5c2   :  { %v3593_v33 = vpack.c.b16 %v5760_v47, %v5757_v50 }
 0x5c3   :  { %v1465_v44 = vpop.permute.xlu2 %1464 }
 0x5c4   :  { %3621 = vmatpush.bf16.msrb.mxu0 %v3588_v15  ;;  %vm1923_vm2 = vcmp.eq.s32.totalorder %v1465_v44, %v4548_v46  ;;  %v6172_v15 = vld [vmem:[#allocation41_spill] sm:$0xff] }
 0x5c5   :  { %v4026_v20 = vsel %vm1923_vm2, 1.0, %v6125_v48  ;;  %vm1963_vm5 = vcmp.eq.s32.totalorder %v6172_v15, %v4548_v46 }
 0x5c6   :  { %v2691_v10 = vpack.c.bf16 %v4026_v20, %v4026_v20  ;;  %v4066_v24 = vsel %vm1963_vm5, 1.0, %v6125_v48 }
 0x5c7   :  { %v2731_v32 = vpack.c.bf16 %v4066_v24, %v4066_v24 }
 0x5c8   :  { %3622 = vmatpush.bf16.msrb.mxu0 %v3587_v52  ;;  %v5798_v43 = vunpack.c.l.b16 %v2691_v10 }
 0x5c9   :  { %4267 = vset.pattern.permute.xlu2 %v6146_v23  ;;  %4264 = vset.pattern.permute.xlu1 %v4439_v19  ;;  %v3801_v23 = vsel %vm106_vm0, 1.0, %v6125_v48  ;;  %v3802_v19 = vsel %vm107_vm1, 1.0, %v6125_v48  ;;  %v3713_v53 = vunpack.c.l.b16 %v2731_v32  ;;  %vm1959_vm0 = vcmp.eq.s32.totalorder %v4902_v9, %v4548_v46 }
 0x5ca   :  { %v151_v51 = vpack.c.bf16 %v3802_v19, %v3801_v23  ;;  %v6173_v19 = vld [vmem:[#allocation39_spill] sm:$0xff] }
 0x5cb   :  { %v1441_v58 = vpop.permute.xlu1 %1440  ;;  %vm1926_vm8 = vcmp.eq.s32.totalorder %v6173_v19, %v4548_v46 }
 0x5cc   :  { %vm1919_vm15 = vcmp.eq.s32.totalorder %v1441_v58, %v4548_v46  ;;  %3623 = vmatpush.bf16.msrb.mxu0 %v3586_v30  ;;  %v3129_v31 = vunpack.c.h.b16 %v151_v51 }
 0x5cd   :  { %v4022_v29 = vsel %vm1919_vm15, 1.0, %v6125_v48 }
 0x5ce   :  { %v2687_v37 = vpack.c.bf16 %v4022_v29, %v4022_v29  ;;  %v3131_v56 = vpack.c.b16 %v3129_v31, %v3129_v31 }
 0x5d0   :  { %v5786_v61 = vunpack.c.l.b16 %v2687_v37  ;;  %3624 = vmatpush.bf16.msrb.mxu0 %v3585_v22  ;;  %3251 = vmatmul.bf16.vlgmr.msrb.gmra.mxu3 %v3131_v56  ;;  %v4029_v37 = vsel %vm1926_vm8, 1.0, %v6125_v48 }
 0x5d1   :  { %1500 = vperm.xlu2 %4267, %v6166_v60   ;;  %1585 = vperm.xlu1 %4264, %v5502_v28  }
 0x5d2   :  { %v3594_v30 = vpack.c.b16 %v5786_v61, %v5784_v25 }
 0x5d3   :  { %v1477_v17 = vpop.permute.xlu2 %1476 }
 0x5d4   :  { %vm1925_vm4 = vcmp.eq.s32.totalorder %v1477_v17, %v4548_v46 }
 0x5d5   :  { %v4028_v62 = vsel %vm1925_vm4, 1.0, %v6125_v48 }
 0x5d6   :  { %v2693_v5 = vpack.c.bf16 %v4028_v62, %v4028_v62 }
 0x5d8   :  { %v5817_v49 = vunpack.c.l.b16 %v2693_v5 }
 0x5d9   :  { %4269 = vset.pattern.permute.xlu2 %v4424_v16  ;;  %4266 = vset.pattern.permute.xlu1 %v4436_v18 }
 0x5db   :  { %v1459_v55 = vpop.permute.xlu1 %1458 }
 0x5dc   :  { %vm1922_vm3 = vcmp.eq.s32.totalorder %v1459_v55, %v4548_v46 }
 0x5dd   :  { %v4025_v11 = vsel %vm1922_vm3, 1.0, %v6125_v48 }
 0x5de   :  { %v2690_v14 = vpack.c.bf16 %v4025_v11, %v4025_v11 }
 0x5e0   :  { %v5800_v63 = vunpack.c.l.b16 %v2690_v14 }
 0x5e1   :  { %1573 = vperm.xlu2 %4269, %v5502_v28   ;;  %1494 = vperm.xlu1 %4266, %v6166_v60  }
 0x5e2   :  { %v3596_v54 = vpack.c.b16 %v5798_v43, %v5800_v63 }
 0x5e3   :  { %v1604_v18 = vpop.permute.xlu2 %1603 }
 0x5e4   :  { %vm1946_vm10 = vcmp.eq.s32.totalorder %v1604_v18, %v4548_v46 }
 0x5e9   :  { %4272 = vset.pattern.permute.xlu2 %v4409_v13  ;;  %4268 = vset.pattern.permute.xlu1 %v4492_v27  ;;  %v3128_v27 = vunpack.c.l.b16 %v151_v51  ;;  %v2694_v51 = vpack.c.bf16 %v4029_v37, %v4029_v37 }
 0x5eb   :  { %v1701_v52 = vpop.permute.xlu2 %1700  ;;  %v1471_v60 = vpop.permute.xlu1 %1470  ;;  %v3130_v29 = vpack.c.b16 %v3128_v27, %v3128_v27  ;;  %v5832_v20 = vunpack.c.l.b16 %v2694_v51 }
 0x5ec   :  { %vm1962_vm6 = vcmp.eq.s32.totalorder %v1701_v52, %v4548_v46  ;;  %vm1924_vm7 = vcmp.eq.s32.totalorder %v1471_v60, %v4548_v46  ;;  %v3000_v52 = vunpack.c.h.b16 %v5686_v41 }
 0x5ed   :  { %v4065_v42 = vsel %vm1962_vm6, 1.0, %v6125_v48  ;;  %v4027_v36 = vsel %vm1924_vm7, 1.0, %v6125_v48  ;;  %3238 = vmatmul.bf16.vlgmr.msrb.gmra.mxu2 %v3130_v29  ;;  %v4062_v29 = vsel %vm1959_vm0, 1.0, %v6125_v48  ;;  %vm75_vm0 = vcmask 1045509  }
 0x5ee   :  { %v2730_v57 = vpack.c.bf16 %v4065_v42, %v4065_v42  ;;  %v2692_v40 = vpack.c.bf16 %v4027_v36, %v4027_v36  ;;  %v3002_v32 = vpack.c.b16 %v3000_v52, %v3000_v52 }
 0x5f0   :  { %v3712_v13 = vunpack.c.l.b16 %v2730_v57  ;;  %v5819_v26 = vunpack.c.l.b16 %v2692_v40  ;;  %3122 = vmatmul.bf16.vlgmr.msrb.gmra.mxu1 %v3002_v32 }
 0x5f1   :  { %1555 = vperm.xlu2 %4272, %v5502_v28   ;;  %1567 = vperm.xlu1 %4268, %v5502_v28  }
 0x5f2   :  { %v3729_v58 = vpack.c.b16 %v3713_v53, %v3712_v13  ;;  %v3597_v23 = vpack.c.b16 %v5817_v49, %v5819_v26 }
 0x5f4   :  { %3759 = vmatpush.bf16.msrb.mxu3 %v3729_v58 }
 0x5f9   :  { %1652 = vperm.xlu2 %4272, %v6168_v38   ;;  %4271 = vset.pattern.permute.xlu1 %v4424_v16  ;;  %v4049_v16 = vsel %vm1946_vm10, 1.0, %v6125_v48  ;;  %vm1956_vm10 = vcmp.eq.s32.totalorder %v4953_v59, %v4548_v46 }
 0x5fa   :  { %v2714_v11 = vpack.c.bf16 %v4049_v16, %v4049_v16  ;;  %v4059_v49 = vsel %vm1956_vm10, 1.0, %v6125_v48 }
 0x5fb   :  { %v1489_v22 = vpop.permute.xlu1 %1488  ;;  %v1598_v56 = vpop.permute.xlu2 %1597  ;;  %v2724_v45 = vpack.c.bf16 %v4059_v49, %v4059_v49 }
 0x5fc   :  { %vm1927_vm9 = vcmp.eq.s32.totalorder %v1489_v22, %v4548_v46  ;;  %v3696_v62 = vunpack.c.l.b16 %v2714_v11  ;;  %vm1945_vm12 = vcmp.eq.s32.totalorder %v1598_v56, %v4548_v46 }
 0x5fd   :  { %v4030_v44 = vsel %vm1927_vm9, 1.0, %v6125_v48 }
 0x5fe   :  { %v2695_v31 = vpack.c.bf16 %v4030_v44, %v4030_v44  ;;  %v2727_v44 = vpack.c.bf16 %v4062_v29, %v4062_v29 }
 0x600   :  { %v5834_v17 = vunpack.c.l.b16 %v2695_v31  ;;  %v3709_v16 = vunpack.c.l.b16 %v2727_v44 }
 0x601   :  { %1670 = vperm.xlu1 %4271, %v6168_v38   ;;  %4276 = vset.pattern.permute.xlu2 %v4386_v7 }
 0x602   :  { %v3598_v10 = vpack.c.b16 %v5834_v17, %v5832_v20 }
 0x603   :  { %v1695_v55 = vpop.permute.xlu2 %1694 }
 0x604   :  { %vm1961_vm13 = vcmp.eq.s32.totalorder %v1695_v55, %v4548_v46  ;;  %v6174_v55 = vld [vmem:[#allocation43_spill] sm:$0xff] }
 0x605   :  { %v4064_v13 = vsel %vm1961_vm13, 1.0, %v6125_v48  ;;  %vm1930_vm2 = vcmp.eq.s32.totalorder %v6174_v55, %v4548_v46 }
 0x609   :  { %4273 = vset.pattern.permute.xlu1 %v4406_v12  ;;  %1549 = vperm.xlu2 %4276, %v5502_v28   ;;  %v4048_v12 = vsel %vm1945_vm12, 1.0, %v6125_v48  ;;  %vm1955_vm12 = vcmp.eq.s32.totalorder %v5002_v35, %v4548_v46 }
 0x60a   :  { %v2713_v60 = vpack.c.bf16 %v4048_v12, %v4048_v12  ;;  %v4058_v59 = vsel %vm1955_vm12, 1.0, %v6125_v48  ;;  %vm1934_vm12 = vcmp.eq.s32.totalorder %v5722_v34, %v4548_v46 }
 0x60b   :  { %v1610_v14 = vpop.permute.xlu1 %1609  ;;  %v2723_v63 = vpack.c.bf16 %v4058_v59, %v4058_v59 }
 0x60c   :  { %vm1947_vm11 = vcmp.eq.s32.totalorder %v1610_v14, %v4548_v46  ;;  %v3695_v40 = vunpack.c.l.b16 %v2713_v60  ;;  %v4033_v14 = vsel %vm1930_vm2, 1.0, %v6125_v48 }
 0x60d   :  { %v4050_v15 = vsel %vm1947_vm11, 1.0, %v6125_v48 }
 0x60e   :  { %v2715_v7 = vpack.c.bf16 %v4050_v15, %v4050_v15 }
 0x610   :  { %v3697_v24 = vunpack.c.l.b16 %v2715_v7 }
 0x611   :  { %1561 = vperm.xlu1 %4273, %v5502_v28   ;;  %1646 = vperm.xlu2 %4276, %v6168_v38  }
 0x612   :  { %v3721_v18 = vpack.c.b16 %v3697_v24, %v3696_v62  ;;  %v2698_v62 = vpack.c.bf16 %v4033_v14, %v4033_v14 }
 0x613   :  { %v1580_v5 = vpop.permute.xlu2 %1579 }
 0x614   :  { %3746 = vmatpush.bf16.msrb.mxu2 %v3721_v18  ;;  %v3583_v18 = vunpack.c.l.b16 %v2698_v62  ;;  %vm1942_vm4 = vcmp.eq.s32.totalorder %v1580_v5, %v4548_v46  ;;  %v76_v62 = vsel %vm75_vm0, %v5674_v39, %v5309_v6 }
 0x619   :  { %4275 = vset.pattern.permute.xlu1 %v4366_v2  ;;  %4279 = vset.pattern.permute.xlu2 %v4369_v3  ;;  %v2729_v3 = vpack.c.bf16 %v4064_v13, %v4064_v13 }
 0x61b   :  { %v1592_v42 = vpop.permute.xlu1 %1591  ;;  %v1677_v36 = vpop.permute.xlu2 %1676  ;;  %v3711_v37 = vunpack.c.l.b16 %v2729_v3 }
 0x61c   :  { %vm1944_vm14 = vcmp.eq.s32.totalorder %v1592_v42, %v4548_v46  ;;  %vm1958_vm15 = vcmp.eq.s32.totalorder %v1677_v36, %v4548_v46 }
 0x61d   :  { %v4047_v57 = vsel %vm1944_vm14, 1.0, %v6125_v48  ;;  %v4061_v27 = vsel %vm1958_vm15, 1.0, %v6125_v48 }
 0x61e   :  { %v2712_v53 = vpack.c.bf16 %v4047_v57, %v4047_v57  ;;  %v2726_v22 = vpack.c.bf16 %v4061_v27, %v4061_v27 }
 0x620   :  { %v3694_v2 = vunpack.c.l.b16 %v2712_v53  ;;  %v3708_v9 = vunpack.c.l.b16 %v2726_v22 }
 0x621   :  { %1543 = vperm.xlu1 %4275, %v5502_v28   ;;  %1628 = vperm.xlu2 %4279, %v6168_v38  }
 0x622   :  { %v3720_v41 = vpack.c.b16 %v3695_v40, %v3694_v2  ;;  %v3727_v11 = vpack.c.b16 %v3709_v16, %v3708_v9 }
 0x623   :  { %v1689_v58 = vpop.permute.xlu1 %1688 }
 0x624   :  { %vm1960_vm1 = vcmp.eq.s32.totalorder %v1689_v58, %v4548_v46  ;;  %3747 = vmatpush.bf16.msrb.mxu2 %v3720_v41 }
 0x625   :  { %v4063_v19 = vsel %vm1960_vm1, 1.0, %v6125_v48 }
 0x626   :  { %v2728_v51 = vpack.c.bf16 %v4063_v19, %v4063_v19 }
 0x628   :  { %v3710_v31 = vunpack.c.l.b16 %v2728_v51 }
 0x629   :  { %1640 = vperm.xlu1 %4275, %v6168_v38   ;;  %4280 = vset.pattern.permute.xlu2 %v4363_v1 }
 0x62a   :  { %v3728_v56 = vpack.c.b16 %v3711_v37, %v3710_v31 }
 0x62b   :  { %v1501_v40 = vpop.permute.xlu2 %1500 }
 0x62c   :  { %3760 = vmatpush.bf16.msrb.mxu3 %v3728_v56  ;;  %vm1929_vm6 = vcmp.eq.s32.totalorder %v1501_v40, %v4548_v46 }
 0x62d   :  { %v4032_v5 = vsel %vm1929_vm6, 1.0, %v6125_v48 }
 0x62e   :  { %v2697_v53 = vpack.c.bf16 %v4032_v5, %v4032_v5 }
 0x630   :  { %3761 = vmatpush.bf16.msrb.mxu3 %v3727_v11  ;;  %v3582_v3 = vunpack.c.l.b16 %v2697_v53 }
 0x631   :  { %4278 = vset.pattern.permute.xlu1 %v4389_v8  ;;  %1519 = vperm.xlu2 %4280, %v5502_v28   ;;  %v4045_v8 = vsel %vm1942_vm4, 1.0, %v6125_v48  ;;  %vm72_vm4 = vcmask 1044484  }
 0x632   :  { %v2710_v32 = vpack.c.bf16 %v4045_v8, %v4045_v8  ;;  %v73_v8 = vsel %vm72_vm4, %v5674_v39, %v5309_v6 }
 0x633   :  { %v1513_v15 = vpop.permute.xlu1 %1512 }
 0x634   :  { %vm1931_vm3 = vcmp.eq.s32.totalorder %v1513_v15, %v4548_v46 }
 0x635   :  { %v4034_v7 = vsel %vm1931_vm3, 1.0, %v6125_v48 }
 0x636   :  { %v2699_v24 = vpack.c.bf16 %v4034_v7, %v4034_v7  ;;  %v77_v7 = vrot.slane %v76_v62, 5 }
 0x638   :  { %v3584_v12 = vunpack.c.l.b16 %v2699_v24  ;;  %v94_v24 = vperm.slane %v77_v7, 0 }
 0x639   :  { %1537 = vperm.xlu1 %4278, %v5502_v28   ;;  %4282 = vset.pattern.permute.xlu2 %v4372_v4  ;;  %v3692_v28 = vunpack.c.l.b16 %v2710_v32 }
 0x63a   :  { %v3600_v52 = vpack.c.b16 %v3584_v12, %v3583_v18  ;;  %v95_v18 = vperm.slane %v77_v7, 1  ;;  %vm110_vm2 = vcmp.eq.s32.totalorder %v94_v24, %v4363_v1 }
 0x63b   :  { %v1574_v58 = vpop.permute.xlu2 %1573  ;;  %v3805_v12 = vsel %vm110_vm2, 1.0, %v6125_v48 }
 0x63c   :  { %3630 = vmatpush.bf16.msrb.mxu1 %v3600_v52  ;;  %vm1941_vm8 = vcmp.eq.s32.totalorder %v1574_v58, %v4548_v46  ;;  %vm111_vm3 = vcmp.eq.s32.totalorder %v95_v18, %v4363_v1 }
 0x63d   :  { %v4044_v19 = vsel %vm1941_vm8, 1.0, %v6125_v48  ;;  %v3806_v52 = vsel %vm111_vm3, 1.0, %v6125_v48 }
 0x641   :  { %1634 = vperm.xlu1 %4278, %v6168_v38   ;;  %1622 = vperm.xlu2 %4282, %v6168_v38  }
 0x643   :  { %v1586_v60 = vpop.permute.xlu1 %1585 }
 0x644   :  { %vm1943_vm5 = vcmp.eq.s32.totalorder %v1586_v60, %v4548_v46 }
 0x645   :  { %v4046_v42 = vsel %vm1943_vm5, 1.0, %v6125_v48 }
 0x646   :  { %v2711_v36 = vpack.c.bf16 %v4046_v42, %v4046_v42  ;;  %v153_v42 = vpack.c.bf16 %v3806_v52, %v3805_v12 }
 0x648   :  { %v3693_v57 = vunpack.c.l.b16 %v2711_v36  ;;  %v74_v36 = vrot.slane %v73_v8, 4 }
 0x649   :  { %4281 = vset.pattern.permute.xlu1 %v4363_v1 }
 0x64a   :  { %v3719_v4 = vpack.c.b16 %v3693_v57, %v3692_v28  ;;  %v3386_v57 = vunpack.c.l.b16 %v153_v42  ;;  %v92_v40 = vperm.slane %v74_v36, 0  ;;  %v93_v53 = vperm.slane %v74_v36, 1 }
 0x64b   :  { %v1556_v37 = vpop.permute.xlu2 %1555 }
 0x64c   :  { %3748 = vmatpush.bf16.msrb.mxu2 %v3719_v4  ;;  %vm1938_vm14 = vcmp.eq.s32.totalorder %v1556_v37, %v4548_v46  ;;  %v3387_v4 = vunpack.c.h.b16 %v153_v42  ;;  %vm109_vm8 = vcmp.eq.s32.totalorder %v93_v53, %v4363_v1  ;;  %v2865_v42 = vpop.f32.mrf.mxu1 }
 0x64d   :  { %v4041_v50 = vsel %vm1938_vm14, 1.0, %v6125_v48 }
 0x651   :  { %1616 = vperm.xlu1 %4281, %v6168_v38   ;;  %v2709_v38 = vpack.c.bf16 %v4044_v19, %v4044_v19  ;;  %v3804_v19 = vsel %vm109_vm8, 1.0, %v6125_v48 }
 0x653   :  { %v1495_v13 = vpop.permute.xlu1 %1494  ;;  %v3691_v44 = vunpack.c.l.b16 %v2709_v38  ;;  %v1653_v17 = vpop.permute.xlu2 %1652 }
 0x654   :  { %vm1928_vm7 = vcmp.eq.s32.totalorder %v1495_v13, %v4548_v46  ;;  %vm1954_vm11 = vcmp.eq.s32.totalorder %v1653_v17, %v4548_v46 }
 0x655   :  { %v4031_v2 = vsel %vm1928_vm7, 1.0, %v6125_v48  ;;  %v4057_v43 = vsel %vm1954_vm11, 1.0, %v6125_v48  ;;  %vm108_vm7 = vcmp.eq.s32.totalorder %v92_v40, %v4363_v1  ;;  %vm78_vm11 = vcmask 1046534   ;;  %v2981_v40 = vpop.f32.mrf.mxu2 }
 0x656   :  { %v2696_v41 = vpack.c.bf16 %v4031_v2, %v4031_v2  ;;  %v2722_v25 = vpack.c.bf16 %v4057_v43, %v4057_v43  ;;  %v3388_v2 = vpack.c.b16 %v3386_v57, %v3386_v57 }
 0x658   :  { %v3581_v27 = vunpack.c.l.b16 %v2696_v41  ;;  %v3704_v35 = vunpack.c.l.b16 %v2722_v25  ;;  %v3389_v41 = vpack.c.b16 %v3387_v4, %v3387_v4  ;;  %3496 = vmatmul.bf16.vlgmr.msra.gmra.mxu2 %v3388_v2  ;;  %v79_v25 = vsel %vm78_vm11, %v5674_v39, %v5309_v6 }
 0x65a   :  { %v3599_v29 = vpack.c.b16 %v3582_v3, %v3581_v27  ;;  %v3803_v27 = vsel %vm108_vm7, 1.0, %v6125_v48  ;;  %3509 = vmatmul.bf16.vlgmr.msra.gmra.mxu3 %v3389_v41 }
 0x65c   :  { %3631 = vmatpush.bf16.msrb.mxu1 %v3599_v29 }
 0x660   :  { %3632 = vmatpush.bf16.msrb.mxu1 %v3598_v10 }
 0x663   :  { %v1568_v22 = vpop.permute.xlu1 %1567  ;;  %v1550_v55 = vpop.permute.xlu2 %1549 }
 0x664   :  { %vm1940_vm9 = vcmp.eq.s32.totalorder %v1568_v22, %v4548_v46  ;;  %3633 = vmatpush.bf16.msrb.mxu1 %v3597_v23  ;;  %v3705_v23 = vunpack.c.l.b16 %v2723_v63  ;;  %vm1937_vm1 = vcmp.eq.s32.totalorder %v1550_v55, %v4548_v46  ;;  %v152_v22 = vpack.c.bf16 %v3804_v19, %v3803_v27 }
 0x665   :  { %v4043_v51 = vsel %vm1940_vm9, 1.0, %v6125_v48  ;;  %v4040_v60 = vsel %vm1937_vm1, 1.0, %v6125_v48  ;;  %vm81_vm9 = vcmask 1046528  }
 0x666   :  { %v2708_v31 = vpack.c.bf16 %v4043_v51, %v4043_v51  ;;  %v3725_v10 = vpack.c.b16 %v3705_v23, %v3704_v35  ;;  %v2705_v5 = vpack.c.bf16 %v4040_v60, %v4040_v60 }
 0x668   :  { %v3690_v9 = vunpack.c.l.b16 %v2708_v31  ;;  %3634 = vmatpush.bf16.msrb.mxu1 %v3596_v54  ;;  %v3687_v58 = vunpack.c.l.b16 %v2705_v5  ;;  %v3257_v31 = vunpack.c.l.b16 %v152_v22  ;;  %v2994_v5 = vpop.f32.mrf.mxu3 }
 0x66a   :  { %v3718_v20 = vpack.c.b16 %v3691_v44, %v3690_v9  ;;  %v3258_v9 = vunpack.c.h.b16 %v152_v22  ;;  %v3259_v49 = vpack.c.b16 %v3257_v31, %v3257_v31 }
 0x66b   :  { %v1647_v32 = vpop.permute.xlu2 %1646 }
 0x66c   :  { %3635 = vmatpush.bf16.msrb.mxu1 %v3595_v21  ;;  %3749 = vmatpush.bf16.msrb.mxu2 %v3718_v20  ;;  %vm1953_vm6 = vcmp.eq.s32.totalorder %v1647_v32, %v4548_v46  ;;  %v3260_v43 = vpack.c.b16 %v3258_v9, %v3258_v9  ;;  %v2852_v32 = vpop.f32.mrf.mxu0 }
 0x66d   :  { %v4056_v38 = vsel %vm1953_vm6, 1.0, %v6125_v48  ;;  %3367 = vmatmul.bf16.vlgmr.msra.gmra.mxu0 %v3259_v49  ;;  %v2866_v27 = vadd.f32 %v2865_v42, %v2852_v32 }
 0x66e   :  { %v2721_v20 = vpack.c.bf16 %v4056_v38, %v4056_v38  ;;  %3380 = vmatmul.bf16.vlgmr.msra.gmra.mxu1 %v3260_v43 }
 0x670   :  { %3636 = vmatpush.bf16.msrb.mxu1 %v3594_v30  ;;  %v3706_v30 = vunpack.c.l.b16 %v2724_v45  ;;  %v82_v45 = vsel %vm81_vm9, %v5309_v6, %v5674_v39  ;;  %v3703_v59 = vunpack.c.l.b16 %v2721_v20  ;;  %v2996_v49 = vpop.f32.mrf.mxu3 }
 0x671   :  { %v83_v63 = vrot.slane %v82_v45, 7 }
 0x673   :  { %v1671_v0 = vpop.permute.xlu1 %1670 }
 0x674   :  { %vm1957_vm13 = vcmp.eq.s32.totalorder %v1671_v0, %v4548_v46  ;;  %3637 = vmatpush.bf16.msrb.mxu1 %v3593_v33  ;;  %v2706_v33 = vpack.c.bf16 %v4041_v50, %v4041_v50  ;;  %v99_v50 = vperm.slane %v83_v63, 1  ;;  %v2854_v22 = vpop.f32.mrf.mxu0 }
 0x675   :  { %v4060_v21 = vsel %vm1957_vm13, 1.0, %v6125_v48 }
 0x676   :  { %v2725_v61 = vpack.c.bf16 %v4060_v21, %v4060_v21  ;;  %v3688_v11 = vunpack.c.l.b16 %v2706_v33  ;;  %v4037_v33 = vsel %vm1934_vm12, 1.0, %v6125_v48  ;;  %vm115_vm2 = vcmp.eq.s32.totalorder %v99_v50, %v4363_v1 }
 0x677   :  { %v3810_v12 = vsel %vm115_vm2, 1.0, %v6125_v48 }
 0x678   :  { %v3707_v54 = vunpack.c.l.b16 %v2725_v61 }
 0x67a   :  { %v3726_v26 = vpack.c.b16 %v3707_v54, %v3706_v30  ;;  %v1526_v30 = vpop.permute.xlu0 %1525  ;;  %v80_v54 = vrot.slane %v79_v25, 6 }
 0x67b   :  { %v5943_v37 = vpop.permute.xlu2 %1628  ;;  %vm1933_vm14 = vcmp.eq.s32.totalorder %v1526_v30, %v4548_v46 }
 0x67c   :  { %3762 = vmatpush.bf16.msrb.mxu3 %v3726_v26  ;;  %v96_v26 = vperm.slane %v80_v54, 0  ;;  %v97_v23 = vperm.slane %v80_v54, 1  ;;  %vm1950_vm4 = vcmp.eq.s32.totalorder %v5943_v37, %v4548_v46 }
 0x67d   :  { %v4053_v36 = vsel %vm1950_vm4, 1.0, %v6125_v48 }
 0x67e   :  { %vm113_vm0 = vcmp.eq.s32.totalorder %v97_v23, %v4363_v1 }
 0x67f   :  { %v3808_v39 = vsel %vm113_vm0, 1.0, %v6125_v48 }
 0x680   :  { %3763 = vmatpush.bf16.msrb.mxu3 %v3725_v10  ;;  %v98_v10 = vperm.slane %v83_v63, 0 }
 0x682   :  { %vm114_vm1 = vcmp.eq.s32.totalorder %v98_v10, %v4363_v1 }
 0x683   :  { %v1562_v47 = vpop.permute.xlu1 %1561  ;;  %v3809_v18 = vsel %vm114_vm1, 1.0, %v6125_v48 }
 0x684   :  { %vm1939_vm15 = vcmp.eq.s32.totalorder %v1562_v47, %v4548_v46  ;;  %v5970_v60 = vpack.c.bf16 %v3810_v12, %v3809_v18 }
 0x685   :  { %v4042_v56 = vsel %vm1939_vm15, 1.0, %v6125_v48  ;;  %vm112_vm15 = vcmp.eq.s32.totalorder %v96_v26, %v4363_v1 }
 0x686   :  { %v2707_v16 = vpack.c.bf16 %v4042_v56, %v4042_v56  ;;  %v3807_v6 = vsel %vm112_vm15, 1.0, %v6125_v48  ;;  %v4036_v56 = vsel %vm1933_vm14, 1.0, %v6125_v48 }
 0x687   :  { %v154_v47 = vpack.c.bf16 %v3808_v39, %v3807_v6  ;;  %v2701_v24 = vpack.c.bf16 %v4036_v56, %v4036_v56 }
 0x688   :  { %v3689_v14 = vunpack.c.l.b16 %v2707_v16 }
 0x689   :  { %v3515_v16 = vunpack.c.l.b16 %v154_v47  ;;  %v3516_v55 = vunpack.c.h.b16 %v154_v47  ;;  %v3683_v4 = vunpack.c.l.b16 %v2701_v24 }
 0x68a   :  { %v3717_v15 = vpack.c.b16 %v3689_v14, %v3688_v11  ;;  %v2702_v11 = vpack.c.bf16 %v4037_v33, %v4037_v33 }
 0x68b   :  { %v1520_v61 = vpop.permute.xlu2 %1519  ;;  %v3517_v62 = vpack.c.b16 %v3515_v16, %v3515_v16  ;;  %v3518_v7 = vpack.c.b16 %v3516_v55, %v3516_v55 }
 0x68c   :  { %3750 = vmatpush.bf16.msrb.mxu2 %v3717_v15  ;;  %vm1932_vm13 = vcmp.eq.s32.totalorder %v1520_v61, %v4548_v46  ;;  %v3684_v8 = vunpack.c.l.b16 %v2702_v11 }
 0x68d   :  { %v4035_v34 = vsel %vm1932_vm13, 1.0, %v6125_v48  ;;  %3625 = vmatmul.bf16.vlgmr.msrb.gmra.mxu0 %v3517_v62  ;;  %3638 = vmatmul.bf16.vlgmr.msrb.gmra.mxu1 %v3518_v7 }
 0x68e   :  { %v2700_v15 = vpack.c.bf16 %v4035_v34, %v4035_v34  ;;  %v3645_v34 = vunpack.c.h.b16 %v5970_v60 }
 0x690   :  { %v3682_v57 = vunpack.c.l.b16 %v2700_v15  ;;  %v3647_v15 = vpack.c.b16 %v3645_v34, %v3645_v34 }
 0x692   :  { %v3714_v41 = vpack.c.b16 %v3683_v4, %v3682_v57 }
 0x693   :  { %v1544_v28 = vpop.permute.xlu1 %1543 }
 0x694   :  { %vm1936_vm5 = vcmp.eq.s32.totalorder %v1544_v28, %v4548_v46 }
 0x695   :  { %v4039_v13 = vsel %vm1936_vm5, 1.0, %v6125_v48  ;;  %vm43_vm5 = vcmask 27648  }
 0x696   :  { %v2704_v3 = vpack.c.bf16 %v4039_v13, %v4039_v13  ;;  %44 = vst.msk [vmem:[%s6079_s2] sm:$0xf] %vm43_vm5, %v6125_v48  ;;  %v2718_v13 = vpack.c.bf16 %v4053_v36, %v4053_v36 }
 0x697   :  { %45 = vst.msk [vmem:[%s6079_s2 + $0x4] sm:$0xf] %vm43_vm5, %v6125_v48 }
 0x698   :  { %v3686_v29 = vunpack.c.l.b16 %v2704_v3  ;;  %46 = vst.msk [vmem:[%s6079_s2 + $0x8] sm:$0xf] %vm43_vm5, %v6125_v48  ;;  %v3644_v3 = vunpack.c.l.b16 %v5970_v60 }
 0x699   :  { %47 = vst.msk [vmem:[%s6079_s2 + $0xc] sm:$0xf] %vm43_vm5, %v6125_v48 }
 0x69a   :  { %v3716_v51 = vpack.c.b16 %v3687_v58, %v3686_v29  ;;  %48 = vst.msk [vmem:[%s6079_s2 + $0x10] sm:$0xf] %vm43_vm5, %v6125_v48  ;;  %v2995_v29 = vadd.f32 %v2994_v5, %v2981_v40  ;;  %v3646_v38 = vpack.c.b16 %v3644_v3, %v3644_v3 }
 0x69b   :  { %v1641_v44 = vpop.permute.xlu1 %1640  ;;  %49 = vst.msk [vmem:[%s6079_s2 + $0x14] sm:$0xf] %vm43_vm5, %v6125_v48  ;;  %v1623_v43 = vpop.permute.xlu2 %1622 }
 0x69c   :  { %vm1952_vm10 = vcmp.eq.s32.totalorder %v1641_v44, %v4548_v46  ;;  %3751 = vmatpush.bf16.msrb.mxu2 %v3716_v51  ;;  %50 = vst.msk [vmem:[%s6079_s2 + $0x18] sm:$0xf] %vm43_vm5, %v6125_v48  ;;  %v2867_v51 = vpop.f32.mrf.mxu1  ;;  %v3700_v44 = vunpack.c.l.b16 %v2718_v13  ;;  %vm1949_vm7 = vcmp.eq.s32.totalorder %v1623_v43, %v4548_v46 }
 0x69d   :  { %v4055_v17 = vsel %vm1952_vm10, 1.0, %v6125_v48  ;;  %v2732_v37 = vld [vmem:[%s6079_s2] sm:$0xf]  ;;  %51 = vst.msk [vmem:[%s6079_s2 + $0x1c] sm:$0xf] %vm43_vm5, %v6125_v48 }
 0x69e   :  { %v2720_v0 = vpack.c.bf16 %v4055_v17, %v4055_v17  ;;  %v3772_v9 = vadd.f32 %v2866_v27, %v2732_v37  ;;  %v2733_v20 = vld [vmem:[%s6079_s2 + $0x4] sm:$0xf]  ;;  %v2983_v17 = vpop.f32.mrf.mxu2 }
 0x69f   :  { %v2734_v25 = vld [vmem:[%s6079_s2 + $0x8] sm:$0xf] }
 0x6a0   :  { %v3702_v21 = vunpack.c.l.b16 %v2720_v0  ;;  %v3773_v0 = vadd.f32 %v2995_v29, %v2733_v20  ;;  %3781 = vst.msk [vmem:[%s6079_s2] sm:$0xf] %vm43_vm5, %v3772_v9  ;;  %v2735_v54 = vld [vmem:[%s6079_s2 + $0xc] sm:$0xf] }
 0x6a1   :  { %v2736_v18 = vld [vmem:[%s6079_s2 + $0x10] sm:$0xf] }
 0x6a2   :  { %v3724_v35 = vpack.c.b16 %v3703_v59, %v3702_v21  ;;  %3782 = vst.msk [vmem:[%s6079_s2 + $0x4] sm:$0xf] %vm43_vm5, %v3773_v0  ;;  %v4052_v59 = vsel %vm1949_vm7, 1.0, %v6125_v48  ;;  %v3110_v21 = vpop.f32.mrf.mxu0 }
 0x6a3   :  { %v2717_v23 = vpack.c.bf16 %v4052_v59, %v4052_v59  ;;  %v2738_v4 = vld [vmem:[%s6079_s2 + $0x18] sm:$0xf] }
 0x6a4   :  { %3764 = vmatpush.bf16.msrb.mxu3 %v3724_v35  ;;  %v3123_v61 = vpop.f32.mrf.mxu1  ;;  %v3252_v35 = vpop.f32.mrf.mxu3  ;;  %v2739_v27 = vld [vmem:[%s6079_s2 + $0x1c] sm:$0xf] }
 0x6a5   :  { %v3124_v30 = vadd.f32 %v3123_v61, %v3110_v21  ;;  %v3699_v47 = vunpack.c.l.b16 %v2717_v23 }
 0x6a6   :  { %v3239_v63 = vpop.f32.mrf.mxu2 }
 0x6a7   :  { %v3253_v26 = vadd.f32 %v3252_v35, %v3239_v63  ;;  %v3774_v10 = vadd.f32 %v3124_v30, %v2734_v25 }
 0x6a9   :  { %v3775_v6 = vadd.f32 %v3253_v26, %v2735_v54  ;;  %3783 = vst.msk [vmem:[%s6079_s2 + $0x8] sm:$0xf] %vm43_vm5, %v3774_v10 }
 0x6aa   :  { %v3112_v56 = vpop.f32.mrf.mxu0 }
 0x6ab   :  { %v1538_v14 = vpop.permute.xlu1 %1537  ;;  %3784 = vst.msk [vmem:[%s6079_s2 + $0xc] sm:$0xf] %vm43_vm5, %v3775_v6 }
 0x6ac   :  { %vm1935_vm3 = vcmp.eq.s32.totalorder %v1538_v14, %v4548_v46  ;;  %v3125_v16 = vpop.f32.mrf.mxu1  ;;  %v3254_v11 = vpop.f32.mrf.mxu3 }
 0x6ad   :  { %v4038_v52 = vsel %vm1935_vm3, 1.0, %v6125_v48 }
 0x6ae   :  { %v2703_v1 = vpack.c.bf16 %v4038_v52, %v4038_v52 }
 0x6b0   :  { %v3685_v28 = vunpack.c.l.b16 %v2703_v1 }
 0x6b2   :  { %v3715_v53 = vpack.c.b16 %v3685_v28, %v3684_v8 }
 0x6b3   :  { %v1635_v2 = vpop.permute.xlu1 %1634 }
 0x6b4   :  { %vm1951_vm6 = vcmp.eq.s32.totalorder %v1635_v2, %v4548_v46  ;;  %3752 = vmatpush.bf16.msrb.mxu2 %v3715_v53 }
 0x6b5   :  { %v4054_v58 = vsel %vm1951_vm6, 1.0, %v6125_v48 }
 0x6b6   :  { %v2719_v19 = vpack.c.bf16 %v4054_v58, %v4054_v58 }
 0x6b8   :  { %v3701_v31 = vunpack.c.l.b16 %v2719_v19  ;;  %3753 = vmatpush.bf16.msrb.mxu2 %v3714_v41 }
 0x6ba   :  { %v3723_v45 = vpack.c.b16 %v3701_v31, %v3700_v44 }
 0x6bb   :  { %3754 = vmatmul.bf16.vlgmr.msrb.gmra.mxu2 %v3646_v38 }
 0x6bc   :  { %3765 = vmatpush.bf16.msrb.mxu3 %v3723_v45 }
 0x6c3   :  { %v1617_v50 = vpop.permute.xlu1 %1616 }
 0x6c4   :  { %vm1948_vm8 = vcmp.eq.s32.totalorder %v1617_v50, %v4548_v46  ;;  %v3241_v46 = vpop.f32.mrf.mxu2 }
 0x6c5   :  { %v4051_v39 = vsel %vm1948_vm8, 1.0, %v6125_v48  ;;  %v2737_v48 = vld [vmem:[%s6079_s2 + $0x14] sm:$0xf] }
 0x6c6   :  { %v2716_v33 = vpack.c.bf16 %v4051_v39, %v4051_v39 }
 0x6c8   :  { %v3698_v55 = vunpack.c.l.b16 %v2716_v33 }
 0x6ca   :  { %v3722_v14 = vpack.c.b16 %v3699_v47, %v3698_v55 }
 0x6cc   :  { %3766 = vmatpush.bf16.msrb.mxu3 %v3722_v14 }
 0x6cf   :  { %3767 = vmatmul.bf16.vlgmr.msrb.gmra.mxu3 %v3647_v15 }
 0x6db   :  { %v3497_v62 = vpop.f32.mrf.mxu2 }
 0x6dd   :  { %v3510_v7 = vpop.f32.mrf.mxu3 }
 0x6de   :  { %v3511_v52 = vadd.f32 %v3510_v7, %v3497_v62 }
 0x6e0   :  { %v3777_v8 = vadd.f32 %v3511_v52, %v2737_v48 }
 0x6e2   :  { %3786 = vst.msk [vmem:[%s6079_s2 + $0x14] sm:$0xf] %vm43_vm5, %v3777_v8 }
 0x6e3   :  { %v3499_v32 = vpop.f32.mrf.mxu2 }
 0x6e5   :  { %v3512_v42 = vpop.f32.mrf.mxu3 }
 0x6ea   :  { %v3368_v24 = vpop.f32.mrf.mxu0 }
 0x6eb   :  { %v3381_v12 = vpop.f32.mrf.mxu1 }
 0x6ec   :  { %v3382_v1 = vadd.f32 %v3381_v12, %v3368_v24 }
 0x6ee   :  { %v3776_v60 = vadd.f32 %v3382_v1, %v2736_v18 }
 0x6f0   :  { %3785 = vst.msk [vmem:[%s6079_s2 + $0x10] sm:$0xf] %vm43_vm5, %v3776_v60 }
 0x6f2   :  { %v3370_v36 = vpop.f32.mrf.mxu0 }
 0x6f3   :  { %v3383_v28 = vpop.f32.mrf.mxu1 }
 0x70a   :  { %v3626_v57 = vpop.f32.mrf.mxu0  ;;  %v3639_v40 = vpop.f32.mrf.mxu1 }
 0x70b   :  { %v3640_v5 = vadd.f32 %v3639_v40, %v3626_v57 }
 0x70d   :  { %v3778_v53 = vadd.f32 %v3640_v5, %v2738_v4 }
 0x70f   :  { %3787 = vst.msk [vmem:[%s6079_s2 + $0x18] sm:$0xf] %vm43_vm5, %v3778_v53 }
 0x712   :  { %v3628_v13 = vpop.f32.mrf.mxu0  ;;  %v3641_v2 = vpop.f32.mrf.mxu1 }
 0x73e   :  { %v3755_v3 = vpop.f32.mrf.mxu2 }
 0x746   :  { %v3757_v41 = vpop.f32.mrf.mxu2 }
 0x752   :  { %v3768_v58 = vpop.f32.mrf.mxu3 }
 0x753   :  { %v3769_v29 = vadd.f32 %v3768_v58, %v3755_v3 }
 0x755   :  { %v3779_v19 = vadd.f32 %v3769_v29, %v2739_v27 }
 0x757   :  { %3788 = vst.msk [vmem:[%s6079_s2 + $0x1c] sm:$0xf] %vm43_vm5, %v3779_v19 }
 0x75a   :  { %v3770_v38 = vpop.f32.mrf.mxu3 }
 0x75b   :  { %3793 = vsyncpa [#allocation3], 1 }
 0x75c   :  { %3794 = vsyncpa [#allocation5], 1 }

</bundles_post_ra>
